<compile_context>
chip_gen: v7x
topology: tpu7x:2x2x1
jax: 0.10.0
libtpu: 0.0.40
codegen_flags: <defaults>
</compile_context>

<pallas_src>
import functools

import jax
import jax.numpy as jnp
from jax import lax
from jax.experimental import pallas as pl
from jax.experimental.pallas import tpu as pltpu


def _layer_norm(x, g, b, eps=1e-5):
    mean = jnp.mean(x, axis=-1, keepdims=True)
    centered = x - mean
    var = jnp.mean(centered * centered, axis=-1, keepdims=True)
    return centered * lax.rsqrt(var + eps) * g + b


def _fused_bert_encoder_kernel(num_heads, seq_len,
                               vl_ref, x_ref,
                               wq_ref, bq_ref, wk_ref, bk_ref,
                               wv_ref, bv_ref, wo_ref, bo_ref,
                               g1_ref, be1_ref, wf1_ref, bf1_ref,
                               wf2_ref, bf2_ref, g2_ref, be2_ref,
                               out_ref, attn_ref):
    """All encoder blocks for one tile of TB batch elements (rows = TB*S)."""
    bt = pl.program_id(0)
    M, D = x_ref.shape                         # rows = TB*S, hidden
    S = seq_len
    TB = M // S
    H = num_heads
    dh = D // H
    L = wq_ref.shape[0]
    scale = 1.0 / (dh ** 0.5)

    x = x_ref[...]                             # (M, D) f32
    col_ids = lax.broadcasted_iota(jnp.int32, (S, S), 1)

    for l in range(L):                         # static unroll over layers
        # --- QKV projections: bf16 operands, f32 accumulation, f32 bias ---
        xb = x.astype(jnp.bfloat16)
        q = jnp.dot(xb, wq_ref[l], preferred_element_type=jnp.float32) + bq_ref[l]
        k = jnp.dot(xb, wk_ref[l], preferred_element_type=jnp.float32) + bk_ref[l]
        v = jnp.dot(xb, wv_ref[l], preferred_element_type=jnp.float32) + bv_ref[l]
        qb = (q * scale).astype(jnp.bfloat16)  # fold 1/sqrt(dh) into q
        kb = k.astype(jnp.bfloat16)
        vb = v.astype(jnp.bfloat16)

        # --- masked multi-head attention: head outputs go into a VMEM slab ---
        for b in range(TB):                    # static unroll over batch tile
            vl = vl_ref[bt * TB + b]           # scalar from SMEM
            key_mask = col_ids < vl            # (S, S) bool
            r0 = b * S
            for h in range(H):                 # static unroll over heads
                c0 = h * dh
                s = lax.dot_general(
                    qb[r0:r0 + S, c0:c0 + dh], kb[r0:r0 + S, c0:c0 + dh],
                    (((1,), (1,)), ((), ())),
                    preferred_element_type=jnp.float32)          # (S, S)
                s = jnp.where(key_mask, s, -1e6)                 # d2l masking
                s = s - jnp.max(s, axis=-1, keepdims=True)
                p = jnp.exp(s)
                p = p * pl.reciprocal(jnp.sum(p, axis=-1, keepdims=True),
                                      approx=True)
                attn_ref[r0:r0 + S, c0:c0 + dh] = jnp.dot(
                    p.astype(jnp.bfloat16), vb[r0:r0 + S, c0:c0 + dh],
                    preferred_element_type=jnp.float32)

        # --- output projection over the whole row tile (single big matmul) ---
        attn = jnp.dot(attn_ref[...].astype(jnp.bfloat16), wo_ref[l],
                       preferred_element_type=jnp.float32) + bo_ref[l]

        # --- AddNorm 1 (f32) ---
        y = _layer_norm(x + attn, g1_ref[l], be1_ref[l])

        # --- position-wise FFN ---
        hid = jnp.dot(y.astype(jnp.bfloat16), wf1_ref[l],
                      preferred_element_type=jnp.float32) + bf1_ref[l]
        hid = jnp.maximum(hid, 0.0)
        f = jnp.dot(hid.astype(jnp.bfloat16), wf2_ref[l],
                    preferred_element_type=jnp.float32) + bf2_ref[l]

        # --- AddNorm 2 (f32); result feeds the next layer ---
        x = _layer_norm(y + f, g2_ref[l], be2_ref[l])

    out_ref[...] = x


def _choose_batch_tile(B, S, target_rows=256):
    """Smallest divisor of B giving a sublane-aligned row tile >= target."""
    for tb in range(1, B + 1):
        if B % tb == 0 and (tb * S) % 8 == 0 and tb * S >= target_rows:
            return tb
    return B                                    # whole batch (full-dim block)


def _stack_blocks(blocks):
    """Stack per-layer params on a leading L axis; matmul weights as bf16."""
    def cat(name, dtype):
        return jnp.stack([b[name] for b in blocks], axis=0).astype(dtype)
    bf16, f32 = jnp.bfloat16, jnp.float32
    return {
        "wq": cat("wq", bf16), "bq": cat("bq", f32),
        "wk": cat("wk", bf16), "bk": cat("bk", f32),
        "wv": cat("wv", bf16), "bv": cat("bv", f32),
        "wo": cat("wo", bf16), "bo": cat("bo", f32),
        "gamma1": cat("gamma1", f32), "beta1": cat("beta1", f32),
        "wf1": cat("wf1", bf16), "bf1": cat("bf1", f32),
        "wf2": cat("wf2", bf16), "bf2": cat("bf2", f32),
        "gamma2": cat("gamma2", f32), "beta2": cat("beta2", f32),
    }


def bert_encoder_pallas(X, valid_lens, w, num_heads):
    B, S, D = X.shape
    L = w["wq"].shape[0]
    F = w["wf1"].shape[2]
    TB = _choose_batch_tile(B, S)
    rows = TB * S

    Xf = X.reshape(B * S, D)                    # flatten rows for lane-dense tiles

    def wspec(shape):                           # weights resident (constant map)
        return pl.BlockSpec(shape, lambda i, vl: (0, 0, 0))

    kernel = pl.pallas_call(
        functools.partial(_fused_bert_encoder_kernel, num_heads, S),
        out_shape=jax.ShapeDtypeStruct((B * S, D), jnp.float32),
        grid_spec=pltpu.PrefetchScalarGridSpec(
            num_scalar_prefetch=1,              # valid_lens -> SMEM
            grid=(B // TB,),
            in_specs=[
                pl.BlockSpec((rows, D), lambda i, vl: (i, 0)),   # X row tile
                wspec((L, D, D)), wspec((L, 1, D)),              # wq, bq
                wspec((L, D, D)), wspec((L, 1, D)),              # wk, bk
                wspec((L, D, D)), wspec((L, 1, D)),              # wv, bv
                wspec((L, D, D)), wspec((L, 1, D)),              # wo, bo
                wspec((L, 1, D)), wspec((L, 1, D)),              # gamma1, beta1
                wspec((L, D, F)), wspec((L, 1, F)),              # wf1, bf1
                wspec((L, F, D)), wspec((L, 1, D)),              # wf2, bf2
                wspec((L, 1, D)), wspec((L, 1, D)),              # gamma2, beta2
            ],
            out_specs=pl.BlockSpec((rows, D), lambda i, vl: (i, 0)),
            scratch_shapes=[pltpu.VMEM((rows, D), jnp.float32)],  # head-out slab
        ),
        compiler_params=pltpu.CompilerParams(
            dimension_semantics=("parallel",),
            # Above the 16/32 MiB scoped defaults, below v7x's 64 MiB physical.
            vmem_limit_bytes=48 * 1024 * 1024),
    )
    out = kernel(valid_lens, Xf,
                 w["wq"], w["bq"], w["wk"], w["bk"], w["wv"], w["bv"],
                 w["wo"], w["bo"], w["gamma1"], w["beta1"],
                 w["wf1"], w["bf1"], w["wf2"], w["bf2"],
                 w["gamma2"], w["beta2"])
    return out.reshape(B, S, D)


def bert_encoder_forward(tokens, segments, valid_lens, params, num_heads):
    # Embedding gathers are left to XLA (glue); the hot path is one fused kernel.
    X = (jnp.take(params["token_embedding"], tokens, axis=0)
         + jnp.take(params["segment_embedding"], segments, axis=0)
         + params["pos_embedding"][:, :tokens.shape[1], :])
    stacked = _stack_blocks(params["blocks"])
    return bert_encoder_pallas(X, valid_lens, stacked, num_heads)


# ----------------------- parameter init & pure-JAX reference -----------------

def _init_linear(key, din, dout):
    kw, kb = jax.random.split(key)
    bound = 1.0 / (din ** 0.5)
    w = jax.random.uniform(kw, (din, dout), jnp.float32, -bound, bound)
    b = jax.random.uniform(kb, (1, dout), jnp.float32, -bound, bound)
    return w, b


def _init_block(key, D, F):
    ks = jax.random.split(key, 6)
    wq, bq = _init_linear(ks[0], D, D)
    wk, bk = _init_linear(ks[1], D, D)
    wv, bv = _init_linear(ks[2], D, D)
    wo, bo = _init_linear(ks[3], D, D)
    wf1, bf1 = _init_linear(ks[4], D, F)
    wf2, bf2 = _init_linear(ks[5], F, D)
    return {"wq": wq, "bq": bq, "wk": wk, "bk": bk, "wv": wv, "bv": bv,
            "wo": wo, "bo": bo,
            "gamma1": jnp.ones((1, D), jnp.float32),
            "beta1": jnp.zeros((1, D), jnp.float32),
            "wf1": wf1, "bf1": bf1, "wf2": wf2, "bf2": bf2,
            "gamma2": jnp.ones((1, D), jnp.float32),
            "beta2": jnp.zeros((1, D), jnp.float32)}


def init_params(key, vocab_size, num_hiddens, ffn_num_hiddens, num_layers,
                max_len):
    D, F = num_hiddens, ffn_num_hiddens
    keys = jax.random.split(key, 3 + num_layers)
    return {
        "token_embedding": jax.random.normal(keys[0], (vocab_size, D), jnp.float32),
        "segment_embedding": jax.random.normal(keys[1], (2, D), jnp.float32),
        "pos_embedding": jax.random.normal(keys[2], (1, max_len, D), jnp.float32),
        "blocks": [_init_block(keys[3 + i], D, F) for i in range(num_layers)],
    }


def _layer_norm_ref(x, g, b, eps=1e-5):
    mean = jnp.mean(x, axis=-1, keepdims=True)
    var = jnp.mean((x - mean) ** 2, axis=-1, keepdims=True)
    return (x - mean) / jnp.sqrt(var + eps) * g + b


def bert_encoder_reference(tokens, segments, valid_lens, params, num_heads):
    X = (jnp.take(params["token_embedding"], tokens, axis=0)
         + jnp.take(params["segment_embedding"], segments, axis=0)
         + params["pos_embedding"][:, :tokens.shape[1], :])
    B, S, D = X.shape
    dh = D // num_heads
    for p in params["blocks"]:
        q = X @ p["wq"] + p["bq"]
        k = X @ p["wk"] + p["bk"]
        v = X @ p["wv"] + p["bv"]
        qh = q.reshape(B, S, num_heads, dh).transpose(0, 2, 1, 3)
        kh = k.reshape(B, S, num_heads, dh).transpose(0, 2, 1, 3)
        vh = v.reshape(B, S, num_heads, dh).transpose(0, 2, 1, 3)
        s = jnp.einsum("bhqd,bhkd->bhqk", qh, kh) / (dh ** 0.5)
        mask = jnp.arange(S)[None, None, None, :] < valid_lens[:, None, None, None]
        s = jnp.where(mask, s, -1e6)
        attn_w = jax.nn.softmax(s, axis=-1)
        o = jnp.einsum("bhqk,bhkd->bhqd", attn_w, vh)
        o = o.transpose(0, 2, 1, 3).reshape(B, S, D)
        attn = o @ p["wo"] + p["bo"]
        Y = _layer_norm_ref(X + attn, p["gamma1"], p["beta1"])
        h = jnp.maximum(Y @ p["wf1"] + p["bf1"], 0.0)
        f = h @ p["wf2"] + p["bf2"]
        X = _layer_norm_ref(Y + f, p["gamma2"], p["beta2"])
    return X


if __name__ == "__main__":
    # Small shapes consistent with the module; head_dim = 128 keeps every
    # in-kernel head slice lane-aligned.
    vocab_size = 1000
    num_hiddens = 256
    ffn_num_hiddens = 512
    num_heads = 2
    num_layers = 2
    max_len = 64
    batch, seq = 2, 8

    key = jax.random.PRNGKey(0)
    kp, kt = jax.random.split(key)

    params = init_params(kp, vocab_size, num_hiddens, ffn_num_hiddens,
                         num_layers, max_len)
    tokens = jax.random.randint(kt, (batch, seq), 0, vocab_size, dtype=jnp.int32)
    segments = jnp.array([[0, 0, 0, 0, 1, 1, 1, 1],
                          [0, 0, 0, 1, 1, 1, 1, 1]], dtype=jnp.int32)
    valid_lens = jnp.array([8, 6], dtype=jnp.int32)

    out = bert_encoder_forward(tokens, segments, valid_lens, params, num_heads)
    jax.block_until_ready(out)

    ref = bert_encoder_reference(tokens, segments, valid_lens, params, num_heads)
    assert out.shape == (batch, seq, num_hiddens), out.shape
    # Tolerance loosened slightly vs the pure-f32 version because MXU operands
    # are bf16 (f32 accumulation); reference stays full f32.
    max_err = float(jnp.max(jnp.abs(out - ref)))
    assert jnp.allclose(out, ref, atol=2e-2, rtol=2e-2), f"mismatch {max_err}"

    print("KERNEL_OK")
</pallas_src>

<mosaic_0001>
module attributes {stable_mosaic.version = 11 : i64} {
  func.func @_fused_bert_encoder_kernel(%arg0: i32, %arg1: memref<2xi32, #tpu.memory_space<smem>>, %arg2: memref<16x256xf32, #tpu.memory_space<vmem>>, %arg3: memref<2x256x256xbf16, #tpu.memory_space<vmem>>, %arg4: memref<2x1x256xf32, #tpu.memory_space<vmem>>, %arg5: memref<2x256x256xbf16, #tpu.memory_space<vmem>>, %arg6: memref<2x1x256xf32, #tpu.memory_space<vmem>>, %arg7: memref<2x256x256xbf16, #tpu.memory_space<vmem>>, %arg8: memref<2x1x256xf32, #tpu.memory_space<vmem>>, %arg9: memref<2x256x256xbf16, #tpu.memory_space<vmem>>, %arg10: memref<2x1x256xf32, #tpu.memory_space<vmem>>, %arg11: memref<2x1x256xf32, #tpu.memory_space<vmem>>, %arg12: memref<2x1x256xf32, #tpu.memory_space<vmem>>, %arg13: memref<2x256x512xbf16, #tpu.memory_space<vmem>>, %arg14: memref<2x1x512xf32, #tpu.memory_space<vmem>>, %arg15: memref<2x512x256xbf16, #tpu.memory_space<vmem>>, %arg16: memref<2x1x256xf32, #tpu.memory_space<vmem>>, %arg17: memref<2x1x256xf32, #tpu.memory_space<vmem>>, %arg18: memref<2x1x256xf32, #tpu.memory_space<vmem>>, %arg19: memref<16x256xf32, #tpu.memory_space<vmem>>, %arg20: memref<16x256xf32, #tpu.memory_space<vmem>>) attributes {dimension_semantics = [#tpu.dimension_semantics<parallel>], iteration_bounds = array<i64: 1>, scalar_prefetch = 1 : i64, scratch_operands = 1 : i64, tpu.core_type = #tpu.core_type<tc>, window_params = [{transform_indices = @transform_0, window_bounds = array<i64: 16, 256>}, {pipeline_mode = #tpu.pipeline_mode<synchronous>, transform_indices = @transform_1, window_bounds = array<i64: 2, 256, 256>}, {pipeline_mode = #tpu.pipeline_mode<synchronous>, transform_indices = @transform_2, window_bounds = array<i64: 2, 1, 256>}, {pipeline_mode = #tpu.pipeline_mode<synchronous>, transform_indices = @transform_3, window_bounds = array<i64: 2, 256, 256>}, {pipeline_mode = #tpu.pipeline_mode<synchronous>, transform_indices = @transform_4, window_bounds = array<i64: 2, 1, 256>}, {pipeline_mode = #tpu.pipeline_mode<synchronous>, transform_indices = @transform_5, window_bounds = array<i64: 2, 256, 256>}, {pipeline_mode = #tpu.pipeline_mode<synchronous>, transform_indices = @transform_6, window_bounds = array<i64: 2, 1, 256>}, {pipeline_mode = #tpu.pipeline_mode<synchronous>, transform_indices = @transform_7, window_bounds = array<i64: 2, 256, 256>}, {pipeline_mode = #tpu.pipeline_mode<synchronous>, transform_indices = @transform_8, window_bounds = array<i64: 2, 1, 256>}, {pipeline_mode = #tpu.pipeline_mode<synchronous>, transform_indices = @transform_9, window_bounds = array<i64: 2, 1, 256>}, {pipeline_mode = #tpu.pipeline_mode<synchronous>, transform_indices = @transform_10, window_bounds = array<i64: 2, 1, 256>}, {pipeline_mode = #tpu.pipeline_mode<synchronous>, transform_indices = @transform_11, window_bounds = array<i64: 2, 256, 512>}, {pipeline_mode = #tpu.pipeline_mode<synchronous>, transform_indices = @transform_12, window_bounds = array<i64: 2, 1, 512>}, {pipeline_mode = #tpu.pipeline_mode<synchronous>, transform_indices = @transform_13, window_bounds = array<i64: 2, 512, 256>}, {pipeline_mode = #tpu.pipeline_mode<synchronous>, transform_indices = @transform_14, window_bounds = array<i64: 2, 1, 256>}, {pipeline_mode = #tpu.pipeline_mode<synchronous>, transform_indices = @transform_15, window_bounds = array<i64: 2, 1, 256>}, {pipeline_mode = #tpu.pipeline_mode<synchronous>, transform_indices = @transform_16, window_bounds = array<i64: 2, 1, 256>}, {transform_indices = @transform_17, window_bounds = array<i64: 16, 256>}]} {
    %c0 = arith.constant 0 : index
    %c0_0 = arith.constant 0 : index
    %0 = vector.load %arg2[%c0, %c0_0] : memref<16x256xf32, #tpu.memory_space<vmem>>, vector<16x256xf32>
    %1 = tpu.iota {dimensions = array<i32: 1>} : vector<8x8xi32>
    %2 = arith.truncf %0 : vector<16x256xf32> to vector<16x256xbf16>
    %c0_1 = arith.constant 0 : index
    %c0_2 = arith.constant 0 : index
    %c0_3 = arith.constant 0 : index
    %3 = vector.load %arg3[%c0_1, %c0_2, %c0_3] : memref<2x256x256xbf16, #tpu.memory_space<vmem>>, vector<1x256x256xbf16>
    %4 = vector.shape_cast %3 : vector<1x256x256xbf16> to vector<256x256xbf16>
    %cst = arith.constant dense<0.000000e+00> : vector<16x256xf32>
    %5 = tpu.matmul %2, %4, %cst {dimension_numbers = #tpu.dot_dimension_numbers<[1], [0], [0], [1], [0, 0, 1, 1], [], []>} : vector<16x256xbf16>, vector<256x256xbf16>, vector<16x256xf32> -> vector<16x256xf32>
    %c0_4 = arith.constant 0 : index
    %c0_5 = arith.constant 0 : index
    %c0_6 = arith.constant 0 : index
    %6 = vector.load %arg4[%c0_4, %c0_5, %c0_6] : memref<2x1x256xf32, #tpu.memory_space<vmem>>, vector<1x1x256xf32>
    %7 = vector.shape_cast %6 : vector<1x1x256xf32> to vector<1x256xf32>
    %8 = vector.broadcast %7 : vector<1x256xf32> to vector<16x256xf32>
    %9 = arith.addf %5, %8 : vector<16x256xf32>
    %c0_7 = arith.constant 0 : index
    %c0_8 = arith.constant 0 : index
    %c0_9 = arith.constant 0 : index
    %10 = vector.load %arg5[%c0_7, %c0_8, %c0_9] : memref<2x256x256xbf16, #tpu.memory_space<vmem>>, vector<1x256x256xbf16>
    %11 = vector.shape_cast %10 : vector<1x256x256xbf16> to vector<256x256xbf16>
    %cst_10 = arith.constant dense<0.000000e+00> : vector<16x256xf32>
    %12 = tpu.matmul %2, %11, %cst_10 {dimension_numbers = #tpu.dot_dimension_numbers<[1], [0], [0], [1], [0, 0, 1, 1], [], []>} : vector<16x256xbf16>, vector<256x256xbf16>, vector<16x256xf32> -> vector<16x256xf32>
    %c0_11 = arith.constant 0 : index
    %c0_12 = arith.constant 0 : index
    %c0_13 = arith.constant 0 : index
    %13 = vector.load %arg6[%c0_11, %c0_12, %c0_13] : memref<2x1x256xf32, #tpu.memory_space<vmem>>, vector<1x1x256xf32>
    %14 = vector.shape_cast %13 : vector<1x1x256xf32> to vector<1x256xf32>
    %15 = vector.broadcast %14 : vector<1x256xf32> to vector<16x256xf32>
    %16 = arith.addf %12, %15 : vector<16x256xf32>
    %c0_14 = arith.constant 0 : index
    %c0_15 = arith.constant 0 : index
    %c0_16 = arith.constant 0 : index
    %17 = vector.load %arg7[%c0_14, %c0_15, %c0_16] : memref<2x256x256xbf16, #tpu.memory_space<vmem>>, vector<1x256x256xbf16>
    %18 = vector.shape_cast %17 : vector<1x256x256xbf16> to vector<256x256xbf16>
    %cst_17 = arith.constant dense<0.000000e+00> : vector<16x256xf32>
    %19 = tpu.matmul %2, %18, %cst_17 {dimension_numbers = #tpu.dot_dimension_numbers<[1], [0], [0], [1], [0, 0, 1, 1], [], []>} : vector<16x256xbf16>, vector<256x256xbf16>, vector<16x256xf32> -> vector<16x256xf32>
    %c0_18 = arith.constant 0 : index
    %c0_19 = arith.constant 0 : index
    %c0_20 = arith.constant 0 : index
    %20 = vector.load %arg8[%c0_18, %c0_19, %c0_20] : memref<2x1x256xf32, #tpu.memory_space<vmem>>, vector<1x1x256xf32>
    %21 = vector.shape_cast %20 : vector<1x1x256xf32> to vector<1x256xf32>
    %22 = vector.broadcast %21 : vector<1x256xf32> to vector<16x256xf32>
    %23 = arith.addf %19, %22 : vector<16x256xf32>
    %cst_21 = arith.constant 0.0883883461 : f32
    %24 = vector.broadcast %cst_21 : f32 to vector<16x256xf32>
    %25 = arith.mulf %9, %24 : vector<16x256xf32>
    %26 = arith.truncf %25 : vector<16x256xf32> to vector<16x256xbf16>
    %27 = arith.truncf %16 : vector<16x256xf32> to vector<16x256xbf16>
    %28 = arith.truncf %23 : vector<16x256xf32> to vector<16x256xbf16>
    %c2_i32 = arith.constant 2 : i32
    %29 = arith.muli %arg0, %c2_i32 : i32
    %c0_i32 = arith.constant 0 : i32
    %30 = arith.addi %29, %c0_i32 : i32
    %31 = arith.index_cast %30 : i32 to index
    %32 = memref.load %arg1[%31] : memref<2xi32, #tpu.memory_space<smem>>
    %33 = vector.broadcast %32 : i32 to vector<8x8xi32>
    %34 = arith.cmpi slt, %1, %33 : vector<8x8xi32>
    %35 = vector.extract_strided_slice %26 {offsets = [0, 0], sizes = [8, 128], strides = [1, 1]} : vector<16x256xbf16> to vector<8x128xbf16>
    %36 = vector.extract_strided_slice %27 {offsets = [0, 0], sizes = [8, 128], strides = [1, 1]} : vector<16x256xbf16> to vector<8x128xbf16>
    %cst_22 = arith.constant dense<0.000000e+00> : vector<8x8xf32>
    %37 = tpu.matmul %35, %36, %cst_22 {dimension_numbers = #tpu.dot_dimension_numbers<[1], [1], [0], [0], [0, 0, 1, 0], [], []>} : vector<8x128xbf16>, vector<8x128xbf16>, vector<8x8xf32> -> vector<8x8xf32>
    %cst_23 = arith.constant -1.000000e+06 : f32
    %38 = vector.broadcast %cst_23 : f32 to vector<8x8xf32>
    %39 = arith.select %34, %37, %38 : vector<8x8xi1>, vector<8x8xf32>
    %cst_24 = arith.constant dense<0xFF800000> : vector<8xf32>
    %40 = vector.multi_reduction <maximumf>, %39, %cst_24 [1] : vector<8x8xf32> to vector<8xf32>
    %41 = vector.shape_cast %40 : vector<8xf32> to vector<8x1xf32>
    %42 = vector.broadcast %41 : vector<8x1xf32> to vector<8x8xf32>
    %43 = arith.subf %39, %42 : vector<8x8xf32>
    %44 = math.exp %43 : vector<8x8xf32>
    %cst_25 = arith.constant dense<0.000000e+00> : vector<8xf32>
    %45 = vector.multi_reduction <add>, %44, %cst_25 [1] : vector<8x8xf32> to vector<8xf32>
    %46 = vector.shape_cast %45 : vector<8xf32> to vector<8x1xf32>
    %47 = tpu.reciprocal %46 {approx = true} : vector<8x1xf32> -> vector<8x1xf32>
    %48 = vector.broadcast %47 : vector<8x1xf32> to vector<8x8xf32>
    %49 = arith.mulf %44, %48 : vector<8x8xf32>
    %50 = arith.truncf %49 : vector<8x8xf32> to vector<8x8xbf16>
    %51 = vector.extract_strided_slice %28 {offsets = [0, 0], sizes = [8, 128], strides = [1, 1]} : vector<16x256xbf16> to vector<8x128xbf16>
    %cst_26 = arith.constant dense<0.000000e+00> : vector<8x128xf32>
    %52 = tpu.matmul %50, %51, %cst_26 {dimension_numbers = #tpu.dot_dimension_numbers<[1], [0], [0], [1], [0, 0, 1, 1], [], []>} : vector<8x8xbf16>, vector<8x128xbf16>, vector<8x128xf32> -> vector<8x128xf32>
    %c0_27 = arith.constant 0 : index
    %c0_28 = arith.constant 0 : index
    %53 = vector.load %arg20[%c0_27, %c0_28] : memref<16x256xf32, #tpu.memory_space<vmem>>, vector<8x128xf32>
    tpu.vector_store %arg20[%c0_27, %c0_28], %52 {strides = array<i32>} : memref<16x256xf32, #tpu.memory_space<vmem>>, vector<8x128xf32>,
    %54 = vector.extract_strided_slice %26 {offsets = [0, 128], sizes = [8, 128], strides = [1, 1]} : vector<16x256xbf16> to vector<8x128xbf16>
    %55 = vector.extract_strided_slice %27 {offsets = [0, 128], sizes = [8, 128], strides = [1, 1]} : vector<16x256xbf16> to vector<8x128xbf16>
    %cst_29 = arith.constant dense<0.000000e+00> : vector<8x8xf32>
    %56 = tpu.matmul %54, %55, %cst_29 {dimension_numbers = #tpu.dot_dimension_numbers<[1], [1], [0], [0], [0, 0, 1, 0], [], []>} : vector<8x128xbf16>, vector<8x128xbf16>, vector<8x8xf32> -> vector<8x8xf32>
    %cst_30 = arith.constant -1.000000e+06 : f32
    %57 = vector.broadcast %cst_30 : f32 to vector<8x8xf32>
    %58 = arith.select %34, %56, %57 : vector<8x8xi1>, vector<8x8xf32>
    %cst_31 = arith.constant dense<0xFF800000> : vector<8xf32>
    %59 = vector.multi_reduction <maximumf>, %58, %cst_31 [1] : vector<8x8xf32> to vector<8xf32>
    %60 = vector.shape_cast %59 : vector<8xf32> to vector<8x1xf32>
    %61 = vector.broadcast %60 : vector<8x1xf32> to vector<8x8xf32>
    %62 = arith.subf %58, %61 : vector<8x8xf32>
    %63 = math.exp %62 : vector<8x8xf32>
    %cst_32 = arith.constant dense<0.000000e+00> : vector<8xf32>
    %64 = vector.multi_reduction <add>, %63, %cst_32 [1] : vector<8x8xf32> to vector<8xf32>
    %65 = vector.shape_cast %64 : vector<8xf32> to vector<8x1xf32>
    %66 = tpu.reciprocal %65 {approx = true} : vector<8x1xf32> -> vector<8x1xf32>
    %67 = vector.broadcast %66 : vector<8x1xf32> to vector<8x8xf32>
    %68 = arith.mulf %63, %67 : vector<8x8xf32>
    %69 = arith.truncf %68 : vector<8x8xf32> to vector<8x8xbf16>
    %70 = vector.extract_strided_slice %28 {offsets = [0, 128], sizes = [8, 128], strides = [1, 1]} : vector<16x256xbf16> to vector<8x128xbf16>
    %cst_33 = arith.constant dense<0.000000e+00> : vector<8x128xf32>
    %71 = tpu.matmul %69, %70, %cst_33 {dimension_numbers = #tpu.dot_dimension_numbers<[1], [0], [0], [1], [0, 0, 1, 1], [], []>} : vector<8x8xbf16>, vector<8x128xbf16>, vector<8x128xf32> -> vector<8x128xf32>
    %c0_34 = arith.constant 0 : index
    %c128 = arith.constant 128 : index
    %72 = vector.load %arg20[%c0_34, %c128] : memref<16x256xf32, #tpu.memory_space<vmem>>, vector<8x128xf32>
    tpu.vector_store %arg20[%c0_34, %c128], %71 {strides = array<i32>} : memref<16x256xf32, #tpu.memory_space<vmem>>, vector<8x128xf32>,
    %c2_i32_35 = arith.constant 2 : i32
    %73 = arith.muli %arg0, %c2_i32_35 : i32
    %c1_i32 = arith.constant 1 : i32
    %74 = arith.addi %73, %c1_i32 : i32
    %75 = arith.index_cast %74 : i32 to index
    %76 = memref.load %arg1[%75] : memref<2xi32, #tpu.memory_space<smem>>
    %77 = vector.broadcast %76 : i32 to vector<8x8xi32>
    %78 = arith.cmpi slt, %1, %77 : vector<8x8xi32>
    %79 = vector.extract_strided_slice %26 {offsets = [8, 0], sizes = [8, 128], strides = [1, 1]} : vector<16x256xbf16> to vector<8x128xbf16>
    %80 = vector.extract_strided_slice %27 {offsets = [8, 0], sizes = [8, 128], strides = [1, 1]} : vector<16x256xbf16> to vector<8x128xbf16>
    %cst_36 = arith.constant dense<0.000000e+00> : vector<8x8xf32>
    %81 = tpu.matmul %79, %80, %cst_36 {dimension_numbers = #tpu.dot_dimension_numbers<[1], [1], [0], [0], [0, 0, 1, 0], [], []>} : vector<8x128xbf16>, vector<8x128xbf16>, vector<8x8xf32> -> vector<8x8xf32>
    %cst_37 = arith.constant -1.000000e+06 : f32
    %82 = vector.broadcast %cst_37 : f32 to vector<8x8xf32>
    %83 = arith.select %78, %81, %82 : vector<8x8xi1>, vector<8x8xf32>
    %cst_38 = arith.constant dense<0xFF800000> : vector<8xf32>
    %84 = vector.multi_reduction <maximumf>, %83, %cst_38 [1] : vector<8x8xf32> to vector<8xf32>
    %85 = vector.shape_cast %84 : vector<8xf32> to vector<8x1xf32>
    %86 = vector.broadcast %85 : vector<8x1xf32> to vector<8x8xf32>
    %87 = arith.subf %83, %86 : vector<8x8xf32>
    %88 = math.exp %87 : vector<8x8xf32>
    %cst_39 = arith.constant dense<0.000000e+00> : vector<8xf32>
    %89 = vector.multi_reduction <add>, %88, %cst_39 [1] : vector<8x8xf32> to vector<8xf32>
    %90 = vector.shape_cast %89 : vector<8xf32> to vector<8x1xf32>
    %91 = tpu.reciprocal %90 {approx = true} : vector<8x1xf32> -> vector<8x1xf32>
    %92 = vector.broadcast %91 : vector<8x1xf32> to vector<8x8xf32>
    %93 = arith.mulf %88, %92 : vector<8x8xf32>
    %94 = arith.truncf %93 : vector<8x8xf32> to vector<8x8xbf16>
    %95 = vector.extract_strided_slice %28 {offsets = [8, 0], sizes = [8, 128], strides = [1, 1]} : vector<16x256xbf16> to vector<8x128xbf16>
    %cst_40 = arith.constant dense<0.000000e+00> : vector<8x128xf32>
    %96 = tpu.matmul %94, %95, %cst_40 {dimension_numbers = #tpu.dot_dimension_numbers<[1], [0], [0], [1], [0, 0, 1, 1], [], []>} : vector<8x8xbf16>, vector<8x128xbf16>, vector<8x128xf32> -> vector<8x128xf32>
    %c8 = arith.constant 8 : index
    %c0_41 = arith.constant 0 : index
    %97 = vector.load %arg20[%c8, %c0_41] : memref<16x256xf32, #tpu.memory_space<vmem>>, vector<8x128xf32>
    tpu.vector_store %arg20[%c8, %c0_41], %96 {strides = array<i32>} : memref<16x256xf32, #tpu.memory_space<vmem>>, vector<8x128xf32>,
    %98 = vector.extract_strided_slice %26 {offsets = [8, 128], sizes = [8, 128], strides = [1, 1]} : vector<16x256xbf16> to vector<8x128xbf16>
    %99 = vector.extract_strided_slice %27 {offsets = [8, 128], sizes = [8, 128], strides = [1, 1]} : vector<16x256xbf16> to vector<8x128xbf16>
    %cst_42 = arith.constant dense<0.000000e+00> : vector<8x8xf32>
    %100 = tpu.matmul %98, %99, %cst_42 {dimension_numbers = #tpu.dot_dimension_numbers<[1], [1], [0], [0], [0, 0, 1, 0], [], []>} : vector<8x128xbf16>, vector<8x128xbf16>, vector<8x8xf32> -> vector<8x8xf32>
    %cst_43 = arith.constant -1.000000e+06 : f32
    %101 = vector.broadcast %cst_43 : f32 to vector<8x8xf32>
    %102 = arith.select %78, %100, %101 : vector<8x8xi1>, vector<8x8xf32>
    %cst_44 = arith.constant dense<0xFF800000> : vector<8xf32>
    %103 = vector.multi_reduction <maximumf>, %102, %cst_44 [1] : vector<8x8xf32> to vector<8xf32>
    %104 = vector.shape_cast %103 : vector<8xf32> to vector<8x1xf32>
    %105 = vector.broadcast %104 : vector<8x1xf32> to vector<8x8xf32>
    %106 = arith.subf %102, %105 : vector<8x8xf32>
    %107 = math.exp %106 : vector<8x8xf32>
    %cst_45 = arith.constant dense<0.000000e+00> : vector<8xf32>
    %108 = vector.multi_reduction <add>, %107, %cst_45 [1] : vector<8x8xf32> to vector<8xf32>
    %109 = vector.shape_cast %108 : vector<8xf32> to vector<8x1xf32>
    %110 = tpu.reciprocal %109 {approx = true} : vector<8x1xf32> -> vector<8x1xf32>
    %111 = vector.broadcast %110 : vector<8x1xf32> to vector<8x8xf32>
    %112 = arith.mulf %107, %111 : vector<8x8xf32>
    %113 = arith.truncf %112 : vector<8x8xf32> to vector<8x8xbf16>
    %114 = vector.extract_strided_slice %28 {offsets = [8, 128], sizes = [8, 128], strides = [1, 1]} : vector<16x256xbf16> to vector<8x128xbf16>
    %cst_46 = arith.constant dense<0.000000e+00> : vector<8x128xf32>
    %115 = tpu.matmul %113, %114, %cst_46 {dimension_numbers = #tpu.dot_dimension_numbers<[1], [0], [0], [1], [0, 0, 1, 1], [], []>} : vector<8x8xbf16>, vector<8x128xbf16>, vector<8x128xf32> -> vector<8x128xf32>
    %c8_47 = arith.constant 8 : index
    %c128_48 = arith.constant 128 : index
    %116 = vector.load %arg20[%c8_47, %c128_48] : memref<16x256xf32, #tpu.memory_space<vmem>>, vector<8x128xf32>
    tpu.vector_store %arg20[%c8_47, %c128_48], %115 {strides = array<i32>} : memref<16x256xf32, #tpu.memory_space<vmem>>, vector<8x128xf32>,
    %c0_49 = arith.constant 0 : index
    %c0_50 = arith.constant 0 : index
    %117 = vector.load %arg20[%c0_49, %c0_50] : memref<16x256xf32, #tpu.memory_space<vmem>>, vector<16x256xf32>
    %118 = arith.truncf %117 : vector<16x256xf32> to vector<16x256xbf16>
    %c0_51 = arith.constant 0 : index
    %c0_52 = arith.constant 0 : index
    %c0_53 = arith.constant 0 : index
    %119 = vector.load %arg9[%c0_51, %c0_52, %c0_53] : memref<2x256x256xbf16, #tpu.memory_space<vmem>>, vector<1x256x256xbf16>
    %120 = vector.shape_cast %119 : vector<1x256x256xbf16> to vector<256x256xbf16>
    %cst_54 = arith.constant dense<0.000000e+00> : vector<16x256xf32>
    %121 = tpu.matmul %118, %120, %cst_54 {dimension_numbers = #tpu.dot_dimension_numbers<[1], [0], [0], [1], [0, 0, 1, 1], [], []>} : vector<16x256xbf16>, vector<256x256xbf16>, vector<16x256xf32> -> vector<16x256xf32>
    %c0_55 = arith.constant 0 : index
    %c0_56 = arith.constant 0 : index
    %c0_57 = arith.constant 0 : index
    %122 = vector.load %arg10[%c0_55, %c0_56, %c0_57] : memref<2x1x256xf32, #tpu.memory_space<vmem>>, vector<1x1x256xf32>
    %123 = vector.shape_cast %122 : vector<1x1x256xf32> to vector<1x256xf32>
    %124 = vector.broadcast %123 : vector<1x256xf32> to vector<16x256xf32>
    %125 = arith.addf %121, %124 : vector<16x256xf32>
    %126 = arith.addf %0, %125 : vector<16x256xf32>
    %c0_58 = arith.constant 0 : index
    %c0_59 = arith.constant 0 : index
    %c0_60 = arith.constant 0 : index
    %127 = vector.load %arg11[%c0_58, %c0_59, %c0_60] : memref<2x1x256xf32, #tpu.memory_space<vmem>>, vector<1x1x256xf32>
    %128 = vector.shape_cast %127 : vector<1x1x256xf32> to vector<1x256xf32>
    %c0_61 = arith.constant 0 : index
    %c0_62 = arith.constant 0 : index
    %c0_63 = arith.constant 0 : index
    %129 = vector.load %arg12[%c0_61, %c0_62, %c0_63] : memref<2x1x256xf32, #tpu.memory_space<vmem>>, vector<1x1x256xf32>
    %130 = vector.shape_cast %129 : vector<1x1x256xf32> to vector<1x256xf32>
    %cst_64 = arith.constant dense<0.000000e+00> : vector<16xf32>
    %131 = vector.multi_reduction <add>, %126, %cst_64 [1] : vector<16x256xf32> to vector<16xf32>
    %132 = vector.shape_cast %131 : vector<16xf32> to vector<16x1xf32>
    %cst_65 = arith.constant 2.560000e+02 : f32
    %133 = vector.broadcast %cst_65 : f32 to vector<16x1xf32>
    %134 = arith.divf %132, %133 : vector<16x1xf32>
    %135 = vector.broadcast %134 : vector<16x1xf32> to vector<16x256xf32>
    %136 = arith.subf %126, %135 : vector<16x256xf32>
    %137 = arith.mulf %136, %136 : vector<16x256xf32>
    %cst_66 = arith.constant dense<0.000000e+00> : vector<16xf32>
    %138 = vector.multi_reduction <add>, %137, %cst_66 [1] : vector<16x256xf32> to vector<16xf32>
    %139 = vector.shape_cast %138 : vector<16xf32> to vector<16x1xf32>
    %cst_67 = arith.constant 2.560000e+02 : f32
    %140 = vector.broadcast %cst_67 : f32 to vector<16x1xf32>
    %141 = arith.divf %139, %140 : vector<16x1xf32>
    %cst_68 = arith.constant 9.99999974E-6 : f32
    %142 = vector.broadcast %cst_68 : f32 to vector<16x1xf32>
    %143 = arith.addf %141, %142 : vector<16x1xf32>
    %144 = math.rsqrt %143 : vector<16x1xf32>
    %145 = vector.broadcast %144 : vector<16x1xf32> to vector<16x256xf32>
    %146 = arith.mulf %136, %145 : vector<16x256xf32>
    %147 = vector.broadcast %128 : vector<1x256xf32> to vector<16x256xf32>
    %148 = arith.mulf %146, %147 : vector<16x256xf32>
    %149 = vector.broadcast %130 : vector<1x256xf32> to vector<16x256xf32>
    %150 = arith.addf %148, %149 : vector<16x256xf32>
    %151 = arith.truncf %150 : vector<16x256xf32> to vector<16x256xbf16>
    %c0_69 = arith.constant 0 : index
    %c0_70 = arith.constant 0 : index
    %c0_71 = arith.constant 0 : index
    %152 = vector.load %arg13[%c0_69, %c0_70, %c0_71] : memref<2x256x512xbf16, #tpu.memory_space<vmem>>, vector<1x256x512xbf16>
    %153 = vector.shape_cast %152 : vector<1x256x512xbf16> to vector<256x512xbf16>
    %cst_72 = arith.constant dense<0.000000e+00> : vector<16x512xf32>
    %154 = tpu.matmul %151, %153, %cst_72 {dimension_numbers = #tpu.dot_dimension_numbers<[1], [0], [0], [1], [0, 0, 1, 1], [], []>} : vector<16x256xbf16>, vector<256x512xbf16>, vector<16x512xf32> -> vector<16x512xf32>
    %c0_73 = arith.constant 0 : index
    %c0_74 = arith.constant 0 : index
    %c0_75 = arith.constant 0 : index
    %155 = vector.load %arg14[%c0_73, %c0_74, %c0_75] : memref<2x1x512xf32, #tpu.memory_space<vmem>>, vector<1x1x512xf32>
    %156 = vector.shape_cast %155 : vector<1x1x512xf32> to vector<1x512xf32>
    %157 = vector.broadcast %156 : vector<1x512xf32> to vector<16x512xf32>
    %158 = arith.addf %154, %157 : vector<16x512xf32>
    %cst_76 = arith.constant 0.000000e+00 : f32
    %159 = vector.broadcast %cst_76 : f32 to vector<16x512xf32>
    %160 = arith.maximumf %158, %159 : vector<16x512xf32>
    %161 = arith.truncf %160 : vector<16x512xf32> to vector<16x512xbf16>
    %c0_77 = arith.constant 0 : index
    %c0_78 = arith.constant 0 : index
    %c0_79 = arith.constant 0 : index
    %162 = vector.load %arg15[%c0_77, %c0_78, %c0_79] : memref<2x512x256xbf16, #tpu.memory_space<vmem>>, vector<1x512x256xbf16>
    %163 = vector.shape_cast %162 : vector<1x512x256xbf16> to vector<512x256xbf16>
    %cst_80 = arith.constant dense<0.000000e+00> : vector<16x256xf32>
    %164 = tpu.matmul %161, %163, %cst_80 {dimension_numbers = #tpu.dot_dimension_numbers<[1], [0], [0], [1], [0, 0, 1, 1], [], []>} : vector<16x512xbf16>, vector<512x256xbf16>, vector<16x256xf32> -> vector<16x256xf32>
    %c0_81 = arith.constant 0 : index
    %c0_82 = arith.constant 0 : index
    %c0_83 = arith.constant 0 : index
    %165 = vector.load %arg16[%c0_81, %c0_82, %c0_83] : memref<2x1x256xf32, #tpu.memory_space<vmem>>, vector<1x1x256xf32>
    %166 = vector.shape_cast %165 : vector<1x1x256xf32> to vector<1x256xf32>
    %167 = vector.broadcast %166 : vector<1x256xf32> to vector<16x256xf32>
    %168 = arith.addf %164, %167 : vector<16x256xf32>
    %169 = arith.addf %150, %168 : vector<16x256xf32>
    %c0_84 = arith.constant 0 : index
    %c0_85 = arith.constant 0 : index
    %c0_86 = arith.constant 0 : index
    %170 = vector.load %arg17[%c0_84, %c0_85, %c0_86] : memref<2x1x256xf32, #tpu.memory_space<vmem>>, vector<1x1x256xf32>
    %171 = vector.shape_cast %170 : vector<1x1x256xf32> to vector<1x256xf32>
    %c0_87 = arith.constant 0 : index
    %c0_88 = arith.constant 0 : index
    %c0_89 = arith.constant 0 : index
    %172 = vector.load %arg18[%c0_87, %c0_88, %c0_89] : memref<2x1x256xf32, #tpu.memory_space<vmem>>, vector<1x1x256xf32>
    %173 = vector.shape_cast %172 : vector<1x1x256xf32> to vector<1x256xf32>
    %cst_90 = arith.constant dense<0.000000e+00> : vector<16xf32>
    %174 = vector.multi_reduction <add>, %169, %cst_90 [1] : vector<16x256xf32> to vector<16xf32>
    %175 = vector.shape_cast %174 : vector<16xf32> to vector<16x1xf32>
    %cst_91 = arith.constant 2.560000e+02 : f32
    %176 = vector.broadcast %cst_91 : f32 to vector<16x1xf32>
    %177 = arith.divf %175, %176 : vector<16x1xf32>
    %178 = vector.broadcast %177 : vector<16x1xf32> to vector<16x256xf32>
    %179 = arith.subf %169, %178 : vector<16x256xf32>
    %180 = arith.mulf %179, %179 : vector<16x256xf32>
    %cst_92 = arith.constant dense<0.000000e+00> : vector<16xf32>
    %181 = vector.multi_reduction <add>, %180, %cst_92 [1] : vector<16x256xf32> to vector<16xf32>
    %182 = vector.shape_cast %181 : vector<16xf32> to vector<16x1xf32>
    %cst_93 = arith.constant 2.560000e+02 : f32
    %183 = vector.broadcast %cst_93 : f32 to vector<16x1xf32>
    %184 = arith.divf %182, %183 : vector<16x1xf32>
    %cst_94 = arith.constant 9.99999974E-6 : f32
    %185 = vector.broadcast %cst_94 : f32 to vector<16x1xf32>
    %186 = arith.addf %184, %185 : vector<16x1xf32>
    %187 = math.rsqrt %186 : vector<16x1xf32>
    %188 = vector.broadcast %187 : vector<16x1xf32> to vector<16x256xf32>
    %189 = arith.mulf %179, %188 : vector<16x256xf32>
    %190 = vector.broadcast %171 : vector<1x256xf32> to vector<16x256xf32>
    %191 = arith.mulf %189, %190 : vector<16x256xf32>
    %192 = vector.broadcast %173 : vector<1x256xf32> to vector<16x256xf32>
    %193 = arith.addf %191, %192 : vector<16x256xf32>
    %194 = arith.truncf %193 : vector<16x256xf32> to vector<16x256xbf16>
    %c1 = arith.constant 1 : index
    %c0_95 = arith.constant 0 : index
    %c0_96 = arith.constant 0 : index
    %195 = vector.load %arg3[%c1, %c0_95, %c0_96] : memref<2x256x256xbf16, #tpu.memory_space<vmem>>, vector<1x256x256xbf16>
    %196 = vector.shape_cast %195 : vector<1x256x256xbf16> to vector<256x256xbf16>
    %cst_97 = arith.constant dense<0.000000e+00> : vector<16x256xf32>
    %197 = tpu.matmul %194, %196, %cst_97 {dimension_numbers = #tpu.dot_dimension_numbers<[1], [0], [0], [1], [0, 0, 1, 1], [], []>} : vector<16x256xbf16>, vector<256x256xbf16>, vector<16x256xf32> -> vector<16x256xf32>
    %c1_98 = arith.constant 1 : index
    %c0_99 = arith.constant 0 : index
    %c0_100 = arith.constant 0 : index
    %198 = vector.load %arg4[%c1_98, %c0_99, %c0_100] : memref<2x1x256xf32, #tpu.memory_space<vmem>>, vector<1x1x256xf32>
    %199 = vector.shape_cast %198 : vector<1x1x256xf32> to vector<1x256xf32>
    %200 = vector.broadcast %199 : vector<1x256xf32> to vector<16x256xf32>
    %201 = arith.addf %197, %200 : vector<16x256xf32>
    %c1_101 = arith.constant 1 : index
    %c0_102 = arith.constant 0 : index
    %c0_103 = arith.constant 0 : index
    %202 = vector.load %arg5[%c1_101, %c0_102, %c0_103] : memref<2x256x256xbf16, #tpu.memory_space<vmem>>, vector<1x256x256xbf16>
    %203 = vector.shape_cast %202 : vector<1x256x256xbf16> to vector<256x256xbf16>
    %cst_104 = arith.constant dense<0.000000e+00> : vector<16x256xf32>
    %204 = tpu.matmul %194, %203, %cst_104 {dimension_numbers = #tpu.dot_dimension_numbers<[1], [0], [0], [1], [0, 0, 1, 1], [], []>} : vector<16x256xbf16>, vector<256x256xbf16>, vector<16x256xf32> -> vector<16x256xf32>
    %c1_105 = arith.constant 1 : index
    %c0_106 = arith.constant 0 : index
    %c0_107 = arith.constant 0 : index
    %205 = vector.load %arg6[%c1_105, %c0_106, %c0_107] : memref<2x1x256xf32, #tpu.memory_space<vmem>>, vector<1x1x256xf32>
    %206 = vector.shape_cast %205 : vector<1x1x256xf32> to vector<1x256xf32>
    %207 = vector.broadcast %206 : vector<1x256xf32> to vector<16x256xf32>
    %208 = arith.addf %204, %207 : vector<16x256xf32>
    %c1_108 = arith.constant 1 : index
    %c0_109 = arith.constant 0 : index
    %c0_110 = arith.constant 0 : index
    %209 = vector.load %arg7[%c1_108, %c0_109, %c0_110] : memref<2x256x256xbf16, #tpu.memory_space<vmem>>, vector<1x256x256xbf16>
    %210 = vector.shape_cast %209 : vector<1x256x256xbf16> to vector<256x256xbf16>
    %cst_111 = arith.constant dense<0.000000e+00> : vector<16x256xf32>
    %211 = tpu.matmul %194, %210, %cst_111 {dimension_numbers = #tpu.dot_dimension_numbers<[1], [0], [0], [1], [0, 0, 1, 1], [], []>} : vector<16x256xbf16>, vector<256x256xbf16>, vector<16x256xf32> -> vector<16x256xf32>
    %c1_112 = arith.constant 1 : index
    %c0_113 = arith.constant 0 : index
    %c0_114 = arith.constant 0 : index
    %212 = vector.load %arg8[%c1_112, %c0_113, %c0_114] : memref<2x1x256xf32, #tpu.memory_space<vmem>>, vector<1x1x256xf32>
    %213 = vector.shape_cast %212 : vector<1x1x256xf32> to vector<1x256xf32>
    %214 = vector.broadcast %213 : vector<1x256xf32> to vector<16x256xf32>
    %215 = arith.addf %211, %214 : vector<16x256xf32>
    %cst_115 = arith.constant 0.0883883461 : f32
    %216 = vector.broadcast %cst_115 : f32 to vector<16x256xf32>
    %217 = arith.mulf %201, %216 : vector<16x256xf32>
    %218 = arith.truncf %217 : vector<16x256xf32> to vector<16x256xbf16>
    %219 = arith.truncf %208 : vector<16x256xf32> to vector<16x256xbf16>
    %220 = arith.truncf %215 : vector<16x256xf32> to vector<16x256xbf16>
    %c2_i32_116 = arith.constant 2 : i32
    %221 = arith.muli %arg0, %c2_i32_116 : i32
    %c0_i32_117 = arith.constant 0 : i32
    %222 = arith.addi %221, %c0_i32_117 : i32
    %223 = arith.index_cast %222 : i32 to index
    %224 = memref.load %arg1[%223] : memref<2xi32, #tpu.memory_space<smem>>
    %225 = vector.broadcast %224 : i32 to vector<8x8xi32>
    %226 = arith.cmpi slt, %1, %225 : vector<8x8xi32>
    %227 = vector.extract_strided_slice %218 {offsets = [0, 0], sizes = [8, 128], strides = [1, 1]} : vector<16x256xbf16> to vector<8x128xbf16>
    %228 = vector.extract_strided_slice %219 {offsets = [0, 0], sizes = [8, 128], strides = [1, 1]} : vector<16x256xbf16> to vector<8x128xbf16>
    %cst_118 = arith.constant dense<0.000000e+00> : vector<8x8xf32>
    %229 = tpu.matmul %227, %228, %cst_118 {dimension_numbers = #tpu.dot_dimension_numbers<[1], [1], [0], [0], [0, 0, 1, 0], [], []>} : vector<8x128xbf16>, vector<8x128xbf16>, vector<8x8xf32> -> vector<8x8xf32>
    %cst_119 = arith.constant -1.000000e+06 : f32
    %230 = vector.broadcast %cst_119 : f32 to vector<8x8xf32>
    %231 = arith.select %226, %229, %230 : vector<8x8xi1>, vector<8x8xf32>
    %cst_120 = arith.constant dense<0xFF800000> : vector<8xf32>
    %232 = vector.multi_reduction <maximumf>, %231, %cst_120 [1] : vector<8x8xf32> to vector<8xf32>
    %233 = vector.shape_cast %232 : vector<8xf32> to vector<8x1xf32>
    %234 = vector.broadcast %233 : vector<8x1xf32> to vector<8x8xf32>
    %235 = arith.subf %231, %234 : vector<8x8xf32>
    %236 = math.exp %235 : vector<8x8xf32>
    %cst_121 = arith.constant dense<0.000000e+00> : vector<8xf32>
    %237 = vector.multi_reduction <add>, %236, %cst_121 [1] : vector<8x8xf32> to vector<8xf32>
    %238 = vector.shape_cast %237 : vector<8xf32> to vector<8x1xf32>
    %239 = tpu.reciprocal %238 {approx = true} : vector<8x1xf32> -> vector<8x1xf32>
    %240 = vector.broadcast %239 : vector<8x1xf32> to vector<8x8xf32>
    %241 = arith.mulf %236, %240 : vector<8x8xf32>
    %242 = arith.truncf %241 : vector<8x8xf32> to vector<8x8xbf16>
    %243 = vector.extract_strided_slice %220 {offsets = [0, 0], sizes = [8, 128], strides = [1, 1]} : vector<16x256xbf16> to vector<8x128xbf16>
    %cst_122 = arith.constant dense<0.000000e+00> : vector<8x128xf32>
    %244 = tpu.matmul %242, %243, %cst_122 {dimension_numbers = #tpu.dot_dimension_numbers<[1], [0], [0], [1], [0, 0, 1, 1], [], []>} : vector<8x8xbf16>, vector<8x128xbf16>, vector<8x128xf32> -> vector<8x128xf32>
    %c0_123 = arith.constant 0 : index
    %c0_124 = arith.constant 0 : index
    %245 = vector.load %arg20[%c0_123, %c0_124] : memref<16x256xf32, #tpu.memory_space<vmem>>, vector<8x128xf32>
    tpu.vector_store %arg20[%c0_123, %c0_124], %244 {strides = array<i32>} : memref<16x256xf32, #tpu.memory_space<vmem>>, vector<8x128xf32>,
    %246 = vector.extract_strided_slice %218 {offsets = [0, 128], sizes = [8, 128], strides = [1, 1]} : vector<16x256xbf16> to vector<8x128xbf16>
    %247 = vector.extract_strided_slice %219 {offsets = [0, 128], sizes = [8, 128], strides = [1, 1]} : vector<16x256xbf16> to vector<8x128xbf16>
    %cst_125 = arith.constant dense<0.000000e+00> : vector<8x8xf32>
    %248 = tpu.matmul %246, %247, %cst_125 {dimension_numbers = #tpu.dot_dimension_numbers<[1], [1], [0], [0], [0, 0, 1, 0], [], []>} : vector<8x128xbf16>, vector<8x128xbf16>, vector<8x8xf32> -> vector<8x8xf32>
    %cst_126 = arith.constant -1.000000e+06 : f32
    %249 = vector.broadcast %cst_126 : f32 to vector<8x8xf32>
    %250 = arith.select %226, %248, %249 : vector<8x8xi1>, vector<8x8xf32>
    %cst_127 = arith.constant dense<0xFF800000> : vector<8xf32>
    %251 = vector.multi_reduction <maximumf>, %250, %cst_127 [1] : vector<8x8xf32> to vector<8xf32>
    %252 = vector.shape_cast %251 : vector<8xf32> to vector<8x1xf32>
    %253 = vector.broadcast %252 : vector<8x1xf32> to vector<8x8xf32>
    %254 = arith.subf %250, %253 : vector<8x8xf32>
    %255 = math.exp %254 : vector<8x8xf32>
    %cst_128 = arith.constant dense<0.000000e+00> : vector<8xf32>
    %256 = vector.multi_reduction <add>, %255, %cst_128 [1] : vector<8x8xf32> to vector<8xf32>
    %257 = vector.shape_cast %256 : vector<8xf32> to vector<8x1xf32>
    %258 = tpu.reciprocal %257 {approx = true} : vector<8x1xf32> -> vector<8x1xf32>
    %259 = vector.broadcast %258 : vector<8x1xf32> to vector<8x8xf32>
    %260 = arith.mulf %255, %259 : vector<8x8xf32>
    %261 = arith.truncf %260 : vector<8x8xf32> to vector<8x8xbf16>
    %262 = vector.extract_strided_slice %220 {offsets = [0, 128], sizes = [8, 128], strides = [1, 1]} : vector<16x256xbf16> to vector<8x128xbf16>
    %cst_129 = arith.constant dense<0.000000e+00> : vector<8x128xf32>
    %263 = tpu.matmul %261, %262, %cst_129 {dimension_numbers = #tpu.dot_dimension_numbers<[1], [0], [0], [1], [0, 0, 1, 1], [], []>} : vector<8x8xbf16>, vector<8x128xbf16>, vector<8x128xf32> -> vector<8x128xf32>
    %c0_130 = arith.constant 0 : index
    %c128_131 = arith.constant 128 : index
    %264 = vector.load %arg20[%c0_130, %c128_131] : memref<16x256xf32, #tpu.memory_space<vmem>>, vector<8x128xf32>
    tpu.vector_store %arg20[%c0_130, %c128_131], %263 {strides = array<i32>} : memref<16x256xf32, #tpu.memory_space<vmem>>, vector<8x128xf32>,
    %c2_i32_132 = arith.constant 2 : i32
    %265 = arith.muli %arg0, %c2_i32_132 : i32
    %c1_i32_133 = arith.constant 1 : i32
    %266 = arith.addi %265, %c1_i32_133 : i32
    %267 = arith.index_cast %266 : i32 to index
    %268 = memref.load %arg1[%267] : memref<2xi32, #tpu.memory_space<smem>>
    %269 = vector.broadcast %268 : i32 to vector<8x8xi32>
    %270 = arith.cmpi slt, %1, %269 : vector<8x8xi32>
    %271 = vector.extract_strided_slice %218 {offsets = [8, 0], sizes = [8, 128], strides = [1, 1]} : vector<16x256xbf16> to vector<8x128xbf16>
    %272 = vector.extract_strided_slice %219 {offsets = [8, 0], sizes = [8, 128], strides = [1, 1]} : vector<16x256xbf16> to vector<8x128xbf16>
    %cst_134 = arith.constant dense<0.000000e+00> : vector<8x8xf32>
    %273 = tpu.matmul %271, %272, %cst_134 {dimension_numbers = #tpu.dot_dimension_numbers<[1], [1], [0], [0], [0, 0, 1, 0], [], []>} : vector<8x128xbf16>, vector<8x128xbf16>, vector<8x8xf32> -> vector<8x8xf32>
    %cst_135 = arith.constant -1.000000e+06 : f32
    %274 = vector.broadcast %cst_135 : f32 to vector<8x8xf32>
    %275 = arith.select %270, %273, %274 : vector<8x8xi1>, vector<8x8xf32>
    %cst_136 = arith.constant dense<0xFF800000> : vector<8xf32>
    %276 = vector.multi_reduction <maximumf>, %275, %cst_136 [1] : vector<8x8xf32> to vector<8xf32>
    %277 = vector.shape_cast %276 : vector<8xf32> to vector<8x1xf32>
    %278 = vector.broadcast %277 : vector<8x1xf32> to vector<8x8xf32>
    %279 = arith.subf %275, %278 : vector<8x8xf32>
    %280 = math.exp %279 : vector<8x8xf32>
    %cst_137 = arith.constant dense<0.000000e+00> : vector<8xf32>
    %281 = vector.multi_reduction <add>, %280, %cst_137 [1] : vector<8x8xf32> to vector<8xf32>
    %282 = vector.shape_cast %281 : vector<8xf32> to vector<8x1xf32>
    %283 = tpu.reciprocal %282 {approx = true} : vector<8x1xf32> -> vector<8x1xf32>
    %284 = vector.broadcast %283 : vector<8x1xf32> to vector<8x8xf32>
    %285 = arith.mulf %280, %284 : vector<8x8xf32>
    %286 = arith.truncf %285 : vector<8x8xf32> to vector<8x8xbf16>
    %287 = vector.extract_strided_slice %220 {offsets = [8, 0], sizes = [8, 128], strides = [1, 1]} : vector<16x256xbf16> to vector<8x128xbf16>
    %cst_138 = arith.constant dense<0.000000e+00> : vector<8x128xf32>
    %288 = tpu.matmul %286, %287, %cst_138 {dimension_numbers = #tpu.dot_dimension_numbers<[1], [0], [0], [1], [0, 0, 1, 1], [], []>} : vector<8x8xbf16>, vector<8x128xbf16>, vector<8x128xf32> -> vector<8x128xf32>
    %c8_139 = arith.constant 8 : index
    %c0_140 = arith.constant 0 : index
    %289 = vector.load %arg20[%c8_139, %c0_140] : memref<16x256xf32, #tpu.memory_space<vmem>>, vector<8x128xf32>
    tpu.vector_store %arg20[%c8_139, %c0_140], %288 {strides = array<i32>} : memref<16x256xf32, #tpu.memory_space<vmem>>, vector<8x128xf32>,
    %290 = vector.extract_strided_slice %218 {offsets = [8, 128], sizes = [8, 128], strides = [1, 1]} : vector<16x256xbf16> to vector<8x128xbf16>
    %291 = vector.extract_strided_slice %219 {offsets = [8, 128], sizes = [8, 128], strides = [1, 1]} : vector<16x256xbf16> to vector<8x128xbf16>
    %cst_141 = arith.constant dense<0.000000e+00> : vector<8x8xf32>
    %292 = tpu.matmul %290, %291, %cst_141 {dimension_numbers = #tpu.dot_dimension_numbers<[1], [1], [0], [0], [0, 0, 1, 0], [], []>} : vector<8x128xbf16>, vector<8x128xbf16>, vector<8x8xf32> -> vector<8x8xf32>
    %cst_142 = arith.constant -1.000000e+06 : f32
    %293 = vector.broadcast %cst_142 : f32 to vector<8x8xf32>
    %294 = arith.select %270, %292, %293 : vector<8x8xi1>, vector<8x8xf32>
    %cst_143 = arith.constant dense<0xFF800000> : vector<8xf32>
    %295 = vector.multi_reduction <maximumf>, %294, %cst_143 [1] : vector<8x8xf32> to vector<8xf32>
    %296 = vector.shape_cast %295 : vector<8xf32> to vector<8x1xf32>
    %297 = vector.broadcast %296 : vector<8x1xf32> to vector<8x8xf32>
    %298 = arith.subf %294, %297 : vector<8x8xf32>
    %299 = math.exp %298 : vector<8x8xf32>
    %cst_144 = arith.constant dense<0.000000e+00> : vector<8xf32>
    %300 = vector.multi_reduction <add>, %299, %cst_144 [1] : vector<8x8xf32> to vector<8xf32>
    %301 = vector.shape_cast %300 : vector<8xf32> to vector<8x1xf32>
    %302 = tpu.reciprocal %301 {approx = true} : vector<8x1xf32> -> vector<8x1xf32>
    %303 = vector.broadcast %302 : vector<8x1xf32> to vector<8x8xf32>
    %304 = arith.mulf %299, %303 : vector<8x8xf32>
    %305 = arith.truncf %304 : vector<8x8xf32> to vector<8x8xbf16>
    %306 = vector.extract_strided_slice %220 {offsets = [8, 128], sizes = [8, 128], strides = [1, 1]} : vector<16x256xbf16> to vector<8x128xbf16>
    %cst_145 = arith.constant dense<0.000000e+00> : vector<8x128xf32>
    %307 = tpu.matmul %305, %306, %cst_145 {dimension_numbers = #tpu.dot_dimension_numbers<[1], [0], [0], [1], [0, 0, 1, 1], [], []>} : vector<8x8xbf16>, vector<8x128xbf16>, vector<8x128xf32> -> vector<8x128xf32>
    %c8_146 = arith.constant 8 : index
    %c128_147 = arith.constant 128 : index
    %308 = vector.load %arg20[%c8_146, %c128_147] : memref<16x256xf32, #tpu.memory_space<vmem>>, vector<8x128xf32>
    tpu.vector_store %arg20[%c8_146, %c128_147], %307 {strides = array<i32>} : memref<16x256xf32, #tpu.memory_space<vmem>>, vector<8x128xf32>,
    %c0_148 = arith.constant 0 : index
    %c0_149 = arith.constant 0 : index
    %309 = vector.load %arg20[%c0_148, %c0_149] : memref<16x256xf32, #tpu.memory_space<vmem>>, vector<16x256xf32>
    %310 = arith.truncf %309 : vector<16x256xf32> to vector<16x256xbf16>
    %c1_150 = arith.constant 1 : index
    %c0_151 = arith.constant 0 : index
    %c0_152 = arith.constant 0 : index
    %311 = vector.load %arg9[%c1_150, %c0_151, %c0_152] : memref<2x256x256xbf16, #tpu.memory_space<vmem>>, vector<1x256x256xbf16>
    %312 = vector.shape_cast %311 : vector<1x256x256xbf16> to vector<256x256xbf16>
    %cst_153 = arith.constant dense<0.000000e+00> : vector<16x256xf32>
    %313 = tpu.matmul %310, %312, %cst_153 {dimension_numbers = #tpu.dot_dimension_numbers<[1], [0], [0], [1], [0, 0, 1, 1], [], []>} : vector<16x256xbf16>, vector<256x256xbf16>, vector<16x256xf32> -> vector<16x256xf32>
    %c1_154 = arith.constant 1 : index
    %c0_155 = arith.constant 0 : index
    %c0_156 = arith.constant 0 : index
    %314 = vector.load %arg10[%c1_154, %c0_155, %c0_156] : memref<2x1x256xf32, #tpu.memory_space<vmem>>, vector<1x1x256xf32>
    %315 = vector.shape_cast %314 : vector<1x1x256xf32> to vector<1x256xf32>
    %316 = vector.broadcast %315 : vector<1x256xf32> to vector<16x256xf32>
    %317 = arith.addf %313, %316 : vector<16x256xf32>
    %318 = arith.addf %193, %317 : vector<16x256xf32>
    %c1_157 = arith.constant 1 : index
    %c0_158 = arith.constant 0 : index
    %c0_159 = arith.constant 0 : index
    %319 = vector.load %arg11[%c1_157, %c0_158, %c0_159] : memref<2x1x256xf32, #tpu.memory_space<vmem>>, vector<1x1x256xf32>
    %320 = vector.shape_cast %319 : vector<1x1x256xf32> to vector<1x256xf32>
    %c1_160 = arith.constant 1 : index
    %c0_161 = arith.constant 0 : index
    %c0_162 = arith.constant 0 : index
    %321 = vector.load %arg12[%c1_160, %c0_161, %c0_162] : memref<2x1x256xf32, #tpu.memory_space<vmem>>, vector<1x1x256xf32>
    %322 = vector.shape_cast %321 : vector<1x1x256xf32> to vector<1x256xf32>
    %cst_163 = arith.constant dense<0.000000e+00> : vector<16xf32>
    %323 = vector.multi_reduction <add>, %318, %cst_163 [1] : vector<16x256xf32> to vector<16xf32>
    %324 = vector.shape_cast %323 : vector<16xf32> to vector<16x1xf32>
    %cst_164 = arith.constant 2.560000e+02 : f32
    %325 = vector.broadcast %cst_164 : f32 to vector<16x1xf32>
    %326 = arith.divf %324, %325 : vector<16x1xf32>
    %327 = vector.broadcast %326 : vector<16x1xf32> to vector<16x256xf32>
    %328 = arith.subf %318, %327 : vector<16x256xf32>
    %329 = arith.mulf %328, %328 : vector<16x256xf32>
    %cst_165 = arith.constant dense<0.000000e+00> : vector<16xf32>
    %330 = vector.multi_reduction <add>, %329, %cst_165 [1] : vector<16x256xf32> to vector<16xf32>
    %331 = vector.shape_cast %330 : vector<16xf32> to vector<16x1xf32>
    %cst_166 = arith.constant 2.560000e+02 : f32
    %332 = vector.broadcast %cst_166 : f32 to vector<16x1xf32>
    %333 = arith.divf %331, %332 : vector<16x1xf32>
    %cst_167 = arith.constant 9.99999974E-6 : f32
    %334 = vector.broadcast %cst_167 : f32 to vector<16x1xf32>
    %335 = arith.addf %333, %334 : vector<16x1xf32>
    %336 = math.rsqrt %335 : vector<16x1xf32>
    %337 = vector.broadcast %336 : vector<16x1xf32> to vector<16x256xf32>
    %338 = arith.mulf %328, %337 : vector<16x256xf32>
    %339 = vector.broadcast %320 : vector<1x256xf32> to vector<16x256xf32>
    %340 = arith.mulf %338, %339 : vector<16x256xf32>
    %341 = vector.broadcast %322 : vector<1x256xf32> to vector<16x256xf32>
    %342 = arith.addf %340, %341 : vector<16x256xf32>
    %343 = arith.truncf %342 : vector<16x256xf32> to vector<16x256xbf16>
    %c1_168 = arith.constant 1 : index
    %c0_169 = arith.constant 0 : index
    %c0_170 = arith.constant 0 : index
    %344 = vector.load %arg13[%c1_168, %c0_169, %c0_170] : memref<2x256x512xbf16, #tpu.memory_space<vmem>>, vector<1x256x512xbf16>
    %345 = vector.shape_cast %344 : vector<1x256x512xbf16> to vector<256x512xbf16>
    %cst_171 = arith.constant dense<0.000000e+00> : vector<16x512xf32>
    %346 = tpu.matmul %343, %345, %cst_171 {dimension_numbers = #tpu.dot_dimension_numbers<[1], [0], [0], [1], [0, 0, 1, 1], [], []>} : vector<16x256xbf16>, vector<256x512xbf16>, vector<16x512xf32> -> vector<16x512xf32>
    %c1_172 = arith.constant 1 : index
    %c0_173 = arith.constant 0 : index
    %c0_174 = arith.constant 0 : index
    %347 = vector.load %arg14[%c1_172, %c0_173, %c0_174] : memref<2x1x512xf32, #tpu.memory_space<vmem>>, vector<1x1x512xf32>
    %348 = vector.shape_cast %347 : vector<1x1x512xf32> to vector<1x512xf32>
    %349 = vector.broadcast %348 : vector<1x512xf32> to vector<16x512xf32>
    %350 = arith.addf %346, %349 : vector<16x512xf32>
    %cst_175 = arith.constant 0.000000e+00 : f32
    %351 = vector.broadcast %cst_175 : f32 to vector<16x512xf32>
    %352 = arith.maximumf %350, %351 : vector<16x512xf32>
    %353 = arith.truncf %352 : vector<16x512xf32> to vector<16x512xbf16>
    %c1_176 = arith.constant 1 : index
    %c0_177 = arith.constant 0 : index
    %c0_178 = arith.constant 0 : index
    %354 = vector.load %arg15[%c1_176, %c0_177, %c0_178] : memref<2x512x256xbf16, #tpu.memory_space<vmem>>, vector<1x512x256xbf16>
    %355 = vector.shape_cast %354 : vector<1x512x256xbf16> to vector<512x256xbf16>
    %cst_179 = arith.constant dense<0.000000e+00> : vector<16x256xf32>
    %356 = tpu.matmul %353, %355, %cst_179 {dimension_numbers = #tpu.dot_dimension_numbers<[1], [0], [0], [1], [0, 0, 1, 1], [], []>} : vector<16x512xbf16>, vector<512x256xbf16>, vector<16x256xf32> -> vector<16x256xf32>
    %c1_180 = arith.constant 1 : index
    %c0_181 = arith.constant 0 : index
    %c0_182 = arith.constant 0 : index
    %357 = vector.load %arg16[%c1_180, %c0_181, %c0_182] : memref<2x1x256xf32, #tpu.memory_space<vmem>>, vector<1x1x256xf32>
    %358 = vector.shape_cast %357 : vector<1x1x256xf32> to vector<1x256xf32>
    %359 = vector.broadcast %358 : vector<1x256xf32> to vector<16x256xf32>
    %360 = arith.addf %356, %359 : vector<16x256xf32>
    %361 = arith.addf %342, %360 : vector<16x256xf32>
    %c1_183 = arith.constant 1 : index
    %c0_184 = arith.constant 0 : index
    %c0_185 = arith.constant 0 : index
    %362 = vector.load %arg17[%c1_183, %c0_184, %c0_185] : memref<2x1x256xf32, #tpu.memory_space<vmem>>, vector<1x1x256xf32>
    %363 = vector.shape_cast %362 : vector<1x1x256xf32> to vector<1x256xf32>
    %c1_186 = arith.constant 1 : index
    %c0_187 = arith.constant 0 : index
    %c0_188 = arith.constant 0 : index
    %364 = vector.load %arg18[%c1_186, %c0_187, %c0_188] : memref<2x1x256xf32, #tpu.memory_space<vmem>>, vector<1x1x256xf32>
    %365 = vector.shape_cast %364 : vector<1x1x256xf32> to vector<1x256xf32>
    %cst_189 = arith.constant dense<0.000000e+00> : vector<16xf32>
    %366 = vector.multi_reduction <add>, %361, %cst_189 [1] : vector<16x256xf32> to vector<16xf32>
    %367 = vector.shape_cast %366 : vector<16xf32> to vector<16x1xf32>
    %cst_190 = arith.constant 2.560000e+02 : f32
    %368 = vector.broadcast %cst_190 : f32 to vector<16x1xf32>
    %369 = arith.divf %367, %368 : vector<16x1xf32>
    %370 = vector.broadcast %369 : vector<16x1xf32> to vector<16x256xf32>
    %371 = arith.subf %361, %370 : vector<16x256xf32>
    %372 = arith.mulf %371, %371 : vector<16x256xf32>
    %cst_191 = arith.constant dense<0.000000e+00> : vector<16xf32>
    %373 = vector.multi_reduction <add>, %372, %cst_191 [1] : vector<16x256xf32> to vector<16xf32>
    %374 = vector.shape_cast %373 : vector<16xf32> to vector<16x1xf32>
    %cst_192 = arith.constant 2.560000e+02 : f32
    %375 = vector.broadcast %cst_192 : f32 to vector<16x1xf32>
    %376 = arith.divf %374, %375 : vector<16x1xf32>
    %cst_193 = arith.constant 9.99999974E-6 : f32
    %377 = vector.broadcast %cst_193 : f32 to vector<16x1xf32>
    %378 = arith.addf %376, %377 : vector<16x1xf32>
    %379 = math.rsqrt %378 : vector<16x1xf32>
    %380 = vector.broadcast %379 : vector<16x1xf32> to vector<16x256xf32>
    %381 = arith.mulf %371, %380 : vector<16x256xf32>
    %382 = vector.broadcast %363 : vector<1x256xf32> to vector<16x256xf32>
    %383 = arith.mulf %381, %382 : vector<16x256xf32>
    %384 = vector.broadcast %365 : vector<1x256xf32> to vector<16x256xf32>
    %385 = arith.addf %383, %384 : vector<16x256xf32>
    %c0_194 = arith.constant 0 : index
    %c0_195 = arith.constant 0 : index
    %386 = vector.load %arg19[%c0_194, %c0_195] : memref<16x256xf32, #tpu.memory_space<vmem>>, vector<16x256xf32>
    tpu.vector_store %arg19[%c0_194, %c0_195], %385 {strides = array<i32>} : memref<16x256xf32, #tpu.memory_space<vmem>>, vector<16x256xf32>,
    return
  }
  func.func @transform_0(%arg0: i32, %arg1: memref<2xi32, #tpu.memory_space<smem>>) -> (i32, i32) {
    %c0_i32 = arith.constant 0 : i32
    %c0_i32_0 = arith.constant 0 : i32
    return %arg0, %c0_i32 : i32, i32
  }
  func.func @transform_1(%arg0: i32, %arg1: memref<2xi32, #tpu.memory_space<smem>>) -> (i32, i32, i32) {
    %c0_i32 = arith.constant 0 : i32
    %c0_i32_0 = arith.constant 0 : i32
    %c0_i32_1 = arith.constant 0 : i32
    %c0_i32_2 = arith.constant 0 : i32
    return %c0_i32, %c0_i32_0, %c0_i32_1 : i32, i32, i32
  }
  func.func @transform_2(%arg0: i32, %arg1: memref<2xi32, #tpu.memory_space<smem>>) -> (i32, i32, i32) {
    %c0_i32 = arith.constant 0 : i32
    %c0_i32_0 = arith.constant 0 : i32
    %c0_i32_1 = arith.constant 0 : i32
    %c0_i32_2 = arith.constant 0 : i32
    return %c0_i32, %c0_i32_0, %c0_i32_1 : i32, i32, i32
  }
  func.func @transform_3(%arg0: i32, %arg1: memref<2xi32, #tpu.memory_space<smem>>) -> (i32, i32, i32) {
    %c0_i32 = arith.constant 0 : i32
    %c0_i32_0 = arith.constant 0 : i32
    %c0_i32_1 = arith.constant 0 : i32
    %c0_i32_2 = arith.constant 0 : i32
    return %c0_i32, %c0_i32_0, %c0_i32_1 : i32, i32, i32
  }
  func.func @transform_4(%arg0: i32, %arg1: memref<2xi32, #tpu.memory_space<smem>>) -> (i32, i32, i32) {
    %c0_i32 = arith.constant 0 : i32
    %c0_i32_0 = arith.constant 0 : i32
    %c0_i32_1 = arith.constant 0 : i32
    %c0_i32_2 = arith.constant 0 : i32
    return %c0_i32, %c0_i32_0, %c0_i32_1 : i32, i32, i32
  }
  func.func @transform_5(%arg0: i32, %arg1: memref<2xi32, #tpu.memory_space<smem>>) -> (i32, i32, i32) {
    %c0_i32 = arith.constant 0 : i32
    %c0_i32_0 = arith.constant 0 : i32
    %c0_i32_1 = arith.constant 0 : i32
    %c0_i32_2 = arith.constant 0 : i32
    return %c0_i32, %c0_i32_0, %c0_i32_1 : i32, i32, i32
  }
  func.func @transform_6(%arg0: i32, %arg1: memref<2xi32, #tpu.memory_space<smem>>) -> (i32, i32, i32) {
    %c0_i32 = arith.constant 0 : i32
    %c0_i32_0 = arith.constant 0 : i32
    %c0_i32_1 = arith.constant 0 : i32
    %c0_i32_2 = arith.constant 0 : i32
    return %c0_i32, %c0_i32_0, %c0_i32_1 : i32, i32, i32
  }
  func.func @transform_7(%arg0: i32, %arg1: memref<2xi32, #tpu.memory_space<smem>>) -> (i32, i32, i32) {
    %c0_i32 = arith.constant 0 : i32
    %c0_i32_0 = arith.constant 0 : i32
    %c0_i32_1 = arith.constant 0 : i32
    %c0_i32_2 = arith.constant 0 : i32
    return %c0_i32, %c0_i32_0, %c0_i32_1 : i32, i32, i32
  }
  func.func @transform_8(%arg0: i32, %arg1: memref<2xi32, #tpu.memory_space<smem>>) -> (i32, i32, i32) {
    %c0_i32 = arith.constant 0 : i32
    %c0_i32_0 = arith.constant 0 : i32
    %c0_i32_1 = arith.constant 0 : i32
    %c0_i32_2 = arith.constant 0 : i32
    return %c0_i32, %c0_i32_0, %c0_i32_1 : i32, i32, i32
  }
  func.func @transform_9(%arg0: i32, %arg1: memref<2xi32, #tpu.memory_space<smem>>) -> (i32, i32, i32) {
    %c0_i32 = arith.constant 0 : i32
    %c0_i32_0 = arith.constant 0 : i32
    %c0_i32_1 = arith.constant 0 : i32
    %c0_i32_2 = arith.constant 0 : i32
    return %c0_i32, %c0_i32_0, %c0_i32_1 : i32, i32, i32
  }
  func.func @transform_10(%arg0: i32, %arg1: memref<2xi32, #tpu.memory_space<smem>>) -> (i32, i32, i32) {
    %c0_i32 = arith.constant 0 : i32
    %c0_i32_0 = arith.constant 0 : i32
    %c0_i32_1 = arith.constant 0 : i32
    %c0_i32_2 = arith.constant 0 : i32
    return %c0_i32, %c0_i32_0, %c0_i32_1 : i32, i32, i32
  }
  func.func @transform_11(%arg0: i32, %arg1: memref<2xi32, #tpu.memory_space<smem>>) -> (i32, i32, i32) {
    %c0_i32 = arith.constant 0 : i32
    %c0_i32_0 = arith.constant 0 : i32
    %c0_i32_1 = arith.constant 0 : i32
    %c0_i32_2 = arith.constant 0 : i32
    return %c0_i32, %c0_i32_0, %c0_i32_1 : i32, i32, i32
  }
  func.func @transform_12(%arg0: i32, %arg1: memref<2xi32, #tpu.memory_space<smem>>) -> (i32, i32, i32) {
    %c0_i32 = arith.constant 0 : i32
    %c0_i32_0 = arith.constant 0 : i32
    %c0_i32_1 = arith.constant 0 : i32
    %c0_i32_2 = arith.constant 0 : i32
    return %c0_i32, %c0_i32_0, %c0_i32_1 : i32, i32, i32
  }
  func.func @transform_13(%arg0: i32, %arg1: memref<2xi32, #tpu.memory_space<smem>>) -> (i32, i32, i32) {
    %c0_i32 = arith.constant 0 : i32
    %c0_i32_0 = arith.constant 0 : i32
    %c0_i32_1 = arith.constant 0 : i32
    %c0_i32_2 = arith.constant 0 : i32
    return %c0_i32, %c0_i32_0, %c0_i32_1 : i32, i32, i32
  }
  func.func @transform_14(%arg0: i32, %arg1: memref<2xi32, #tpu.memory_space<smem>>) -> (i32, i32, i32) {
    %c0_i32 = arith.constant 0 : i32
    %c0_i32_0 = arith.constant 0 : i32
    %c0_i32_1 = arith.constant 0 : i32
    %c0_i32_2 = arith.constant 0 : i32
    return %c0_i32, %c0_i32_0, %c0_i32_1 : i32, i32, i32
  }
  func.func @transform_15(%arg0: i32, %arg1: memref<2xi32, #tpu.memory_space<smem>>) -> (i32, i32, i32) {
    %c0_i32 = arith.constant 0 : i32
    %c0_i32_0 = arith.constant 0 : i32
    %c0_i32_1 = arith.constant 0 : i32
    %c0_i32_2 = arith.constant 0 : i32
    return %c0_i32, %c0_i32_0, %c0_i32_1 : i32, i32, i32
  }
  func.func @transform_16(%arg0: i32, %arg1: memref<2xi32, #tpu.memory_space<smem>>) -> (i32, i32, i32) {
    %c0_i32 = arith.constant 0 : i32
    %c0_i32_0 = arith.constant 0 : i32
    %c0_i32_1 = arith.constant 0 : i32
    %c0_i32_2 = arith.constant 0 : i32
    return %c0_i32, %c0_i32_0, %c0_i32_1 : i32, i32, i32
  }
  func.func @transform_17(%arg0: i32, %arg1: memref<2xi32, #tpu.memory_space<smem>>) -> (i32, i32) {
    %c0_i32 = arith.constant 0 : i32
    %c0_i32_0 = arith.constant 0 : i32
    return %arg0, %c0_i32 : i32, i32
  }
}

</mosaic_0001>

<bundles_post_ra>
// kernel: tpu_custom_call.1
= control target key start
LH: loop header
LB: loop body
LE: loop exit
PB: predicated region body
PF: predicated region fallthrough
CT: control target
= control target key end

     0   :  { %s7713_s0 = inlined_call_operand.hbm [shape: s32[2], index: 0, kind: input, shape index: {}]   ;;  %s7714_s1 = inlined_call_operand.hbm [shape: f32[16,256], index: 1, kind: input, shape index: {}]   ;;  %s7715_s2 = inlined_call_operand.hbm [shape: bf16[2,256,256], index: 2, kind: input, shape index: {}]   ;;  %s7716_s3 = inlined_call_operand.vmem [shape: f32[2,1,256], index: 3, kind: input, shape index: {}]   ;;  %s7717_s4 = inlined_call_operand.hbm [shape: bf16[2,256,256], index: 4, kind: input, shape index: {}]   ;;  %s7718_s5 = inlined_call_operand.vmem [shape: f32[2,1,256], index: 5, kind: input, shape index: {}]   ;;  %s7719_s6 = inlined_call_operand.hbm [shape: bf16[2,256,256], index: 6, kind: input, shape index: {}]   ;;  %s7720_s7 = inlined_call_operand.vmem [shape: f32[2,1,256], index: 7, kind: input, shape index: {}]   ;;  %s7721_s8 = inlined_call_operand.hbm [shape: bf16[2,256,256], index: 8, kind: input, shape index: {}]   ;;  %s7722_s9 = inlined_call_operand.vmem [shape: f32[2,1,256], index: 9, kind: input, shape index: {}]   ;;  %s7723_s10 = inlined_call_operand.vmem [shape: f32[2,1,256], index: 10, kind: input, shape index: {}]   ;;  %s7724_s11 = inlined_call_operand.vmem [shape: f32[2,1,256], index: 11, kind: input, shape index: {}]   ;;  %s7725_s12 = inlined_call_operand.hbm [shape: bf16[2,256,512], index: 12, kind: input, shape index: {}]   ;;  %s7726_s13 = inlined_call_operand.vmem [shape: f32[2,1,512], index: 13, kind: input, shape index: {}]   ;;  %s7727_s14 = inlined_call_operand.hbm [shape: bf16[2,512,256], index: 14, kind: input, shape index: {}]   ;;  %s7728_s15 = inlined_call_operand.vmem [shape: f32[2,1,256], index: 15, kind: input, shape index: {}]   ;;  %s7729_s16 = inlined_call_operand.vmem [shape: f32[2,1,256], index: 16, kind: input, shape index: {}]   ;;  %s7730_s17 = inlined_call_operand.vmem [shape: f32[2,1,256], index: 17, kind: input, shape index: {}]   ;;  %s7731_s18 = inlined_call_operand.hbm [shape: f32[16,256], index: 18, kind: output, shape index: {}]  }
   0x1   :  { %7738 = sst [smem:[#allocation24_spill]] %s7713_s0 }
   0x2   :  { %7739 = sst [smem:[#allocation25_spill]] %s7714_s1  ;;  %s7742_s29 = sld [smem:[#allocation24_spill]] }
   0x3   :  { %7740 = sst [smem:[#allocation26_spill]] %s7715_s2 }
   0x4   :  { %7741 = sst [smem:[#allocation27_spill]] %s7724_s11 }
   0x8   :  { %s6824_s11 = scalar_lea.hbm %s7742_s29, 16 }
   0x9   :  { %p6825_p0 = scmp.ne.s32.totalorder %s7742_s29, %s6824_s11  ;;  %p6828_p1 = scmp.lt.u32.totalorder %s6824_s11, %s7742_s29 }
   0xb   :  { %p6830_p2 = pnand %p6828_p1, %p6825_p0 }
   0xd   :  { %6833 = shalt.err (!%p6830_p2)  }
   0xe   :  { %s7022_s20 = smov [#allocation4]  }
   0xf   :  { %24 = dma.hbm_to_smem %s7742_s29, 16, %s7022_s20, [#allocation3] }
  0x10   :  { %7010 = dma.done.wait [#allocation3], 16 }
  0x11   :  { %7011 = vsyncadd [#allocation3], 4294967280 }
  0x12   :  { %26 = sfence }
  0x13   :  { %27 = vsyncpa [#allocation6], 0 }
  0x14   :  { %28 = vsyncpa [#allocation9], 0 }
  0x15   :  { %29 = vsyncpa [#allocation12], 0 }
  0x16   :  { %30 = vsyncpa [#allocation15], 0 }
  0x17   :  { %31 = vsyncpa [#allocation7], 0  ;;  %s7023_s2 = smov [#allocation8]   ;;  %s7743_s25 = sld [smem:[#allocation26_spill]] }
  0x18   :  { %s49_s23 = sshll.u32 %s7023_s2, 4  ;;  %s50_s23 = int_to_ptr.vmem [resolvable:$true] %s49_s23 }
  0x1d   :  { %s6834_s26 = scalar_lea.hbm %s7743_s25, 8192 }
  0x1e   :  { %p6835_p3 = scmp.ne.s32.totalorder %s7743_s25, %s6834_s26  ;;  %p6838_p4 = scmp.lt.u32.totalorder %s6834_s26, %s7743_s25 }
  0x20   :  { %p6840_p5 = pnand %p6838_p4, %p6835_p3 }
  0x22   :  { %6843 = shalt.err (!%p6840_p5)
}
  0x23   :  { %s6844_s0 = scalar_lea.vmem %s50_s23, 8192  ;;  %p6849_p7 = scmp.lt.s32.totalorder %s50_s23, %s50_s23 }
  0x24   :  { %p6845_p6 = scmp.ne.s32.totalorder %s50_s23, %s6844_s0  ;;  %p6850_p8 = scmp.lt.s32.totalorder %s6844_s0, %s6844_s0 }
  0x26   :  { %p6851_p9 = por %p6850_p8, %p6849_p7 }
  0x28   :  { %p6852_p10 = pnand %p6851_p9, %p6845_p6 }
  0x2a   :  { %6855 = shalt.err (!%p6852_p10)
}
  0x2b   :  { %s7736_s19 = smov 128   ;;  %s7025_s1 = smov 8  }
  0x2c   :  { %55 = dma.hbm_to_vmem [thread:$0]  %s7743_s25, 8192, %s50_s23, [#allocation9], %s7736_s19, %s7736_s19, %s7025_s1  }
  0x2d   :  { %s7026_s22 = smov [#allocation11]   ;;  %s6856_s26 = scalar_lea.hbm %s7719_s6, 8192 }
  0x2e   :  { %s77_s2 = sshll.u32 %s7026_s22, 4  ;;  %p6857_p11 = scmp.ne.s32.totalorder %s7719_s6, %s6856_s26  ;;  %s78_s2 = int_to_ptr.vmem [resolvable:$true] %s77_s2 }
  0x2f   :  { %p6860_p12 = scmp.lt.u32.totalorder %s6856_s26, %s7719_s6 }
  0x31   :  { %p6862_p13 = pnand %p6860_p12, %p6857_p11 }
  0x33   :  { %6865 = shalt.err (!%p6862_p13)
}
  0x34   :  { %s6866_s0 = scalar_lea.vmem %s78_s2, 8192  ;;  %p6871_p1 = scmp.lt.s32.totalorder %s78_s2, %s78_s2 }
  0x35   :  { %p6867_p0 = scmp.ne.s32.totalorder %s78_s2, %s6866_s0  ;;  %p6872_p2 = scmp.lt.s32.totalorder %s6866_s0, %s6866_s0 }
  0x37   :  { %p6873_p3 = por %p6872_p2, %p6871_p1 }
  0x39   :  { %p6874_p4 = pnand %p6873_p3, %p6867_p0 }
  0x3b   :  { %6877 = shalt.err (!%p6874_p4)
}
  0x3c   :  { %83 = dma.hbm_to_vmem [thread:$0]  %s7719_s6, 8192, %s78_s2, [#allocation12], %s7736_s19, %s7736_s19, %s7025_s1  }
  0x3d   :  { %s7027_s20 = smov [#allocation14]   ;;  %s7028_s22 = smov [#allocation5]  }
  0x3e   :  { %s109_s21 = sshll.u32 %s7027_s20, 4  ;;  %s37_s24 = sshll.u32 %s7028_s22, 4  ;;  %s110_s21 = int_to_ptr.vmem [resolvable:$true] %s109_s21  ;;  %s7174_s24 = int_to_ptr.vmem [resolvable:$true] %s37_s24 }
  0x3f   :  { %s6878_s27 = scalar_lea.hbm %s7725_s12, 16384 }
  0x40   :  { %p6879_p5 = scmp.ne.s32.totalorder %s7725_s12, %s6878_s27  ;;  %p6882_p6 = scmp.lt.u32.totalorder %s6878_s27, %s7725_s12 }
  0x42   :  { %p6884_p7 = pnand %p6882_p6, %p6879_p5 }
  0x44   :  { %6887 = shalt.err (!%p6884_p7)
}
  0x45   :  { %s6888_s6 = scalar_lea.vmem %s110_s21, 16384  ;;  %p6893_p9 = scmp.lt.s32.totalorder %s110_s21, %s110_s21 }
  0x46   :  { %p6889_p8 = scmp.ne.s32.totalorder %s110_s21, %s6888_s6  ;;  %p6894_p10 = scmp.lt.s32.totalorder %s6888_s6, %s6888_s6 }
  0x48   :  { %p6895_p11 = por %p6894_p10, %p6893_p9 }
  0x4a   :  { %p6896_p12 = pnand %p6895_p11, %p6889_p8 }
  0x4c   :  { %6899 = shalt.err (!%p6896_p12)
}
  0x4d   :  { %s7029_s2 = smov 256   ;;  %s7030_s23 = smov 16  }
  0x4e   :  { %115 = dma.hbm_to_vmem [thread:$0]  %s7725_s12, 16384, %s110_s21, [#allocation15], %s7029_s2, %s7029_s2, %s7030_s23  }
  0x4f   :  { %s7744_s26 = sld [smem:[#allocation25_spill]] }
  0x55   :  { %s6900_s27 = scalar_lea.hbm %s7744_s26, 512 }
  0x56   :  { %p6901_p13 = scmp.ne.s32.totalorder %s7744_s26, %s6900_s27  ;;  %p6904_p0 = scmp.lt.u32.totalorder %s6900_s27, %s7744_s26 }
  0x58   :  { %p6906_p1 = pnand %p6904_p0, %p6901_p13 }
  0x5a   :  { %6909 = shalt.err (!%p6906_p1)
}
  0x5b   :  { %s6910_s6 = scalar_lea.vmem %s7174_s24, 512  ;;  %p6915_p3 = scmp.lt.s32.totalorder %s7174_s24, %s7174_s24 }
  0x5c   :  { %p6911_p2 = scmp.ne.s32.totalorder %s7174_s24, %s6910_s6  ;;  %p6916_p4 = scmp.lt.s32.totalorder %s6910_s6, %s6910_s6 }
  0x5e   :  { %p6917_p5 = por %p6916_p4, %p6915_p3 }
  0x60   :  { %p6918_p6 = pnand %p6917_p5, %p6911_p2 }
  0x62   :  { %6921 = shalt.err (!%p6918_p6)
}
  0x63   :  { %43 = dma.hbm_to_vmem [thread:$0]  %s7744_s26, 512, %s7174_s24, [#allocation6], %s7029_s2, %s7029_s2, %s7030_s23  }
  0x64   :  { %s7031_s25 = smov [#allocation10]   ;;  %s7032_s22 = smov [#allocation13]  }
  0x65   :  { %s63_s20 = sshll.u32 %s7031_s25, 4  ;;  %s91_s11 = sshll.u32 %s7032_s22, 4  ;;  %s64_s20 = int_to_ptr.vmem [resolvable:$true] %s63_s20  ;;  %s7211_s11 = int_to_ptr.vmem [resolvable:$true] %s91_s11 }
  0x66   :  { %s6922_s29 = scalar_lea.hbm %s7717_s4, 8192 }
  0x67   :  { %p6923_p7 = scmp.ne.s32.totalorder %s7717_s4, %s6922_s29  ;;  %p6926_p8 = scmp.lt.u32.totalorder %s6922_s29, %s7717_s4 }
  0x69   :  { %p6928_p9 = pnand %p6926_p8, %p6923_p7 }
  0x6b   :  { %6931 = shalt.err (!%p6928_p9)
}
  0x6c   :  { %s6932_s24 = scalar_lea.vmem %s64_s20, 8192  ;;  %p6937_p11 = scmp.lt.s32.totalorder %s64_s20, %s64_s20 }
  0x6d   :  { %p6933_p10 = scmp.ne.s32.totalorder %s64_s20, %s6932_s24  ;;  %p6938_p12 = scmp.lt.s32.totalorder %s6932_s24, %s6932_s24 }
  0x6f   :  { %p6939_p13 = por %p6938_p12, %p6937_p11 }
  0x71   :  { %p6940_p0 = pnand %p6939_p13, %p6933_p10 }
  0x73   :  { %6943 = shalt.err (!%p6940_p0)
}
  0x74   :  { %s7745_s26 = smov 128   ;;  %s6944_s19 = scalar_lea.hbm %s7721_s8, 8192 }
  0x75   :  { %69 = dma.hbm_to_vmem [thread:$0]  %s7717_s4, 8192, %s64_s20, [#allocation9], %s7745_s26, %s7745_s26, %s7025_s1  }
  0x76   :  { %p6945_p1 = scmp.ne.s32.totalorder %s7721_s8, %s6944_s19  ;;  %p6948_p2 = scmp.lt.u32.totalorder %s6944_s19, %s7721_s8 }
  0x78   :  { %p6950_p3 = pnand %p6948_p2, %p6945_p1 }
  0x7a   :  { %6953 = shalt.err (!%p6950_p3)
}
  0x7b   :  { %s6954_s0 = scalar_lea.vmem %s7211_s11, 8192  ;;  %p6959_p5 = scmp.lt.s32.totalorder %s7211_s11, %s7211_s11 }
  0x7c   :  { %p6955_p4 = scmp.ne.s32.totalorder %s7211_s11, %s6954_s0  ;;  %p6960_p6 = scmp.lt.s32.totalorder %s6954_s0, %s6954_s0 }
  0x7e   :  { %p6961_p7 = por %p6960_p6, %p6959_p5 }
  0x80   :  { %p6962_p8 = pnand %p6961_p7, %p6955_p4 }
  0x82   :  { %6965 = shalt.err (!%p6962_p8)
}
  0x83   :  { %97 = dma.hbm_to_vmem [thread:$0]  %s7721_s8, 8192, %s7211_s11, [#allocation12], %s7745_s26, %s7745_s26, %s7025_s1  }
  0x84   :  { %s7033_s6 = smov [#allocation16]   ;;  %s6966_s25 = scalar_lea.hbm %s7727_s14, 16384 }
  0x85   :  { %s123_s24 = sshll.u32 %s7033_s6, 4  ;;  %p6967_p9 = scmp.ne.s32.totalorder %s7727_s14, %s6966_s25  ;;  %s124_s24 = int_to_ptr.vmem [resolvable:$true] %s123_s24 }
  0x86   :  { %p6970_p10 = scmp.lt.u32.totalorder %s6966_s25, %s7727_s14 }
  0x88   :  { %p6972_p11 = pnand %p6970_p10, %p6967_p9 }
  0x8a   :  { %6975 = shalt.err (!%p6972_p11)
}
  0x8b   :  { %s6976_s29 = scalar_lea.vmem %s124_s24, 16384  ;;  %p6981_p13 = scmp.lt.s32.totalorder %s124_s24, %s124_s24 }
  0x8c   :  { %p6977_p12 = scmp.ne.s32.totalorder %s124_s24, %s6976_s29  ;;  %p6982_p0 = scmp.lt.s32.totalorder %s6976_s29, %s6976_s29 }
  0x8e   :  { %p6983_p1 = por %p6982_p0, %p6981_p13 }
  0x90   :  { %p6984_p2 = pnand %p6983_p1, %p6977_p12 }
  0x92   :  { %6987 = shalt.err (!%p6984_p2)
}
  0x93   :  { %129 = dma.hbm_to_vmem [thread:$0]  %s7727_s14, 16384, %s124_s24, [#allocation15], %s7745_s26, %s7745_s26, %s7025_s1  }
  0x94   :  { %7012 = dma.done.wait [#allocation6], 512  }
  0x95   :  { %7013 = vsyncadd [#allocation6], 4294966784 }
  0x96   :  { %7014 = dma.done.wait [#allocation9], 16384  }
  0x97   :  { %7015 = vsyncadd [#allocation9], 4294950912 }
  0x98   :  { %7016 = dma.done.wait [#allocation12], 16384  }
  0x99   :  { %7017 = vsyncadd [#allocation12], 4294950912 }
  0x9a   :  { %7018 = dma.done.wait [#allocation15], 32768  }
  0x9b   :  { %7019 = vsyncadd [#allocation15], 4294934528  ;;  %v6004_v0 = vld [vmem:[#allocation10 + $0x4] ss:$8 sps:$4 sm:$0xff]   ;;  %v6006_v1 = vld [vmem:[#allocation10] ss:$8 sps:$4 sm:$0xff]  }
  0x9c   :  { %617 = vmatprep.subr.bf16.mxu1 %v6004_v0  ;;  %v6007_v2 = vld [vmem:[#allocation8 + $0x4] ss:$8 sps:$4 sm:$0xff]   ;;  %v6009_v3 = vld [vmem:[#allocation8] ss:$8 sps:$4 sm:$0xff]   ;;  %v6010_v4 = vld [vmem:[#allocation10 + $0x14] ss:$8 sps:$4 sm:$0xff]  }
  0x9d   :  { %618 = vmatpush1.bf16.msra.mxu1 %v6006_v1  ;;  %v6012_v5 = vld [vmem:[#allocation10 + $0x10] ss:$8 sps:$4 sm:$0xff]   ;;  %370 = vmatprep.subr.bf16.mxu0 %v6007_v2  ;;  %v6013_v6 = vld [vmem:[#allocation8 + $0x14] ss:$8 sps:$4 sm:$0xff]   ;;  %v6016_v8 = vld [vmem:[#allocation10 + $0x24] ss:$8 sps:$4 sm:$0xff]  }
  0x9e   :  { %371 = vmatpush1.bf16.msra.mxu0 %v6009_v3  ;;  %619 = vmatprep.subr.bf16.mxu1 %v6010_v4  ;;  %v6015_v7 = vld [vmem:[#allocation8 + $0x10] ss:$8 sps:$4 sm:$0xff]   ;;  %v6018_v9 = vld [vmem:[#allocation10 + $0x20] ss:$8 sps:$4 sm:$0xff]   ;;  %v6019_v10 = vld [vmem:[#allocation8 + $0x24] ss:$8 sps:$4 sm:$0xff]  }
  0x9f   :  { %372 = vmatprep.subr.bf16.mxu0 %v6013_v6  ;;  %v6022_v11 = vld [vmem:[#allocation10 + $0x34] ss:$8 sps:$4 sm:$0xff]   ;;  %v6021_v12 = vld [vmem:[#allocation8 + $0x20] ss:$8 sps:$4 sm:$0xff]   ;;  %v6024_v14 = vld [vmem:[#allocation10 + $0x30] ss:$8 sps:$4 sm:$0xff]  }
  0xa0   :  { %v6025_v13 = vld [vmem:[#allocation8 + $0x34] ss:$8 sps:$4 sm:$0xff]   ;;  %v6028_v15 = vld [vmem:[#allocation10 + $0x44] ss:$8 sps:$4 sm:$0xff]   ;;  %v6027_v16 = vld [vmem:[#allocation8 + $0x30] ss:$8 sps:$4 sm:$0xff]  }
  0xa1   :  { %620 = vmatpush1.bf16.msra.mxu1 %v6012_v5  ;;  %v6031_v17 = vld [vmem:[#allocation8 + $0x44] ss:$8 sps:$4 sm:$0xff]   ;;  %v6030_v18 = vld [vmem:[#allocation10 + $0x40] ss:$8 sps:$4 sm:$0xff]   ;;  %v6034_v19 = vld [vmem:[#allocation10 + $0x54] ss:$8 sps:$4 sm:$0xff]  }
  0xa2   :  { %621 = vmatprep.subr.bf16.mxu1 %v6016_v8  ;;  %373 = vmatpush1.bf16.msra.mxu0 %v6015_v7  ;;  %v6033_v20 = vld [vmem:[#allocation8 + $0x40] ss:$8 sps:$4 sm:$0xff]   ;;  %v6037_v21 = vld [vmem:[#allocation8 + $0x54] ss:$8 sps:$4 sm:$0xff]   ;;  %v6036_v22 = vld [vmem:[#allocation10 + $0x50] ss:$8 sps:$4 sm:$0xff]  }
  0xa3   :  { %374 = vmatprep.subr.bf16.mxu0 %v6019_v10  ;;  %v6040_v23 = vld [vmem:[#allocation10 + $0x64] ss:$8 sps:$4 sm:$0xff]   ;;  %v6039_v24 = vld [vmem:[#allocation8 + $0x50] ss:$8 sps:$4 sm:$0xff]   ;;  %v6042_v26 = vld [vmem:[#allocation10 + $0x60] ss:$8 sps:$4 sm:$0xff]  }
  0xa4   :  { %v6043_v25 = vld [vmem:[#allocation8 + $0x64] ss:$8 sps:$4 sm:$0xff]   ;;  %v6046_v27 = vld [vmem:[#allocation10 + $0x74] ss:$8 sps:$4 sm:$0xff]   ;;  %v6045_v28 = vld [vmem:[#allocation8 + $0x60] ss:$8 sps:$4 sm:$0xff]  }
  0xa5   :  { %622 = vmatpush1.bf16.msra.mxu1 %v6018_v9  ;;  %v6049_v29 = vld [vmem:[#allocation8 + $0x74] ss:$8 sps:$4 sm:$0xff]   ;;  %v6048_v30 = vld [vmem:[#allocation10 + $0x70] ss:$8 sps:$4 sm:$0xff]   ;;  %v6052_v31 = vld [vmem:[#allocation10 + $0x84] ss:$8 sps:$4 sm:$0xff]  }
  0xa6   :  { %623 = vmatprep.subr.bf16.mxu1 %v6022_v11  ;;  %375 = vmatpush1.bf16.msra.mxu0 %v6021_v12  ;;  %v6051_v32 = vld [vmem:[#allocation8 + $0x70] ss:$8 sps:$4 sm:$0xff]   ;;  %v6055_v33 = vld [vmem:[#allocation8 + $0x84] ss:$8 sps:$4 sm:$0xff]   ;;  %v6054_v34 = vld [vmem:[#allocation10 + $0x80] ss:$8 sps:$4 sm:$0xff]  }
  0xa7   :  { %376 = vmatprep.subr.bf16.mxu0 %v6025_v13  ;;  %v6058_v35 = vld [vmem:[#allocation10 + $0x94] ss:$8 sps:$4 sm:$0xff]   ;;  %v6057_v36 = vld [vmem:[#allocation8 + $0x80] ss:$8 sps:$4 sm:$0xff]   ;;  %v6060_v38 = vld [vmem:[#allocation10 + $0x90] ss:$8 sps:$4 sm:$0xff]  }
  0xa8   :  { %v6061_v37 = vld [vmem:[#allocation8 + $0x94] ss:$8 sps:$4 sm:$0xff]   ;;  %v6064_v39 = vld [vmem:[#allocation10 + $0xa4] ss:$8 sps:$4 sm:$0xff]   ;;  %v6063_v40 = vld [vmem:[#allocation8 + $0x90] ss:$8 sps:$4 sm:$0xff]  }
  0xa9   :  { %624 = vmatpush1.bf16.msra.mxu1 %v6024_v14  ;;  %v6067_v41 = vld [vmem:[#allocation8 + $0xa4] ss:$8 sps:$4 sm:$0xff]   ;;  %v6066_v42 = vld [vmem:[#allocation10 + $0xa0] ss:$8 sps:$4 sm:$0xff]   ;;  %v6070_v43 = vld [vmem:[#allocation10 + $0xb4] ss:$8 sps:$4 sm:$0xff]  }
  0xaa   :  { %625 = vmatprep.subr.bf16.mxu1 %v6028_v15  ;;  %377 = vmatpush1.bf16.msra.mxu0 %v6027_v16  ;;  %v6069_v44 = vld [vmem:[#allocation8 + $0xa0] ss:$8 sps:$4 sm:$0xff]   ;;  %v6073_v45 = vld [vmem:[#allocation8 + $0xb4] ss:$8 sps:$4 sm:$0xff]   ;;  %v6072_v47 = vld [vmem:[#allocation10 + $0xb0] ss:$8 sps:$4 sm:$0xff]  }
  0xab   :  { %378 = vmatprep.subr.bf16.mxu0 %v6031_v17  ;;  %v159_v46 = vld [vmem:[#allocation5 + $0x8] sm:$0xff]  ;;  %v161_v48 = vld [vmem:[#allocation5 + $0x18] sm:$0xff]  ;;  %v158_v2 = vld [vmem:[#allocation5] sm:$0xff]  ;;  %vm7035_vm0 = vmmov 0   ;;  %vm978_vm1 = vcmask 1043456   ;;  %s918_s20 = sld [smem:[#allocation4]] }
  0xac   :  { %v6076_v49 = vld [vmem:[#allocation10 + $0xc4] ss:$8 sps:$4 sm:$0xff]   ;;  %v165_v50 = vpack.c.bf16 %v161_v48, %v159_v46  ;;  %v6075_v51 = vld [vmem:[#allocation8 + $0xb0] ss:$8 sps:$4 sm:$0xff]   ;;  %v6078_v53 = vld [vmem:[#allocation10 + $0xc0] ss:$8 sps:$4 sm:$0xff]  }
  0xad   :  { %626 = vmatpush1.bf16.msra.mxu1 %v6030_v18  ;;  %v6079_v52 = vld [vmem:[#allocation8 + $0xc4] ss:$8 sps:$4 sm:$0xff]   ;;  %v6082_v54 = vld [vmem:[#allocation10 + $0xd4] ss:$8 sps:$4 sm:$0xff]   ;;  %v6081_v55 = vld [vmem:[#allocation8 + $0xc0] ss:$8 sps:$4 sm:$0xff]  }
  0xae   :  { %627 = vmatprep.subr.bf16.mxu1 %v6034_v19  ;;  %379 = vmatpush1.bf16.msra.mxu0 %v6033_v20  ;;  %v6085_v56 = vld [vmem:[#allocation8 + $0xd4] ss:$8 sps:$4 sm:$0xff]   ;;  %v6084_v57 = vld [vmem:[#allocation10 + $0xd0] ss:$8 sps:$4 sm:$0xff]   ;;  %v6088_v58 = vld [vmem:[#allocation10 + $0xe4] ss:$8 sps:$4 sm:$0xff]  }
  0xaf   :  { %380 = vmatprep.subr.bf16.mxu0 %v6037_v21  ;;  %649 = vmatprep.mubr.bf16.mxu1 %v165_v50  ;;  %v6087_v59 = vld [vmem:[#allocation8 + $0xd0] ss:$8 sps:$4 sm:$0xff]   ;;  %v6091_v60 = vld [vmem:[#allocation8 + $0xe4] ss:$8 sps:$4 sm:$0xff]   ;;  %v6090_v61 = vld [vmem:[#allocation10 + $0xe0] ss:$8 sps:$4 sm:$0xff]  }
  0xb0   :  { %402 = vmatprep.mubr.bf16.mxu0 %v165_v50  ;;  %v6094_v62 = vld [vmem:[#allocation10 + $0xf4] ss:$8 sps:$4 sm:$0xff]   ;;  %v6093_v63 = vld [vmem:[#allocation8 + $0xe0] ss:$8 sps:$4 sm:$0xff]   ;;  %v6096_v0 = vld [vmem:[#allocation10 + $0xf0] ss:$8 sps:$4 sm:$0xff]  }
  0xb1   :  { %628 = vmatpush1.bf16.msra.mxu1 %v6036_v22  ;;  %v6097_v1 = vld [vmem:[#allocation8 + $0xf4] ss:$8 sps:$4 sm:$0xff]   ;;  %v6099_v4 = vld [vmem:[#allocation8 + $0xf0] ss:$8 sps:$4 sm:$0xff]   ;;  %v6102_v6 = vld [vmem:[#allocation11 + $0x4] ss:$8 sps:$4 sm:$0xff]  }
  0xb2   :  { %629 = vmatprep.subr.bf16.mxu1 %v6040_v23  ;;  %381 = vmatpush1.bf16.msra.mxu0 %v6039_v24  ;;  %v160_v3 = vld [vmem:[#allocation5 + $0x10] sm:$0xff]  ;;  %v6100_v7 = vld [vmem:[#allocation11] ss:$8 sps:$4 sm:$0xff]   ;;  %v6108_v10 = vld [vmem:[#allocation11 + $0x24] ss:$8 sps:$4 sm:$0xff]   ;;  %s5411_s6 = sld [smem:[#allocation4 + $0x1]] }
  0xb3   :  { %382 = vmatprep.subr.bf16.mxu0 %v6043_v25  ;;  %v7263_v5 = vpack.c.bf16 %v160_v3, %v158_v2  ;;  %v6105_v8 = vld [vmem:[#allocation11 + $0x14] ss:$8 sps:$4 sm:$0xff]   ;;  %v6103_v9 = vld [vmem:[#allocation11 + $0x10] ss:$8 sps:$4 sm:$0xff]   ;;  %v6106_v11 = vld [vmem:[#allocation11 + $0x20] ss:$8 sps:$4 sm:$0xff]  }
  0xb4   :  { %v6111_v12 = vld [vmem:[#allocation11 + $0x34] ss:$8 sps:$4 sm:$0xff]   ;;  %v6109_v13 = vld [vmem:[#allocation11 + $0x30] ss:$8 sps:$4 sm:$0xff]   ;;  %v6114_v14 = vld [vmem:[#allocation11 + $0x44] ss:$8 sps:$4 sm:$0xff]  }
  0xb5   :  { %630 = vmatpush1.bf16.msra.mxu1 %v6042_v26  ;;  %v6112_v15 = vld [vmem:[#allocation11 + $0x40] ss:$8 sps:$4 sm:$0xff]   ;;  %v6117_v16 = vld [vmem:[#allocation11 + $0x54] ss:$8 sps:$4 sm:$0xff]   ;;  %v6115_v17 = vld [vmem:[#allocation11 + $0x50] ss:$8 sps:$4 sm:$0xff]  }
  0xb6   :  { %631 = vmatprep.subr.bf16.mxu1 %v6046_v27  ;;  %383 = vmatpush1.bf16.msra.mxu0 %v6045_v28  ;;  %v6120_v18 = vld [vmem:[#allocation11 + $0x64] ss:$8 sps:$4 sm:$0xff]   ;;  %v6118_v19 = vld [vmem:[#allocation11 + $0x60] ss:$8 sps:$4 sm:$0xff]   ;;  %v6123_v20 = vld [vmem:[#allocation11 + $0x74] ss:$8 sps:$4 sm:$0xff]  }
  0xb7   :  { %384 = vmatprep.subr.bf16.mxu0 %v6049_v29  ;;  %v6121_v21 = vld [vmem:[#allocation11 + $0x70] ss:$8 sps:$4 sm:$0xff]   ;;  %v6126_v22 = vld [vmem:[#allocation11 + $0x84] ss:$8 sps:$4 sm:$0xff]   ;;  %v6124_v23 = vld [vmem:[#allocation11 + $0x80] ss:$8 sps:$4 sm:$0xff]  }
  0xb8   :  { %v6129_v24 = vld [vmem:[#allocation11 + $0x94] ss:$8 sps:$4 sm:$0xff]   ;;  %v6127_v25 = vld [vmem:[#allocation11 + $0x90] ss:$8 sps:$4 sm:$0xff]   ;;  %v6132_v26 = vld [vmem:[#allocation11 + $0xa4] ss:$8 sps:$4 sm:$0xff]  }
  0xb9   :  { %632 = vmatpush1.bf16.msra.mxu1 %v6048_v30  ;;  %v6130_v27 = vld [vmem:[#allocation11 + $0xa0] ss:$8 sps:$4 sm:$0xff]   ;;  %v6135_v28 = vld [vmem:[#allocation11 + $0xb4] ss:$8 sps:$4 sm:$0xff]   ;;  %v6133_v29 = vld [vmem:[#allocation11 + $0xb0] ss:$8 sps:$4 sm:$0xff]  }
  0xba   :  { %633 = vmatprep.subr.bf16.mxu1 %v6052_v31  ;;  %385 = vmatpush1.bf16.msra.mxu0 %v6051_v32  ;;  %v6138_v30 = vld [vmem:[#allocation11 + $0xc4] ss:$8 sps:$4 sm:$0xff]   ;;  %v6136_v31 = vld [vmem:[#allocation11 + $0xc0] ss:$8 sps:$4 sm:$0xff]   ;;  %v6141_v32 = vld [vmem:[#allocation11 + $0xd4] ss:$8 sps:$4 sm:$0xff]  }
  0xbb   :  { %386 = vmatprep.subr.bf16.mxu0 %v6055_v33  ;;  %v6139_v33 = vld [vmem:[#allocation11 + $0xd0] ss:$8 sps:$4 sm:$0xff]   ;;  %vm962_vm3 = vcmask 64512   ;;  %s7750_s27 = sld [smem:[#allocation27_spill]]  ;;  %s5675_s24 = sld [smem:[#allocation4 + $0x1]] }
  0xbd   :  { %634 = vmatpush1.bf16.msra.mxu1 %v6054_v34  ;;  %v6144_v34 = vld [vmem:[#allocation11 + $0xe4] ss:$8 sps:$4 sm:$0xff]  }
  0xbe   :  { %635 = vmatprep.subr.bf16.mxu1 %v6058_v35  ;;  %387 = vmatpush1.bf16.msra.mxu0 %v6057_v36  ;;  %v6142_v35 = vld [vmem:[#allocation11 + $0xe0] ss:$8 sps:$4 sm:$0xff]   ;;  %v6147_v36 = vld [vmem:[#allocation11 + $0xf4] ss:$8 sps:$4 sm:$0xff]  }
  0xbf   :  { %388 = vmatprep.subr.bf16.mxu0 %v6061_v37  ;;  %v6145_v37 = vld [vmem:[#allocation11 + $0xf0] ss:$8 sps:$4 sm:$0xff]  }
  0xc1   :  { %636 = vmatpush1.bf16.msra.mxu1 %v6060_v38  ;;  %v7034_v38 = vmov 0.0  }
  0xc2   :  { %637 = vmatprep.subr.bf16.mxu1 %v6064_v39  ;;  %389 = vmatpush1.bf16.msra.mxu0 %v6063_v40  ;;  %v162_v39 = vlaneseq }
  0xc3   :  { %390 = vmatprep.subr.bf16.mxu0 %v6067_v41 }
  0xc4   :  { %v7275_v40 = vshrl.u32 %v162_v39, 7 }
  0xc5   :  { %638 = vmatpush1.bf16.msra.mxu1 %v6066_v42  ;;  %v445_v42 = vld [vmem:[%s7718_s5] sm:$0x3] }
  0xc6   :  { %639 = vmatprep.subr.bf16.mxu1 %v6070_v43  ;;  %391 = vmatpush1.bf16.msra.mxu0 %v6069_v44  ;;  %v7278_v41 = vsub.s32 0, %v7275_v40  ;;  %v7284_v43 = vsub.s32 1, %v7275_v40  ;;  %v198_v44 = vld [vmem:[%s7716_s3] sm:$0x3] }
  0xc7   :  { %392 = vmatprep.subr.bf16.mxu0 %v6073_v45 }
  0xc8   :  { %v450_v45 = vrot.slane %v445_v42, %v7278_v41  ;;  %v203_v46 = vrot.slane %v198_v44, %v7278_v41  ;;  %v454_v48 = vrot.slane %v445_v42, %v7284_v43 }
  0xc9   :  { %640 = vmatpush1.bf16.msra.mxu1 %v6072_v47 }
  0xca   :  { %641 = vmatprep.subr.bf16.mxu1 %v6076_v49  ;;  %393 = vmatpush1.bf16.msra.mxu0 %v6075_v51  ;;  %v207_v49 = vrot.slane %v198_v44, %v7284_v43 }
  0xcb   :  { %394 = vmatprep.subr.bf16.mxu0 %v6079_v52 }
  0xcd   :  { %642 = vmatpush1.bf16.msra.mxu1 %v6078_v53 }
  0xce   :  { %643 = vmatprep.subr.bf16.mxu1 %v6082_v54  ;;  %395 = vmatpush1.bf16.msra.mxu0 %v6081_v55 }
  0xcf   :  { %396 = vmatprep.subr.bf16.mxu0 %v6085_v56 }
  0xd1   :  { %644 = vmatpush1.bf16.msra.mxu1 %v6084_v57 }
  0xd2   :  { %645 = vmatprep.subr.bf16.mxu1 %v6088_v58  ;;  %397 = vmatpush1.bf16.msra.mxu0 %v6087_v59 }
  0xd3   :  { %398 = vmatprep.subr.bf16.mxu0 %v6091_v60 }
  0xd5   :  { %646 = vmatpush1.bf16.msra.mxu1 %v6090_v61 }
  0xd6   :  { %647 = vmatprep.subr.bf16.mxu1 %v6094_v62  ;;  %399 = vmatpush1.bf16.msra.mxu0 %v6093_v63 }
  0xd7   :  { %400 = vmatprep.subr.bf16.mxu0 %v6097_v1 }
  0xd9   :  { %648 = vmatpush1.bf16.msra.mxu1 %v6096_v0 }
  0xda   :  { %401 = vmatpush1.bf16.msra.mxu0 %v6099_v4  ;;  %5901 = vmatprep.subr.bf16.mxu1 %v7034_v38 }
  0xdb   :  { %864 = vmatprep.subr.bf16.mxu0 %v6102_v6 }
  0xdc   :  { %650 = vmatmul.mubr.bf16.vlgmr.msra.gmra.mrb[0].mxu1 %v7263_v5 }
  0xdd   :  { %403 = vmatmul.mubr.bf16.vlgmr.msra.gmra.mrb[0].mxu0 %v7263_v5  ;;  %5903 = vmatprep.mubr.msk.bf16.mxu1 %vm7035_vm0, %v7034_v38 }
  0xde   :  { %865 = vmatpush1.bf16.msra.mxu0 %v6100_v7  ;;  %896 = vmatprep.mubr.bf16.mxu0 %v165_v50 }
  0xdf   :  { %866 = vmatprep.subr.bf16.mxu0 %v6105_v8 }
  0xe2   :  { %867 = vmatpush1.bf16.msra.mxu0 %v6103_v9 }
  0xe3   :  { %868 = vmatprep.subr.bf16.mxu0 %v6108_v10 }
  0xe6   :  { %869 = vmatpush1.bf16.msra.mxu0 %v6106_v11  ;;  %v692_v11 = vld [vmem:[%s7720_s7] sm:$0x3] }
  0xe7   :  { %870 = vmatprep.subr.bf16.mxu0 %v6111_v12  ;;  %v697_v12 = vrot.slane %v692_v11, %v7278_v41 }
  0xea   :  { %871 = vmatpush1.bf16.msra.mxu0 %v6109_v13  ;;  %v701_v13 = vrot.slane %v692_v11, %v7284_v43 }
  0xeb   :  { %872 = vmatprep.subr.bf16.mxu0 %v6114_v14 }
  0xee   :  { %873 = vmatpush1.bf16.msra.mxu0 %v6112_v15 }
  0xef   :  { %874 = vmatprep.subr.bf16.mxu0 %v6117_v16 }
  0xf2   :  { %875 = vmatpush1.bf16.msra.mxu0 %v6115_v17 }
  0xf3   :  { %876 = vmatprep.subr.bf16.mxu0 %v6120_v18 }
  0xf6   :  { %877 = vmatpush1.bf16.msra.mxu0 %v6118_v19 }
  0xf7   :  { %878 = vmatprep.subr.bf16.mxu0 %v6123_v20 }
  0xfa   :  { %879 = vmatpush1.bf16.msra.mxu0 %v6121_v21 }
  0xfb   :  { %880 = vmatprep.subr.bf16.mxu0 %v6126_v22 }
  0xfe   :  { %881 = vmatpush1.bf16.msra.mxu0 %v6124_v23 }
  0xff   :  { %882 = vmatprep.subr.bf16.mxu0 %v6129_v24 }
 0x102   :  { %883 = vmatpush1.bf16.msra.mxu0 %v6127_v25 }
 0x103   :  { %884 = vmatprep.subr.bf16.mxu0 %v6132_v26 }
 0x106   :  { %885 = vmatpush1.bf16.msra.mxu0 %v6130_v27  ;;  %v7315_v27 = vand.u32 127, %v162_v39 }
 0x107   :  { %886 = vmatprep.subr.bf16.mxu0 %v6135_v28  ;;  %v919_v28 = vstv %s918_s20 }
 0x108   :  { %vm7318_vm2 = vcmp.lt.s32.totalorder %v7315_v27, %v919_v28 }
 0x10a   :  { %887 = vmatpush1.bf16.msra.mxu0 %v6133_v29  ;;  %v1125_v29 = vstv %s5411_s6 }
 0x10b   :  { %888 = vmatprep.subr.bf16.mxu0 %v6138_v30  ;;  %vm7323_vm4 = vcmp.lt.s32.totalorder %v7315_v27, %v1125_v29 }
 0x10e   :  { %889 = vmatpush1.bf16.msra.mxu0 %v6136_v31 }
 0x10f   :  { %890 = vmatprep.subr.bf16.mxu0 %v6141_v32 }
 0x112   :  { %891 = vmatpush1.bf16.msra.mxu0 %v6139_v33 }
 0x113   :  { %892 = vmatprep.subr.bf16.mxu0 %v6144_v34 }
 0x116   :  { %893 = vmatpush1.bf16.msra.mxu0 %v6142_v35 }
 0x117   :  { %894 = vmatprep.subr.bf16.mxu0 %v6147_v36 }
 0x11a   :  { %895 = vmatpush1.bf16.msra.mxu0 %v6145_v37 }
 0x11b   :  { %5877 = vmatprep.subr.bf16.mxu0 %v7034_v38 }
 0x11d   :  { %897 = vmatmul.mubr.bf16.vlgmr.msra.gmra.mrb[4].mxu0 %v7263_v5 }
 0x11e   :  { %5879 = vmatprep.mubr.msk.bf16.mxu0 %vm7035_vm0, %v7034_v38 }
 0x1af   :  { %v651_v47 = vpop.f32.mrb[0].mxu1 }
 0x1b0   :  { %v653_v50 = vpop.f32.mrb[1].mxu1  ;;  %v404_v51 = vpop.f32.mrb[0].mxu0  ;;  %v652_v53 = vadd.f32 %v651_v47, %v450_v45 }
 0x1b1   :  { %v655_v52 = vpop.f32.mrb[2].mxu1  ;;  %v405_v54 = vadd.f32 %v404_v51, %v203_v46  ;;  %v406_v56 = vpop.f32.mrb[1].mxu0  ;;  %v654_v58 = vadd.f32 %v653_v50, %v454_v48 }
 0x1b2   :  { %v656_v55 = vadd.f32 %v655_v52, %v450_v45  ;;  %v657_v57 = vpop.f32.mrb[3].mxu1  ;;  %v407_v59 = vadd.f32 %v406_v56, %v207_v49  ;;  %v408_v61 = vpop.f32.mrb[2].mxu0 }
 0x1b3   :  { %v658_v60 = vadd.f32 %v657_v57, %v454_v48  ;;  %v907_v62 = vmul.f32 0.088388346, %v405_v54  ;;  %v409_v0 = vadd.f32 %v408_v61, %v203_v46  ;;  %v410_v1 = vpop.f32.mrb[3].mxu0 }
 0x1b4   :  { %v913_v63 = vpack.c.bf16 %v656_v55, %v652_v53  ;;  %v908_v2 = vmul.f32 0.088388346, %v407_v59  ;;  %v411_v4 = vadd.f32 %v410_v1, %v207_v49 }
 0x1b5   :  { %v7293_v3 = vpack.c.bf16 %v658_v60, %v654_v58  ;;  %v909_v6 = vmul.f32 0.088388346, %v409_v0 }
 0x1b6   :  { %v1131_v5 = vrot.slane %v913_v63, 4  ;;  %5878 = vmatpush3.bf16.xpose.msra.mxu0 %v913_v63  ;;  %v910_v7 = vmul.f32 0.088388346, %v411_v4 }
 0x1b7   :  { %5883 = vmatprep.subr.bf16.mxu0 %v7034_v38  ;;  %v911_v8 = vpack.c.bf16 %v909_v6, %v907_v62 }
 0x1b8   :  { %5902 = vmatpush3.bf16.xpose.msra.mxu1 %v1131_v5  ;;  %v7296_v9 = vpack.c.bf16 %v910_v7, %v908_v2  ;;  %v1239_v2 = vrot.slane %v7293_v3, 4 }
 0x1b9   :  { %5907 = vmatprep.subr.bf16.mxu1 %v7034_v38  ;;  %v1128_v10 = vrot.slane %v911_v8, 4 }
 0x1bd   :  { %5880 = vmatmul.mubr.bf16.vlgmr.msra.gmra.mrb[8].mxu0 %v911_v8 }
 0x1be   :  { %5885 = vmatprep.mubr.msk.bf16.mxu0 %vm7035_vm0, %v7034_v38 }
 0x1bf   :  { %5904 = vmatmul.mubr.bf16.vlgmr.msra.gmra.mrb[4].mxu1 %v1128_v10 }
 0x1c0   :  { %5909 = vmatprep.mubr.msk.bf16.mxu1 %vm7035_vm0, %v7034_v38 }
 0x1f0   :  { %v898_v14 = vpop.f32.mrb[4].mxu0 }
 0x1f1   :  { %v899_v15 = vadd.f32 %v898_v14, %v697_v12  ;;  %v900_v16 = vpop.f32.mrb[5].mxu0 }
 0x1f2   :  { %v901_v17 = vadd.f32 %v900_v16, %v701_v13  ;;  %v902_v18 = vpop.f32.mrb[6].mxu0 }
 0x1f3   :  { %v903_v19 = vadd.f32 %v902_v18, %v697_v12  ;;  %v904_v20 = vpop.f32.mrb[7].mxu0 }
 0x1f4   :  { %v905_v21 = vadd.f32 %v904_v20, %v701_v13 }
 0x1f5   :  { %v915_v22 = vpack.c.bf16 %v903_v19, %v899_v15 }
 0x1f6   :  { %v7308_v23 = vpack.c.bf16 %v905_v21, %v901_v17 }
 0x1f7   :  { %v980_v24 = vsel %vm978_vm1, %v915_v22, 0  ;;  %v1187_v25 = vrot.slane %v915_v22, 4 }
 0x1f8   :  { %5884 = vmatpush3.bf16.msra.mxu0 %v980_v24  ;;  %v1295_v4 = vrot.slane %v7308_v23, 4  ;;  %v1080_v5 = vsel %vm978_vm1, %v7308_v23, 0 }
 0x1f9   :  { %5889 = vmatprep.subr.bf16.mxu0 %v7034_v38  ;;  %v1192_v26 = vsel %vm978_vm1, %v1187_v25, 0 }
 0x1fa   :  { %5908 = vmatpush3.bf16.msra.mxu1 %v1192_v26  ;;  %v1300_v6 = vsel %vm978_vm1, %v1295_v4, 0  ;;  %v6174_v4 = vld [vmem:[#allocation13 + $0x84] ss:$8 sps:$4 sm:$0xff]  }
 0x1fb   :  { %5913 = vmatprep.subr.bf16.mxu1 %v7034_v38 }
 0x290   :  { %v955_v31 = vpop.f32.mrb[8].mxu0 }
 0x291   :  { %v961_v33 = vsel %vm7318_vm2, %v955_v31, -1000000.0  ;;  %v5881_v34 = vpop.f32.mrb[9].mxu0 }
 0x292   :  { %v958_v35 = vpop.f32.mrb[10].mxu0  ;;  %v1167_v36 = vpop.f32.mrb[4].mxu1  ;;  %v963_v37 = vsel %vm962_vm3, %v961_v33, -inf }
 0x293   :  { %v1173_v39 = vsel %vm7323_vm4, %v1167_v36, -1000000.0  ;;  %v5905_v42 = vpop.f32.mrb[5].mxu1  ;;  %964 = vmax.xlane.f32.xlu0 %v963_v37  ;;  %v5882_v44 = vpop.f32.mrb[11].mxu0 }
 0x294   :  { %v1170_v45 = vpop.f32.mrb[6].mxu1  ;;  %v1174_v47 = vsel %vm962_vm3, %v1173_v39, -inf  ;;  %v6150_v42 = vld [vmem:[#allocation13 + $0x4] ss:$8 sps:$4 sm:$0xff]  }
 0x295   :  { %v5906_v46 = vpop.f32.mrb[7].mxu1 }
 0x297   :  { %1175 = vmax.xlane.f32.xlu0 %v1174_v47 }
 0x320   :  { %v965_v48 = vpop.xlane.xlu0 %964 }
 0x321   :  { %v966_v49 = vsub.f32 %v961_v33, %v965_v48  ;;  %v6148_v48 = vld [vmem:[#allocation13] ss:$8 sps:$4 sm:$0xff]  }
 0x323   :  { %v967_v50 = vmul.f32 1.442695, %v966_v49 }
 0x324   :  { %v1176_v51 = vpop.xlane.xlu0 %1175 }
 0x325   :  { %6772 = vpow2.f32 %v967_v50  ;;  %v1177_v52 = vsub.f32 %v1173_v39, %v1176_v51  ;;  %v6153_v50 = vld [vmem:[#allocation13 + $0x14] ss:$8 sps:$4 sm:$0xff]  }
 0x327   :  { %v1178_v53 = vmul.f32 1.442695, %v1177_v52 }
 0x329   :  { %6774 = vpow2.f32 %v1178_v53  ;;  %v6151_v53 = vld [vmem:[#allocation13 + $0x10] ss:$8 sps:$4 sm:$0xff]  }
 0x32f   :  { %v6773_v54 = vpop.eup %6772 }
 0x330   :  { %v969_v55 = vsel %vm962_vm3, %v6773_v54, 0.0 }
 0x331   :  { %970 = vadd.xlane.f32.xlu1 %v969_v55  ;;  %v6156_v55 = vld [vmem:[#allocation13 + $0x24] ss:$8 sps:$4 sm:$0xff]  }
 0x333   :  { %v6775_v56 = vpop.eup %6774 }
 0x334   :  { %v1180_v57 = vsel %vm962_vm3, %v6775_v56, 0.0 }
 0x335   :  { %1181 = vadd.xlane.f32.xlu1 %v1180_v57  ;;  %v6159_v57 = vld [vmem:[#allocation13 + $0x34] ss:$8 sps:$4 sm:$0xff]  }
 0x3be   :  { %v971_v58 = vpop.xlane.xlu1 %970 }
 0x3bf   :  { %6776 = vrcp.f32 %v971_v58  ;;  %v6157_v58 = vld [vmem:[#allocation13 + $0x30] ss:$8 sps:$4 sm:$0xff]  }
 0x3c2   :  { %v1182_v59 = vpop.xlane.xlu1 %1181 }
 0x3c3   :  { %6778 = vrcp.f32 %v1182_v59  ;;  %v6162_v59 = vld [vmem:[#allocation13 + $0x44] ss:$8 sps:$4 sm:$0xff]  }
 0x3c9   :  { %v6777_v60 = vpop.eup %6776 }
 0x3ca   :  { %v973_v61 = vmul.f32 %v6777_v60, %v6773_v54  ;;  %v6160_v60 = vld [vmem:[#allocation13 + $0x40] ss:$8 sps:$4 sm:$0xff]  }
 0x3cc   :  { %v974_v62 = vpack.c.bf16 %v973_v61, %v973_v61  ;;  %v6165_v61 = vld [vmem:[#allocation13 + $0x54] ss:$8 sps:$4 sm:$0xff]  }
 0x3cd   :  { %v6779_v63 = vpop.eup %6778 }
 0x3ce   :  { %v1184_v0 = vmul.f32 %v6779_v63, %v6775_v56  ;;  %5886 = vmatmul.mubr.msk.bf16.vlgmr.msra.gmra.mrb[12].mxu0 %vm962_vm3, %v974_v62  ;;  %v6154_v56 = vld [vmem:[#allocation13 + $0x20] ss:$8 sps:$4 sm:$0xff]   ;;  %v6163_v62 = vld [vmem:[#allocation13 + $0x50] ss:$8 sps:$4 sm:$0xff]   ;;  %v6168_v63 = vld [vmem:[#allocation13 + $0x64] ss:$8 sps:$4 sm:$0xff]  }
 0x3cf   :  { %5890 = vmatpush3.bf16.xpose.msra.mxu0 %v7293_v3  ;;  %5891 = vmatprep.mubr.msk.bf16.mxu0 %vm7035_vm0, %v7034_v38  ;;  %v1236_v3 = vrot.slane %v7296_v9, 4 }
 0x3d0   :  { %v1185_v1 = vpack.c.bf16 %v1184_v0, %v1184_v0  ;;  %5895 = vmatprep.subr.bf16.mxu0 %v7034_v38  ;;  %v6166_v0 = vld [vmem:[#allocation13 + $0x60] ss:$8 sps:$4 sm:$0xff]  }
 0x3d2   :  { %5910 = vmatmul.mubr.msk.bf16.vlgmr.msra.gmra.mrb[8].mxu1 %vm962_vm3, %v1185_v1  ;;  %v6171_v1 = vld [vmem:[#allocation13 + $0x74] ss:$8 sps:$4 sm:$0xff]  }
 0x3d3   :  { %5914 = vmatpush3.bf16.xpose.msra.mxu1 %v1239_v2  ;;  %5915 = vmatprep.mubr.msk.bf16.mxu1 %vm7035_vm0, %v7034_v38  ;;  %v6169_v2 = vld [vmem:[#allocation13 + $0x70] ss:$8 sps:$4 sm:$0xff]  }
 0x3d4   :  { %5919 = vmatprep.subr.bf16.mxu1 %v7034_v38 }
 0x3d6   :  { %5892 = vmatmul.mubr.bf16.vlgmr.msra.gmra.mrb[16].mxu0 %v7296_v9 }
 0x3d7   :  { %5896 = vmatpush3.bf16.msra.mxu0 %v1080_v5  ;;  %5897 = vmatprep.mubr.msk.bf16.mxu0 %vm7035_vm0, %v7034_v38  ;;  %v6172_v5 = vld [vmem:[#allocation13 + $0x80] ss:$8 sps:$4 sm:$0xff]  }
 0x3d8   :  { %1553 = vmatprep.subr.bf16.mxu0 %v6150_v42 }
 0x3da   :  { %5916 = vmatmul.mubr.bf16.vlgmr.msra.gmra.mrb[12].mxu1 %v1236_v3  ;;  %v6177_v3 = vld [vmem:[#allocation13 + $0x94] ss:$8 sps:$4 sm:$0xff]  }
 0x3db   :  { %5920 = vmatpush3.bf16.msra.mxu1 %v1300_v6  ;;  %5921 = vmatprep.mubr.msk.bf16.mxu1 %vm7035_vm0, %v7034_v38  ;;  %v6175_v6 = vld [vmem:[#allocation13 + $0x90] ss:$8 sps:$4 sm:$0xff]  }
 0x4a1   :  { %v7355_v7 = vpop.f32.mrb[12].mxu0 }
 0x4a2   :  { %v5887_v8 = vpop.f32.mrb[13].mxu0 }
 0x4a3   :  { %v1019_v10 = vpop.f32.mrb[14].mxu0  ;;  %v6180_v8 = vld [vmem:[#allocation13 + $0xa4] ss:$8 sps:$4 sm:$0xff]  }
 0x4a4   :  { %v5888_v11 = vpop.f32.mrb[15].mxu0  ;;  %v6178_v10 = vld [vmem:[#allocation13 + $0xa0] ss:$8 sps:$4 sm:$0xff]  }
 0x4a5   :  { %v7357_v12 = vpop.f32.mrb[8].mxu1  ;;  %v6183_v11 = vld [vmem:[#allocation13 + $0xb4] ss:$8 sps:$4 sm:$0xff]  }
 0x4a6   :  { %v1347_v13 = vpack.c.bf16 %v7357_v12, %v7355_v7  ;;  %v5911_v14 = vpop.f32.mrb[9].mxu1  ;;  %v6821_v7 = vld [vmem:[#allocation5 + $0x8] sm:$0xff] }
 0x4a7   :  { %v1231_v15 = vpop.f32.mrb[10].mxu1  ;;  %v6181_v14 = vld [vmem:[#allocation13 + $0xb0] ss:$8 sps:$4 sm:$0xff]  }
 0x4a8   :  { %v5912_v9 = vpop.f32.mrb[11].mxu1  ;;  %v6186_v15 = vld [vmem:[#allocation13 + $0xc4] ss:$8 sps:$4 sm:$0xff]  }
 0x4a9   :  { %v1057_v16 = vpop.f32.mrb[16].mxu0  ;;  %v6184_v9 = vld [vmem:[#allocation13 + $0xc0] ss:$8 sps:$4 sm:$0xff]  }
 0x4aa   :  { %v1063_v17 = vsel %vm7318_vm2, %v1057_v16, -1000000.0  ;;  %v5893_v18 = vpop.f32.mrb[17].mxu0  ;;  %v6189_v16 = vld [vmem:[#allocation13 + $0xd4] ss:$8 sps:$4 sm:$0xff]  }
 0x4ab   :  { %v1060_v19 = vpop.f32.mrb[18].mxu0  ;;  %v1064_v20 = vsel %vm962_vm3, %v1063_v17, -inf  ;;  %v6192_v18 = vld [vmem:[#allocation13 + $0xe4] ss:$8 sps:$4 sm:$0xff]  }
 0x4ac   :  { %1065 = vmax.xlane.f32.xlu0 %v1064_v20  ;;  %v5894_v21 = vpop.f32.mrb[19].mxu0  ;;  %v6190_v19 = vld [vmem:[#allocation13 + $0xe0] ss:$8 sps:$4 sm:$0xff]   ;;  %v6195_v20 = vld [vmem:[#allocation13 + $0xf4] ss:$8 sps:$4 sm:$0xff]  }
 0x4ad   :  { %v1275_v22 = vpop.f32.mrb[12].mxu1  ;;  %v6193_v21 = vld [vmem:[#allocation13 + $0xf0] ss:$8 sps:$4 sm:$0xff]  }
 0x4ae   :  { %v1281_v23 = vsel %vm7323_vm4, %v1275_v22, -1000000.0  ;;  %v5917_v24 = vpop.f32.mrb[13].mxu1 }
 0x4af   :  { %v1278_v25 = vpop.f32.mrb[14].mxu1  ;;  %v1282_v26 = vsel %vm962_vm3, %v1281_v23, -inf }
 0x4b0   :  { %1283 = vmax.xlane.f32.xlu1 %v1282_v26  ;;  %v5918_v28 = vpop.f32.mrb[15].mxu1 }
 0x539   :  { %v1066_v29 = vpop.xlane.xlu0 %1065 }
 0x53a   :  { %v1067_v31 = vsub.f32 %v1063_v17, %v1066_v29  ;;  %v6187_v17 = vld [vmem:[#allocation13 + $0xd0] ss:$8 sps:$4 sm:$0xff]  }
 0x53c   :  { %v1068_v30 = vmul.f32 1.442695, %v1067_v31 }
 0x53d   :  { %v1284_v33 = vpop.xlane.xlu1 %1283 }
 0x53e   :  { %6780 = vpow2.f32 %v1068_v30  ;;  %v1285_v34 = vsub.f32 %v1281_v23, %v1284_v33  ;;  %v1381_v33 = vld [vmem:[%s7722_s9] sm:$0x3] }
 0x540   :  { %v1286_v35 = vmul.f32 1.442695, %v1285_v34  ;;  %v1386_v34 = vrot.slane %v1381_v33, %v7278_v41 }
 0x542   :  { %6782 = vpow2.f32 %v1286_v35  ;;  %v1390_v35 = vrot.slane %v1381_v33, %v7284_v43  ;;  %v6250_v33 = vld [vmem:[#allocation14 + $0x120] ss:$16 sps:$4 sm:$0xff]  }
 0x548   :  { %v6781_v36 = vpop.eup %6780 }
 0x549   :  { %v1070_v37 = vsel %vm962_vm3, %v6781_v36, 0.0 }
 0x54a   :  { %1071 = vadd.xlane.f32.xlu0 %v1070_v37 }
 0x54c   :  { %v6783_v32 = vpop.eup %6782 }
 0x54d   :  { %v1288_v39 = vsel %vm962_vm3, %v6783_v32, 0.0 }
 0x54e   :  { %1289 = vadd.xlane.f32.xlu1 %v1288_v39 }
 0x5d7   :  { %v1072_v44 = vpop.xlane.xlu0 %1071 }
 0x5d8   :  { %6784 = vrcp.f32 %v1072_v44  ;;  %v6820_v44 = vld [vmem:[#allocation5] sm:$0xff] }
 0x5db   :  { %v1290_v45 = vpop.xlane.xlu1 %1289 }
 0x5dc   :  { %6786 = vrcp.f32 %v1290_v45 }
 0x5e2   :  { %v6785_v46 = vpop.eup %6784 }
 0x5e3   :  { %v1074_v47 = vmul.f32 %v6785_v46, %v6781_v36 }
 0x5e5   :  { %v1075_v49 = vpack.c.bf16 %v1074_v47, %v1074_v47 }
 0x5e6   :  { %v6787_v51 = vpop.eup %6786 }
 0x5e7   :  { %v1292_v52 = vmul.f32 %v6787_v51, %v6783_v32  ;;  %5898 = vmatmul.mubr.msk.bf16.vlgmr.msra.gmra.mrb[20].mxu0 %vm962_vm3, %v1075_v49 }
 0x5e8   :  { %1554 = vmatpush1.bf16.msra.mxu0 %v6148_v48  ;;  %v6822_v48 = vld [vmem:[#allocation5 + $0x10] sm:$0xff] }
 0x5e9   :  { %v1293_v54 = vpack.c.bf16 %v1292_v52, %v1292_v52  ;;  %1555 = vmatprep.subr.bf16.mxu0 %v6153_v50  ;;  %v6823_v50 = vld [vmem:[#allocation5 + $0x18] sm:$0xff] }
 0x5eb   :  { %5922 = vmatmul.mubr.msk.bf16.vlgmr.msra.gmra.mrb[16].mxu1 %vm962_vm3, %v1293_v54  ;;  %v6196_v54 = vld [vmem:[#allocation14] ss:$16 sps:$4 sm:$0xff]  }
 0x5ec   :  { %1556 = vmatpush1.bf16.msra.mxu0 %v6151_v53 }
 0x5ed   :  { %1557 = vmatprep.subr.bf16.mxu0 %v6156_v55  ;;  %v6198_v55 = vld [vmem:[#allocation14 + $0x4] ss:$16 sps:$4 sm:$0xff]  }
 0x5ee   :  { %2073 = vmatprep.subr.bf16.mxu1 %v6198_v55  ;;  %v6262_v55 = vld [vmem:[#allocation14 + $0x160] ss:$16 sps:$4 sm:$0xff]  }
 0x5ef   :  { %2074 = vmatpush1.bf16.msra.mxu1 %v6196_v54  ;;  %v6267_v54 = vld [vmem:[#allocation14 + $0x16c] ss:$16 sps:$4 sm:$0xff]  }
 0x5f0   :  { %1558 = vmatpush1.bf16.msra.mxu0 %v6154_v56  ;;  %v6199_v56 = vld [vmem:[#allocation14 + $0x8] ss:$16 sps:$4 sm:$0xff]  }
 0x5f1   :  { %1559 = vmatprep.subr.bf16.mxu0 %v6159_v57  ;;  %v6201_v57 = vld [vmem:[#allocation14 + $0xc] ss:$16 sps:$4 sm:$0xff]  }
 0x5f4   :  { %1560 = vmatpush1.bf16.msra.mxu0 %v6157_v58  ;;  %v6204_v58 = vld [vmem:[#allocation14 + $0x24] ss:$16 sps:$4 sm:$0xff]  }
 0x5f5   :  { %1561 = vmatprep.subr.bf16.mxu0 %v6162_v59  ;;  %v6207_v59 = vld [vmem:[#allocation14 + $0x2c] ss:$16 sps:$4 sm:$0xff]   ;;  %2075 = vmatprep.subr.bf16.mxu1 %v6204_v58 }
 0x5f6   :  { %v6273_v58 = vld [vmem:[#allocation14 + $0x18c] ss:$16 sps:$4 sm:$0xff]  }
 0x5f8   :  { %1562 = vmatpush1.bf16.msra.mxu0 %v6160_v60  ;;  %v6202_v60 = vld [vmem:[#allocation14 + $0x20] ss:$16 sps:$4 sm:$0xff]  }
 0x5f9   :  { %1563 = vmatprep.subr.bf16.mxu0 %v6165_v61  ;;  %v6205_v61 = vld [vmem:[#allocation14 + $0x28] ss:$16 sps:$4 sm:$0xff]   ;;  %2076 = vmatpush1.bf16.msra.mxu1 %v6202_v60 }
 0x5fa   :  { %v6271_v60 = vld [vmem:[#allocation14 + $0x188] ss:$16 sps:$4 sm:$0xff]  }
 0x5fc   :  { %1564 = vmatpush1.bf16.msra.mxu0 %v6163_v62  ;;  %v6210_v62 = vld [vmem:[#allocation14 + $0x44] ss:$16 sps:$4 sm:$0xff]  }
 0x5fd   :  { %1565 = vmatprep.subr.bf16.mxu0 %v6168_v63  ;;  %v6213_v63 = vld [vmem:[#allocation14 + $0x4c] ss:$16 sps:$4 sm:$0xff]   ;;  %2077 = vmatprep.subr.bf16.mxu1 %v6210_v62 }
 0x5fe   :  { %v6279_v62 = vld [vmem:[#allocation14 + $0x1ac] ss:$16 sps:$4 sm:$0xff]  }
 0x600   :  { %1566 = vmatpush1.bf16.msra.mxu0 %v6166_v0  ;;  %v6208_v0 = vld [vmem:[#allocation14 + $0x40] ss:$16 sps:$4 sm:$0xff]  }
 0x601   :  { %1567 = vmatprep.subr.bf16.mxu0 %v6171_v1  ;;  %v6211_v1 = vld [vmem:[#allocation14 + $0x48] ss:$16 sps:$4 sm:$0xff]   ;;  %2078 = vmatpush1.bf16.msra.mxu1 %v6208_v0 }
 0x602   :  { %v6277_v0 = vld [vmem:[#allocation14 + $0x1a8] ss:$16 sps:$4 sm:$0xff]  }
 0x604   :  { %1568 = vmatpush1.bf16.msra.mxu0 %v6169_v2  ;;  %v6216_v2 = vld [vmem:[#allocation14 + $0x64] ss:$16 sps:$4 sm:$0xff]  }
 0x605   :  { %1569 = vmatprep.subr.bf16.mxu0 %v6174_v4  ;;  %v6219_v4 = vld [vmem:[#allocation14 + $0x6c] ss:$16 sps:$4 sm:$0xff]   ;;  %2079 = vmatprep.subr.bf16.mxu1 %v6216_v2  ;;  %v6282_v2 = vld [vmem:[#allocation14 + $0x1c4] ss:$16 sps:$4 sm:$0xff]  }
 0x608   :  { %1570 = vmatpush1.bf16.msra.mxu0 %v6172_v5  ;;  %v6214_v5 = vld [vmem:[#allocation14 + $0x60] ss:$16 sps:$4 sm:$0xff]  }
 0x609   :  { %1571 = vmatprep.subr.bf16.mxu0 %v6177_v3  ;;  %v6217_v3 = vld [vmem:[#allocation14 + $0x68] ss:$16 sps:$4 sm:$0xff]   ;;  %2080 = vmatpush1.bf16.msra.mxu1 %v6214_v5  ;;  %v6285_v5 = vld [vmem:[#allocation14 + $0x1cc] ss:$16 sps:$4 sm:$0xff]  }
 0x60c   :  { %1572 = vmatpush1.bf16.msra.mxu0 %v6175_v6  ;;  %v6222_v6 = vld [vmem:[#allocation14 + $0x84] ss:$16 sps:$4 sm:$0xff]  }
 0x60d   :  { %1573 = vmatprep.subr.bf16.mxu0 %v6180_v8  ;;  %v6225_v8 = vld [vmem:[#allocation14 + $0x8c] ss:$16 sps:$4 sm:$0xff]   ;;  %2081 = vmatprep.subr.bf16.mxu1 %v6222_v6 }
 0x60e   :  { %v6291_v6 = vld [vmem:[#allocation14 + $0x1ec] ss:$16 sps:$4 sm:$0xff]  }
 0x610   :  { %1574 = vmatpush1.bf16.msra.mxu0 %v6178_v10  ;;  %v6220_v10 = vld [vmem:[#allocation14 + $0x80] ss:$16 sps:$4 sm:$0xff]  }
 0x611   :  { %1575 = vmatprep.subr.bf16.mxu0 %v6183_v11  ;;  %v6223_v11 = vld [vmem:[#allocation14 + $0x88] ss:$16 sps:$4 sm:$0xff]   ;;  %2082 = vmatpush1.bf16.msra.mxu1 %v6220_v10 }
 0x612   :  { %v6289_v10 = vld [vmem:[#allocation14 + $0x1e8] ss:$16 sps:$4 sm:$0xff]  }
 0x614   :  { %1576 = vmatpush1.bf16.msra.mxu0 %v6181_v14  ;;  %v6228_v14 = vld [vmem:[#allocation14 + $0xa4] ss:$16 sps:$4 sm:$0xff]  }
 0x615   :  { %1577 = vmatprep.subr.bf16.mxu0 %v6186_v15  ;;  %v6231_v15 = vld [vmem:[#allocation14 + $0xac] ss:$16 sps:$4 sm:$0xff]   ;;  %2083 = vmatprep.subr.bf16.mxu1 %v6228_v14 }
 0x618   :  { %1578 = vmatpush1.bf16.msra.mxu0 %v6184_v9  ;;  %v6226_v9 = vld [vmem:[#allocation14 + $0xa0] ss:$16 sps:$4 sm:$0xff]  }
 0x619   :  { %1579 = vmatprep.subr.bf16.mxu0 %v6189_v16  ;;  %v6229_v16 = vld [vmem:[#allocation14 + $0xa8] ss:$16 sps:$4 sm:$0xff]   ;;  %2084 = vmatpush1.bf16.msra.mxu1 %v6226_v9 }
 0x61c   :  { %1580 = vmatpush1.bf16.msra.mxu0 %v6187_v17  ;;  %v6234_v17 = vld [vmem:[#allocation14 + $0xc4] ss:$16 sps:$4 sm:$0xff]  }
 0x61d   :  { %1581 = vmatprep.subr.bf16.mxu0 %v6192_v18  ;;  %v6237_v18 = vld [vmem:[#allocation14 + $0xcc] ss:$16 sps:$4 sm:$0xff]   ;;  %2085 = vmatprep.subr.bf16.mxu1 %v6234_v17 }
 0x620   :  { %1582 = vmatpush1.bf16.msra.mxu0 %v6190_v19  ;;  %v6232_v19 = vld [vmem:[#allocation14 + $0xc0] ss:$16 sps:$4 sm:$0xff]  }
 0x621   :  { %1583 = vmatprep.subr.bf16.mxu0 %v6195_v20  ;;  %v6235_v20 = vld [vmem:[#allocation14 + $0xc8] ss:$16 sps:$4 sm:$0xff]   ;;  %2086 = vmatpush1.bf16.msra.mxu1 %v6232_v19  ;;  %v1600_v19 = vld [vmem:[%s7723_s10] sm:$0x3] }
 0x624   :  { %1584 = vmatpush1.bf16.msra.mxu0 %v6193_v21  ;;  %v6240_v21 = vld [vmem:[#allocation14 + $0xe4] ss:$16 sps:$4 sm:$0xff]  }
 0x625   :  { %2116 = vmatprep.subr.bf16.mxu0 %v6201_v57  ;;  %2087 = vmatprep.subr.bf16.mxu1 %v6240_v21  ;;  %v6270_v57 = vld [vmem:[#allocation14 + $0x184] ss:$16 sps:$4 sm:$0xff]   ;;  %v1639_v21 = vrot.slane %v1600_v19, %v7278_v41 }
 0x6ba   :  { %v1116_v22 = vpop.f32.mrb[20].mxu0 }
 0x6bb   :  { %v5899_v23 = vpop.f32.mrb[21].mxu0 }
 0x6bc   :  { %v1119_v24 = vpop.f32.mrb[22].mxu0  ;;  %v6238_v23 = vld [vmem:[#allocation14 + $0xe0] ss:$16 sps:$4 sm:$0xff]  }
 0x6bd   :  { %v5900_v25 = vpop.f32.mrb[23].mxu0  ;;  %v6241_v24 = vld [vmem:[#allocation14 + $0xe8] ss:$16 sps:$4 sm:$0xff]   ;;  %2088 = vmatpush1.bf16.msra.mxu1 %v6238_v23 }
 0x6be   :  { %v1336_v26 = vpop.f32.mrb[16].mxu1  ;;  %v6246_v25 = vld [vmem:[#allocation14 + $0x104] ss:$16 sps:$4 sm:$0xff]  }
 0x6bf   :  { %v1348_v28 = vpack.c.bf16 %v1336_v26, %v1116_v22  ;;  %v5923_v29 = vpop.f32.mrb[17].mxu1  ;;  %v6243_v22 = vld [vmem:[#allocation14 + $0xec] ss:$16 sps:$4 sm:$0xff]   ;;  %2089 = vmatprep.subr.bf16.mxu1 %v6246_v25 }
 0x6c0   :  { %v1339_v31 = vpop.f32.mrb[18].mxu1  ;;  %v6249_v26 = vld [vmem:[#allocation14 + $0x10c] ss:$16 sps:$4 sm:$0xff]   ;;  %v6247_v29 = vld [vmem:[#allocation14 + $0x108] ss:$16 sps:$4 sm:$0xff]  }
 0x6c1   :  { %v5924_v30 = vpop.f32.mrb[19].mxu1  ;;  %1585 = vmatprep.mubr.bf16.mxu0 %v1348_v28  ;;  %v6244_v28 = vld [vmem:[#allocation14 + $0x100] ss:$16 sps:$4 sm:$0xff]   ;;  %v6252_v31 = vld [vmem:[#allocation14 + $0x124] ss:$16 sps:$4 sm:$0xff]  }
 0x6c2   :  { %1586 = vmatmul.mubr.bf16.vlgmr.msra.gmra.mrb[24].mxu0 %v1347_v13  ;;  %v6255_v30 = vld [vmem:[#allocation14 + $0x12c] ss:$16 sps:$4 sm:$0xff]   ;;  %2090 = vmatpush1.bf16.msra.mxu1 %v6244_v28 }
 0x6c3   :  { %2117 = vmatpush1.bf16.msra.mxu0 %v6199_v56  ;;  %2091 = vmatprep.subr.bf16.mxu1 %v6252_v31  ;;  %v6265_v56 = vld [vmem:[#allocation14 + $0x168] ss:$16 sps:$4 sm:$0xff]  }
 0x6c4   :  { %2118 = vmatprep.subr.bf16.mxu0 %v6207_v59  ;;  %v6268_v59 = vld [vmem:[#allocation14 + $0x180] ss:$16 sps:$4 sm:$0xff]  }
 0x6c6   :  { %2092 = vmatpush1.bf16.msra.mxu1 %v6250_v33 }
 0x6c7   :  { %2119 = vmatpush1.bf16.msra.mxu0 %v6205_v61  ;;  %v6276_v61 = vld [vmem:[#allocation14 + $0x1a4] ss:$16 sps:$4 sm:$0xff]  }
 0x6c8   :  { %2120 = vmatprep.subr.bf16.mxu0 %v6213_v63  ;;  %v6274_v63 = vld [vmem:[#allocation14 + $0x1a0] ss:$16 sps:$4 sm:$0xff]  }
 0x6cb   :  { %2121 = vmatpush1.bf16.msra.mxu0 %v6211_v1  ;;  %v6280_v1 = vld [vmem:[#allocation14 + $0x1c0] ss:$16 sps:$4 sm:$0xff]  }
 0x6cc   :  { %2122 = vmatprep.subr.bf16.mxu0 %v6219_v4  ;;  %v6283_v4 = vld [vmem:[#allocation14 + $0x1c8] ss:$16 sps:$4 sm:$0xff]  }
 0x6cf   :  { %2123 = vmatpush1.bf16.msra.mxu0 %v6217_v3  ;;  %v6288_v3 = vld [vmem:[#allocation14 + $0x1e4] ss:$16 sps:$4 sm:$0xff]  }
 0x6d0   :  { %2124 = vmatprep.subr.bf16.mxu0 %v6225_v8  ;;  %v6286_v8 = vld [vmem:[#allocation14 + $0x1e0] ss:$16 sps:$4 sm:$0xff]  }
 0x6d3   :  { %2125 = vmatpush1.bf16.msra.mxu0 %v6223_v11  ;;  %v6294_v11 = vld [vmem:[#allocation16 + $0x4] ss:$8 sps:$4 sm:$0xff]  }
 0x6d4   :  { %2126 = vmatprep.subr.bf16.mxu0 %v6231_v15 }
 0x6d7   :  { %2127 = vmatpush1.bf16.msra.mxu0 %v6229_v16 }
 0x6d8   :  { %2128 = vmatprep.subr.bf16.mxu0 %v6237_v18 }
 0x6db   :  { %2129 = vmatpush1.bf16.msra.mxu0 %v6235_v20  ;;  %v1601_v20 = vld [vmem:[%s7750_s27] sm:$0x3] }
 0x6dc   :  { %2130 = vmatprep.subr.bf16.mxu0 %v6243_v22  ;;  %v1643_v22 = vrot.slane %v1600_v19, %v7284_v43  ;;  %v1654_v28 = vrot.slane %v1601_v20, %v7278_v41 }
 0x6df   :  { %2131 = vmatpush1.bf16.msra.mxu0 %v6241_v24 }
 0x6e0   :  { %2132 = vmatprep.subr.bf16.mxu0 %v6249_v26 }
 0x6e3   :  { %2133 = vmatpush1.bf16.msra.mxu0 %v6247_v29  ;;  %v1658_v29 = vrot.slane %v1601_v20, %v7284_v43 }
 0x6e4   :  { %2134 = vmatprep.subr.bf16.mxu0 %v6255_v30 }
 0x795   :  { %v1587_v36 = vpop.f32.mrb[24].mxu0 }
 0x796   :  { %v1588_v37 = vadd.f32 %v1587_v36, %v1386_v34  ;;  %v1589_v32 = vpop.f32.mrb[25].mxu0 }
 0x797   :  { %v1590_v39 = vadd.f32 %v1589_v32, %v1390_v35  ;;  %v1591_v42 = vpop.f32.mrb[26].mxu0 }
 0x798   :  { %v7379_v45 = vadd.f32 %v6820_v44, %v1588_v37  ;;  %v1592_v46 = vadd.f32 %v1591_v42, %v1386_v34  ;;  %v1593_v47 = vpop.f32.mrb[27].mxu0  ;;  %v6253_v34 = vld [vmem:[#allocation14 + $0x128] ss:$16 sps:$4 sm:$0xff]  }
 0x799   :  { %v7381_v12 = vadd.f32 %v6821_v7, %v1590_v39  ;;  %v1594_v13 = vadd.f32 %v1593_v47, %v1390_v35  ;;  %2135 = vmatpush1.bf16.msra.mxu0 %v6253_v34 }
 0x79a   :  { %v7383_v49 = vadd.f32 %v6822_v48, %v1592_v46 }
 0x79b   :  { %v7385_v51 = vadd.f32 %v6823_v50, %v1594_v13  ;;  %v1602_v52 = vadd.f32 %v7381_v12, %v7379_v45  ;;  %v6261_v50 = vld [vmem:[#allocation14 + $0x14c] ss:$16 sps:$4 sm:$0xff]  }
 0x79c   :  { %2136 = vmatprep.subr.bf16.mxu0 %v6261_v50  ;;  %v6306_v50 = vld [vmem:[#allocation16 + $0x44] ss:$8 sps:$4 sm:$0xff]  }
 0x79d   :  { %1603 = vadd.xlane.f32.xlu0 %v1602_v52  ;;  %v1605_v53 = vadd.f32 %v7385_v51, %v7383_v49  ;;  %v6259_v52 = vld [vmem:[#allocation14 + $0x148] ss:$16 sps:$4 sm:$0xff]  }
 0x79e   :  { %2137 = vmatpush1.bf16.msra.mxu0 %v6259_v52  ;;  %v6309_v52 = vld [vmem:[#allocation16 + $0x54] ss:$8 sps:$4 sm:$0xff]  }
 0x79f   :  { %1606 = vadd.xlane.f32.xlu1 %v1605_v53  ;;  %v6264_v53 = vld [vmem:[#allocation14 + $0x164] ss:$16 sps:$4 sm:$0xff]   ;;  %2138 = vmatprep.subr.bf16.mxu0 %v6267_v54 }
 0x7a0   :  { %v6312_v54 = vld [vmem:[#allocation16 + $0x64] ss:$8 sps:$4 sm:$0xff]  }
 0x7a2   :  { %2139 = vmatpush1.bf16.msra.mxu0 %v6265_v56  ;;  %v6315_v56 = vld [vmem:[#allocation16 + $0x74] ss:$8 sps:$4 sm:$0xff]  }
 0x7a3   :  { %2140 = vmatprep.subr.bf16.mxu0 %v6273_v58  ;;  %v6318_v58 = vld [vmem:[#allocation16 + $0x84] ss:$8 sps:$4 sm:$0xff]  }
 0x7a6   :  { %2141 = vmatpush1.bf16.msra.mxu0 %v6271_v60  ;;  %v6321_v60 = vld [vmem:[#allocation16 + $0x94] ss:$8 sps:$4 sm:$0xff]  }
 0x7a7   :  { %2142 = vmatprep.subr.bf16.mxu0 %v6279_v62  ;;  %v6324_v62 = vld [vmem:[#allocation16 + $0xa4] ss:$8 sps:$4 sm:$0xff]  }
 0x7aa   :  { %2143 = vmatpush1.bf16.msra.mxu0 %v6277_v0  ;;  %v6327_v0 = vld [vmem:[#allocation16 + $0xb4] ss:$8 sps:$4 sm:$0xff]  }
 0x7ab   :  { %2144 = vmatprep.subr.bf16.mxu0 %v6285_v5  ;;  %v6333_v5 = vld [vmem:[#allocation16 + $0xd4] ss:$8 sps:$4 sm:$0xff]  }
 0x7ae   :  { %2145 = vmatpush1.bf16.msra.mxu0 %v6283_v4  ;;  %v6328_v4 = vld [vmem:[#allocation16 + $0xc0] ss:$8 sps:$4 sm:$0xff]  }
 0x7af   :  { %2146 = vmatprep.subr.bf16.mxu0 %v6291_v6  ;;  %v6336_v6 = vld [vmem:[#allocation16 + $0xe4] ss:$8 sps:$4 sm:$0xff]  }
 0x7b2   :  { %2147 = vmatpush1.bf16.msra.mxu0 %v6289_v10  ;;  %v6339_v10 = vld [vmem:[#allocation16 + $0xf4] ss:$8 sps:$4 sm:$0xff]  }
 0x82a   :  { %v1604_v35 = vpop.xlane.xlu0 %1603 }
 0x82b   :  { %v1609_v36 = vmul.f32 0.00390625, %v1604_v35 }
 0x82c   :  { %v1607_v37 = vpop.xlane.xlu1 %1606 }
 0x82d   :  { %v7392_v32 = vsub.f32 %v7379_v45, %v1609_v36  ;;  %v7395_v39 = vsub.f32 %v7381_v12, %v1609_v36  ;;  %v1610_v42 = vmul.f32 0.00390625, %v1607_v37 }
 0x82f   :  { %v7398_v44 = vsub.f32 %v7383_v49, %v1610_v42  ;;  %v7401_v46 = vsub.f32 %v7385_v51, %v1610_v42  ;;  %v1615_v47 = vmul.f32 %v7392_v32, %v7392_v32  ;;  %v1616_v7 = vmul.f32 %v7395_v39, %v7395_v39  ;;  %v6258_v49 = vld [vmem:[#allocation14 + $0x144] ss:$16 sps:$4 sm:$0xff]   ;;  %v6256_v51 = vld [vmem:[#allocation14 + $0x140] ss:$16 sps:$4 sm:$0xff]  }
 0x830   :  { %2093 = vmatprep.subr.bf16.mxu1 %v6258_v49  ;;  %v6301_v49 = vld [vmem:[#allocation16 + $0x30] ss:$8 sps:$4 sm:$0xff]  }
 0x831   :  { %v1619_v13 = vadd.f32 %v1616_v7, %v1615_v47  ;;  %v1617_v45 = vmul.f32 %v7398_v44, %v7398_v44  ;;  %v1618_v12 = vmul.f32 %v7401_v46, %v7401_v46  ;;  %2094 = vmatpush1.bf16.msra.mxu1 %v6256_v51  ;;  %v6292_v7 = vld [vmem:[#allocation16] ss:$8 sps:$4 sm:$0xff]  }
 0x832   :  { %2095 = vmatprep.subr.bf16.mxu1 %v6264_v53  ;;  %v6304_v51 = vld [vmem:[#allocation16 + $0x40] ss:$8 sps:$4 sm:$0xff]   ;;  %v6307_v53 = vld [vmem:[#allocation16 + $0x50] ss:$8 sps:$4 sm:$0xff]  }
 0x833   :  { %1620 = vadd.xlane.f32.xlu0 %v1619_v13  ;;  %v1622_v48 = vadd.f32 %v1618_v12, %v1617_v45  ;;  %v6295_v13 = vld [vmem:[#allocation16 + $0x10] ss:$8 sps:$4 sm:$0xff]   ;;  %v6300_v45 = vld [vmem:[#allocation16 + $0x24] ss:$8 sps:$4 sm:$0xff]   ;;  %v6298_v12 = vld [vmem:[#allocation16 + $0x20] ss:$8 sps:$4 sm:$0xff]  }
 0x835   :  { %1623 = vadd.xlane.f32.xlu1 %v1622_v48  ;;  %2096 = vmatpush1.bf16.msra.mxu1 %v6262_v55  ;;  %v6303_v48 = vld [vmem:[#allocation16 + $0x34] ss:$8 sps:$4 sm:$0xff]   ;;  %v6310_v55 = vld [vmem:[#allocation16 + $0x60] ss:$8 sps:$4 sm:$0xff]  }
 0x836   :  { %2097 = vmatprep.subr.bf16.mxu1 %v6270_v57  ;;  %v6313_v57 = vld [vmem:[#allocation16 + $0x70] ss:$8 sps:$4 sm:$0xff]  }
 0x839   :  { %2098 = vmatpush1.bf16.msra.mxu1 %v6268_v59  ;;  %v6316_v59 = vld [vmem:[#allocation16 + $0x80] ss:$8 sps:$4 sm:$0xff]  }
 0x83a   :  { %2099 = vmatprep.subr.bf16.mxu1 %v6276_v61  ;;  %v6319_v61 = vld [vmem:[#allocation16 + $0x90] ss:$8 sps:$4 sm:$0xff]  }
 0x83d   :  { %2100 = vmatpush1.bf16.msra.mxu1 %v6274_v63  ;;  %v6322_v63 = vld [vmem:[#allocation16 + $0xa0] ss:$8 sps:$4 sm:$0xff]  }
 0x83e   :  { %2101 = vmatprep.subr.bf16.mxu1 %v6282_v2  ;;  %v6330_v2 = vld [vmem:[#allocation16 + $0xc4] ss:$8 sps:$4 sm:$0xff]  }
 0x841   :  { %2102 = vmatpush1.bf16.msra.mxu1 %v6280_v1  ;;  %v6325_v1 = vld [vmem:[#allocation16 + $0xb0] ss:$8 sps:$4 sm:$0xff]  }
 0x842   :  { %2103 = vmatprep.subr.bf16.mxu1 %v6288_v3  ;;  %v6331_v3 = vld [vmem:[#allocation16 + $0xd0] ss:$8 sps:$4 sm:$0xff]  }
 0x845   :  { %2104 = vmatpush1.bf16.msra.mxu1 %v6286_v8  ;;  %v6334_v8 = vld [vmem:[#allocation16 + $0xe0] ss:$8 sps:$4 sm:$0xff]  }
 0x846   :  { %2567 = vmatprep.subr.bf16.mxu1 %v6294_v11  ;;  %v6337_v11 = vld [vmem:[#allocation16 + $0xf0] ss:$8 sps:$4 sm:$0xff]  }
 0x8c0   :  { %v1621_v14 = vpop.xlane.xlu0 %1620 }
 0x8c1   :  { %v1625_v15 = vmul.f32 0.00390625, %v1621_v14  ;;  %v6342_v14 = vld [vmem:[#allocation16 + $0x104] ss:$8 sps:$4 sm:$0xff]  }
 0x8c2   :  { %v1624_v9 = vpop.xlane.xlu1 %1623 }
 0x8c3   :  { %v1627_v16 = vadd.f32 1e-05, %v1625_v15  ;;  %v1626_v17 = vmul.f32 0.00390625, %v1624_v9  ;;  %v1743_v15 = vsub.s32 2, %v7275_v40  ;;  %v1731_v9 = vld [vmem:[%s7726_s13] sm:$0xf] }
 0x8c4   :  { %v1740_v19 = vrot.slane %v1731_v9, %v7284_v43 }
 0x8c5   :  { %6788 = vrsqrt.f32 %v1627_v16  ;;  %v1628_v18 = vadd.f32 1e-05, %v1626_v17  ;;  %v1747_v16 = vsub.s32 3, %v7275_v40  ;;  %v1736_v17 = vrot.slane %v1731_v9, %v7278_v41 }
 0x8c7   :  { %6790 = vrsqrt.f32 %v1628_v18  ;;  %v1744_v18 = vrot.slane %v1731_v9, %v1743_v15  ;;  %v1748_v20 = vrot.slane %v1731_v9, %v1747_v16  ;;  %v6370_v9 = vld [vmem:[#allocation16 + $0x1a0] ss:$8 sps:$4 sm:$0xff]  }
 0x8cf   :  { %v6789_v23 = vpop.eup %6788 }
 0x8d0   :  { %v1631_v24 = vmul.f32 %v6789_v23, %v7392_v32  ;;  %v1632_v25 = vmul.f32 %v6789_v23, %v7395_v39 }
 0x8d1   :  { %v6791_v26 = vpop.eup %6790 }
 0x8d2   :  { %v1633_v31 = vmul.f32 %v6791_v26, %v7398_v44  ;;  %v1634_v30 = vmul.f32 %v6791_v26, %v7401_v46  ;;  %v1647_v33 = vmul.f32 %v1643_v22, %v1632_v25  ;;  %v1646_v34 = vmul.f32 %v1639_v21, %v1631_v24  ;;  %v6297_v46 = vld [vmem:[#allocation16 + $0x14] ss:$8 sps:$4 sm:$0xff]  }
 0x8d4   :  { %v1649_v35 = vmul.f32 %v1643_v22, %v1634_v30  ;;  %v1648_v36 = vmul.f32 %v1639_v21, %v1633_v31  ;;  %v7425_v37 = vadd.f32 %v1658_v29, %v1647_v33  ;;  %v7429_v32 = vadd.f32 %v1654_v28, %v1646_v34 }
 0x8d6   :  { %v7427_v42 = vadd.f32 %v1658_v29, %v1649_v35  ;;  %v7431_v39 = vadd.f32 %v1654_v28, %v1648_v36 }
 0x8d8   :  { %v1666_v47 = vpack.c.bf16 %v7427_v42, %v7425_v37  ;;  %v1665_v44 = vpack.c.bf16 %v7431_v39, %v7429_v32 }
 0x8da   :  { %2105 = vmatprep.mubr.bf16.mxu1 %v1666_v47  ;;  %2148 = vmatprep.mubr.bf16.mxu0 %v1666_v47 }
 0x8db   :  { %2106 = vmatmul.mubr.bf16.vlgmr.msra.gmra.mrb[20].mxu1 %v1665_v44  ;;  %2149 = vmatmul.mubr.bf16.vlgmr.msra.gmra.mrb[28].mxu0 %v1665_v44 }
 0x8dc   :  { %2568 = vmatpush1.bf16.msra.mxu1 %v6292_v7 }
 0x8dd   :  { %2569 = vmatprep.subr.bf16.mxu1 %v6297_v46 }
 0x8e0   :  { %2570 = vmatpush1.bf16.msra.mxu1 %v6295_v13 }
 0x8e1   :  { %2571 = vmatprep.subr.bf16.mxu1 %v6300_v45 }
 0x8e4   :  { %2572 = vmatpush1.bf16.msra.mxu1 %v6298_v12 }
 0x8e5   :  { %2573 = vmatprep.subr.bf16.mxu1 %v6303_v48 }
 0x8e8   :  { %2574 = vmatpush1.bf16.msra.mxu1 %v6301_v49 }
 0x8e9   :  { %2575 = vmatprep.subr.bf16.mxu1 %v6306_v50 }
 0x8ec   :  { %2576 = vmatpush1.bf16.msra.mxu1 %v6304_v51 }
 0x8ed   :  { %2577 = vmatprep.subr.bf16.mxu1 %v6309_v52 }
 0x8f0   :  { %2578 = vmatpush1.bf16.msra.mxu1 %v6307_v53 }
 0x8f1   :  { %2579 = vmatprep.subr.bf16.mxu1 %v6312_v54 }
 0x8f4   :  { %2580 = vmatpush1.bf16.msra.mxu1 %v6310_v55  ;;  %v6340_v55 = vld [vmem:[#allocation16 + $0x100] ss:$8 sps:$4 sm:$0xff]  }
 0x8f5   :  { %2581 = vmatprep.subr.bf16.mxu1 %v6315_v56  ;;  %v6345_v56 = vld [vmem:[#allocation16 + $0x114] ss:$8 sps:$4 sm:$0xff]  }
 0x8f8   :  { %2582 = vmatpush1.bf16.msra.mxu1 %v6313_v57  ;;  %v6343_v57 = vld [vmem:[#allocation16 + $0x110] ss:$8 sps:$4 sm:$0xff]  }
 0x8f9   :  { %2583 = vmatprep.subr.bf16.mxu1 %v6318_v58  ;;  %v6348_v58 = vld [vmem:[#allocation16 + $0x124] ss:$8 sps:$4 sm:$0xff]  }
 0x8fc   :  { %2584 = vmatpush1.bf16.msra.mxu1 %v6316_v59  ;;  %v6346_v59 = vld [vmem:[#allocation16 + $0x120] ss:$8 sps:$4 sm:$0xff]  }
 0x8fd   :  { %2585 = vmatprep.subr.bf16.mxu1 %v6321_v60  ;;  %v6351_v60 = vld [vmem:[#allocation16 + $0x134] ss:$8 sps:$4 sm:$0xff]  }
 0x900   :  { %2586 = vmatpush1.bf16.msra.mxu1 %v6319_v61  ;;  %v6349_v61 = vld [vmem:[#allocation16 + $0x130] ss:$8 sps:$4 sm:$0xff]  }
 0x901   :  { %2587 = vmatprep.subr.bf16.mxu1 %v6324_v62  ;;  %v6354_v62 = vld [vmem:[#allocation16 + $0x144] ss:$8 sps:$4 sm:$0xff]  }
 0x904   :  { %2588 = vmatpush1.bf16.msra.mxu1 %v6322_v63  ;;  %v6352_v63 = vld [vmem:[#allocation16 + $0x140] ss:$8 sps:$4 sm:$0xff]  }
 0x905   :  { %2589 = vmatprep.subr.bf16.mxu1 %v6327_v0  ;;  %v6357_v0 = vld [vmem:[#allocation16 + $0x154] ss:$8 sps:$4 sm:$0xff]  }
 0x908   :  { %2590 = vmatpush1.bf16.msra.mxu1 %v6325_v1  ;;  %v6355_v1 = vld [vmem:[#allocation16 + $0x150] ss:$8 sps:$4 sm:$0xff]  }
 0x909   :  { %2591 = vmatprep.subr.bf16.mxu1 %v6330_v2  ;;  %v6360_v2 = vld [vmem:[#allocation16 + $0x164] ss:$8 sps:$4 sm:$0xff]  }
 0x90c   :  { %2592 = vmatpush1.bf16.msra.mxu1 %v6328_v4  ;;  %v6358_v4 = vld [vmem:[#allocation16 + $0x160] ss:$8 sps:$4 sm:$0xff]  }
 0x90d   :  { %2593 = vmatprep.subr.bf16.mxu1 %v6333_v5  ;;  %v6363_v5 = vld [vmem:[#allocation16 + $0x174] ss:$8 sps:$4 sm:$0xff]  }
 0x910   :  { %2594 = vmatpush1.bf16.msra.mxu1 %v6331_v3  ;;  %v6361_v3 = vld [vmem:[#allocation16 + $0x170] ss:$8 sps:$4 sm:$0xff]  }
 0x911   :  { %2595 = vmatprep.subr.bf16.mxu1 %v6336_v6  ;;  %v6366_v6 = vld [vmem:[#allocation16 + $0x184] ss:$8 sps:$4 sm:$0xff]  }
 0x914   :  { %2596 = vmatpush1.bf16.msra.mxu1 %v6334_v8  ;;  %v6364_v8 = vld [vmem:[#allocation16 + $0x180] ss:$8 sps:$4 sm:$0xff]  }
 0x915   :  { %2597 = vmatprep.subr.bf16.mxu1 %v6339_v10  ;;  %v6369_v10 = vld [vmem:[#allocation16 + $0x194] ss:$8 sps:$4 sm:$0xff]  }
 0x918   :  { %2598 = vmatpush1.bf16.msra.mxu1 %v6337_v11  ;;  %v6367_v11 = vld [vmem:[#allocation16 + $0x190] ss:$8 sps:$4 sm:$0xff]  }
 0x919   :  { %2610 = vmatprep.subr.bf16.mxu1 %v6342_v14  ;;  %v6372_v14 = vld [vmem:[#allocation16 + $0x1a4] ss:$8 sps:$4 sm:$0xff]  }
 0x9ae   :  { %v2107_v21 = vpop.f32.mrb[20].mxu1  ;;  %v2150_v22 = vpop.f32.mrb[28].mxu0 }
 0x9af   :  { %v2108_v23 = vadd.f32 %v2107_v21, %v1736_v17  ;;  %v2151_v24 = vadd.f32 %v2150_v22, %v1744_v18  ;;  %v2109_v25 = vpop.f32.mrb[21].mxu1  ;;  %v2152_v26 = vpop.f32.mrb[29].mxu0  ;;  %v6381_v21 = vld [vmem:[#allocation16 + $0x1d4] ss:$8 sps:$4 sm:$0xff]   ;;  %v6379_v22 = vld [vmem:[#allocation16 + $0x1d0] ss:$8 sps:$4 sm:$0xff]  }
 0x9b0   :  { %v2110_v28 = vadd.f32 %v2109_v25, %v1740_v19  ;;  %v2153_v29 = vadd.f32 %v2152_v26, %v1748_v20  ;;  %v2111_v31 = vpop.f32.mrb[22].mxu1  ;;  %v2154_v30 = vpop.f32.mrb[30].mxu0  ;;  %v6387_v25 = vld [vmem:[#allocation16 + $0x1f4] ss:$8 sps:$4 sm:$0xff]   ;;  %v6385_v26 = vld [vmem:[#allocation16 + $0x1f0] ss:$8 sps:$4 sm:$0xff]  }
 0x9b1   :  { %v2112_v33 = vadd.f32 %v2111_v31, %v1736_v17  ;;  %v2155_v34 = vadd.f32 %v2154_v30, %v1744_v18  ;;  %v2113_v35 = vpop.f32.mrb[23].mxu1  ;;  %v2156_v36 = vpop.f32.mrb[31].mxu0  ;;  %v2159_v7 = vmax.f32 %v2108_v23, 0.0  ;;  %v2161_v46 = vmax.f32 %v2151_v24, 0.0  ;;  %v6375_v17 = vld [vmem:[#allocation16 + $0x1b4] ss:$8 sps:$4 sm:$0xff]  }
 0x9b2   :  { %v2114_v47 = vadd.f32 %v2113_v35, %v1740_v19  ;;  %v2157_v44 = vadd.f32 %v2156_v36, %v1748_v20  ;;  %v2160_v12 = vmax.f32 %v2110_v28, 0.0  ;;  %v2162_v48 = vmax.f32 %v2153_v29, 0.0  ;;  %v6373_v18 = vld [vmem:[#allocation16 + $0x1b0] ss:$8 sps:$4 sm:$0xff]   ;;  %v6378_v19 = vld [vmem:[#allocation16 + $0x1c4] ss:$8 sps:$4 sm:$0xff]  }
 0x9b3   :  { %v2163_v13 = vmax.f32 %v2112_v33, 0.0  ;;  %v2165_v45 = vmax.f32 %v2155_v34, 0.0  ;;  %v6376_v20 = vld [vmem:[#allocation16 + $0x1c0] ss:$8 sps:$4 sm:$0xff]   ;;  %v6384_v23 = vld [vmem:[#allocation16 + $0x1e4] ss:$8 sps:$4 sm:$0xff]  }
 0x9b4   :  { %v2164_v49 = vmax.f32 %v2114_v47, 0.0  ;;  %v2166_v50 = vmax.f32 %v2157_v44, 0.0  ;;  %v6382_v24 = vld [vmem:[#allocation16 + $0x1e0] ss:$8 sps:$4 sm:$0xff]   ;;  %v2235_v28 = vld [vmem:[%s7728_s15] sm:$0x3] }
 0x9b5   :  { %v2167_v51 = vpack.c.bf16 %v2163_v13, %v2159_v7  ;;  %v7448_v52 = vpack.c.bf16 %v2165_v45, %v2161_v46  ;;  %v2240_v29 = vrot.slane %v2235_v28, %v7278_v41  ;;  %v2244_v31 = vrot.slane %v2235_v28, %v7284_v43 }
 0x9b6   :  { %v2168_v53 = vpack.c.bf16 %v2164_v49, %v2160_v12  ;;  %v2170_v54 = vpack.c.bf16 %v2166_v50, %v2162_v48  ;;  %v6388_v49 = vld [vmem:[#allocation8 + $0x100] ss:$8 sps:$4 sm:$0xff]   ;;  %v6390_v50 = vld [vmem:[#allocation8 + $0x104] ss:$8 sps:$4 sm:$0xff]  }
 0x9b7   :  { %2929 = vmatprep.subr.bf16.mxu0 %v6390_v50  ;;  %v6456_v50 = vld [vmem:[#allocation8 + $0x1b4] ss:$8 sps:$4 sm:$0xff]  }
 0x9b8   :  { %2599 = vmatprep.mubr.bf16.mxu1 %v2168_v53  ;;  %v6399_v53 = vld [vmem:[#allocation11 + $0x114] ss:$8 sps:$4 sm:$0xff]   ;;  %2930 = vmatpush1.bf16.msra.mxu0 %v6388_v49  ;;  %v6451_v49 = vld [vmem:[#allocation11 + $0x1a0] ss:$8 sps:$4 sm:$0xff]  }
 0x9b9   :  { %2600 = vmatmul.mubr.bf16.vlgmr.msra.gmra.mrb[24].mxu1 %v2167_v51  ;;  %v6391_v51 = vld [vmem:[#allocation11 + $0x100] ss:$8 sps:$4 sm:$0xff]  }
 0x9ba   :  { %2611 = vmatpush1.bf16.msra.mxu1 %v6340_v55  ;;  %2642 = vmatprep.mubr.bf16.mxu1 %v2170_v54  ;;  %v6402_v54 = vld [vmem:[#allocation8 + $0x124] ss:$8 sps:$4 sm:$0xff]  }
 0x9bb   :  { %2612 = vmatprep.subr.bf16.mxu1 %v6345_v56  ;;  %v6405_v55 = vld [vmem:[#allocation11 + $0x124] ss:$8 sps:$4 sm:$0xff]   ;;  %v6400_v56 = vld [vmem:[#allocation8 + $0x120] ss:$8 sps:$4 sm:$0xff]  }
 0x9be   :  { %2613 = vmatpush1.bf16.msra.mxu1 %v6343_v57  ;;  %v6403_v57 = vld [vmem:[#allocation11 + $0x120] ss:$8 sps:$4 sm:$0xff]  }
 0x9bf   :  { %2614 = vmatprep.subr.bf16.mxu1 %v6348_v58  ;;  %v6408_v58 = vld [vmem:[#allocation8 + $0x134] ss:$8 sps:$4 sm:$0xff]  }
 0x9c2   :  { %2615 = vmatpush1.bf16.msra.mxu1 %v6346_v59  ;;  %v6411_v59 = vld [vmem:[#allocation11 + $0x134] ss:$8 sps:$4 sm:$0xff]  }
 0x9c3   :  { %2616 = vmatprep.subr.bf16.mxu1 %v6351_v60  ;;  %v6406_v60 = vld [vmem:[#allocation8 + $0x130] ss:$8 sps:$4 sm:$0xff]  }
 0x9c6   :  { %2617 = vmatpush1.bf16.msra.mxu1 %v6349_v61  ;;  %v6409_v61 = vld [vmem:[#allocation11 + $0x130] ss:$8 sps:$4 sm:$0xff]  }
 0x9c7   :  { %2618 = vmatprep.subr.bf16.mxu1 %v6354_v62  ;;  %v6414_v62 = vld [vmem:[#allocation8 + $0x144] ss:$8 sps:$4 sm:$0xff]  }
 0x9ca   :  { %2619 = vmatpush1.bf16.msra.mxu1 %v6352_v63  ;;  %v6417_v63 = vld [vmem:[#allocation11 + $0x144] ss:$8 sps:$4 sm:$0xff]  }
 0x9cb   :  { %2620 = vmatprep.subr.bf16.mxu1 %v6357_v0  ;;  %v6412_v0 = vld [vmem:[#allocation8 + $0x140] ss:$8 sps:$4 sm:$0xff]  }
 0x9ce   :  { %2621 = vmatpush1.bf16.msra.mxu1 %v6355_v1  ;;  %v6415_v1 = vld [vmem:[#allocation11 + $0x140] ss:$8 sps:$4 sm:$0xff]  }
 0x9cf   :  { %2622 = vmatprep.subr.bf16.mxu1 %v6360_v2  ;;  %v6420_v2 = vld [vmem:[#allocation8 + $0x154] ss:$8 sps:$4 sm:$0xff]  }
 0x9d2   :  { %2623 = vmatpush1.bf16.msra.mxu1 %v6358_v4  ;;  %v6423_v4 = vld [vmem:[#allocation11 + $0x154] ss:$8 sps:$4 sm:$0xff]  }
 0x9d3   :  { %2624 = vmatprep.subr.bf16.mxu1 %v6363_v5  ;;  %v6418_v5 = vld [vmem:[#allocation8 + $0x150] ss:$8 sps:$4 sm:$0xff]  }
 0x9d6   :  { %2625 = vmatpush1.bf16.msra.mxu1 %v6361_v3  ;;  %v6421_v3 = vld [vmem:[#allocation11 + $0x150] ss:$8 sps:$4 sm:$0xff]  }
 0x9d7   :  { %2626 = vmatprep.subr.bf16.mxu1 %v6366_v6  ;;  %v6426_v6 = vld [vmem:[#allocation8 + $0x164] ss:$8 sps:$4 sm:$0xff]  }
 0x9da   :  { %2627 = vmatpush1.bf16.msra.mxu1 %v6364_v8  ;;  %v6429_v8 = vld [vmem:[#allocation11 + $0x164] ss:$8 sps:$4 sm:$0xff]  }
 0x9db   :  { %2628 = vmatprep.subr.bf16.mxu1 %v6369_v10  ;;  %v6424_v10 = vld [vmem:[#allocation8 + $0x160] ss:$8 sps:$4 sm:$0xff]  }
 0x9de   :  { %2629 = vmatpush1.bf16.msra.mxu1 %v6367_v11  ;;  %v6427_v11 = vld [vmem:[#allocation11 + $0x160] ss:$8 sps:$4 sm:$0xff]  }
 0x9df   :  { %2630 = vmatprep.subr.bf16.mxu1 %v6372_v14  ;;  %v6432_v14 = vld [vmem:[#allocation8 + $0x174] ss:$8 sps:$4 sm:$0xff]  }
 0x9e2   :  { %2631 = vmatpush1.bf16.msra.mxu1 %v6370_v9  ;;  %v6435_v9 = vld [vmem:[#allocation11 + $0x174] ss:$8 sps:$4 sm:$0xff]  }
 0x9e3   :  { %2632 = vmatprep.subr.bf16.mxu1 %v6375_v17  ;;  %v6430_v17 = vld [vmem:[#allocation8 + $0x170] ss:$8 sps:$4 sm:$0xff]  }
 0x9e6   :  { %2633 = vmatpush1.bf16.msra.mxu1 %v6373_v18  ;;  %v6433_v18 = vld [vmem:[#allocation11 + $0x170] ss:$8 sps:$4 sm:$0xff]  }
 0x9e7   :  { %2634 = vmatprep.subr.bf16.mxu1 %v6378_v19  ;;  %v6438_v19 = vld [vmem:[#allocation8 + $0x184] ss:$8 sps:$4 sm:$0xff]  }
 0x9ea   :  { %2635 = vmatpush1.bf16.msra.mxu1 %v6376_v20  ;;  %v6441_v20 = vld [vmem:[#allocation11 + $0x184] ss:$8 sps:$4 sm:$0xff]  }
 0x9eb   :  { %2636 = vmatprep.subr.bf16.mxu1 %v6381_v21  ;;  %v6436_v21 = vld [vmem:[#allocation8 + $0x180] ss:$8 sps:$4 sm:$0xff]  }
 0x9ee   :  { %2637 = vmatpush1.bf16.msra.mxu1 %v6379_v22  ;;  %v6439_v22 = vld [vmem:[#allocation11 + $0x180] ss:$8 sps:$4 sm:$0xff]  }
 0x9ef   :  { %2638 = vmatprep.subr.bf16.mxu1 %v6384_v23  ;;  %v6444_v23 = vld [vmem:[#allocation8 + $0x194] ss:$8 sps:$4 sm:$0xff]  }
 0x9f2   :  { %2639 = vmatpush1.bf16.msra.mxu1 %v6382_v24  ;;  %v6447_v24 = vld [vmem:[#allocation11 + $0x194] ss:$8 sps:$4 sm:$0xff]  }
 0x9f3   :  { %2640 = vmatprep.subr.bf16.mxu1 %v6387_v25  ;;  %v6442_v25 = vld [vmem:[#allocation8 + $0x190] ss:$8 sps:$4 sm:$0xff]  }
 0x9f6   :  { %2641 = vmatpush1.bf16.msra.mxu1 %v6385_v26  ;;  %v6445_v26 = vld [vmem:[#allocation11 + $0x190] ss:$8 sps:$4 sm:$0xff]  }
 0x9f9   :  { %2643 = vmatmul.mubr.bf16.vlgmr.msra.gmra.mrb[24].mxu1 %v7448_v52  ;;  %v6396_v52 = vld [vmem:[#allocation8 + $0x114] ss:$8 sps:$4 sm:$0xff]  }
 0x9fa   :  { %2931 = vmatprep.subr.bf16.mxu0 %v6396_v52  ;;  %v6457_v52 = vld [vmem:[#allocation11 + $0x1b0] ss:$8 sps:$4 sm:$0xff]  }
 0xacc   :  { %v2644_v30 = vpop.f32.mrb[24].mxu1 }
 0xacd   :  { %v5973_v33 = vadd.f32 %v2644_v30, %v2240_v29  ;;  %v2646_v34 = vpop.f32.mrb[25].mxu1 }
 0xace   :  { %v5974_v35 = vadd.f32 %v2646_v34, %v2244_v31  ;;  %v2648_v36 = vpop.f32.mrb[26].mxu1 }
 0xacf   :  { %v7457_v47 = vadd.f32 %v5973_v33, %v7429_v32  ;;  %v5975_v44 = vadd.f32 %v2648_v36, %v2240_v29  ;;  %v2650_v7 = vpop.f32.mrb[27].mxu1 }
 0xad0   :  { %v7460_v46 = vadd.f32 %v5974_v35, %v7425_v37  ;;  %v5976_v13 = vadd.f32 %v2650_v7, %v2244_v31  ;;  %v6393_v37 = vld [vmem:[#allocation11 + $0x104] ss:$8 sps:$4 sm:$0xff]  }
 0xad1   :  { %v7463_v45 = vadd.f32 %v5975_v44, %v7431_v39  ;;  %3427 = vmatprep.subr.bf16.mxu1 %v6393_v37  ;;  %v6394_v39 = vld [vmem:[#allocation8 + $0x110] ss:$8 sps:$4 sm:$0xff]   ;;  %v6459_v37 = vld [vmem:[#allocation11 + $0x1b4] ss:$8 sps:$4 sm:$0xff]  }
 0xad2   :  { %v7466_v12 = vadd.f32 %v5976_v13, %v7427_v42  ;;  %v2659_v48 = vadd.f32 %v7460_v46, %v7457_v47  ;;  %3428 = vmatpush1.bf16.msra.mxu1 %v6391_v51  ;;  %v6397_v42 = vld [vmem:[#allocation11 + $0x110] ss:$8 sps:$4 sm:$0xff]   ;;  %2932 = vmatpush1.bf16.msra.mxu0 %v6394_v39  ;;  %v6460_v39 = vld [vmem:[#allocation8 + $0x1c0] ss:$8 sps:$4 sm:$0xff]  }
 0xad3   :  { %3429 = vmatprep.subr.bf16.mxu1 %v6399_v53  ;;  %2933 = vmatprep.subr.bf16.mxu0 %v6402_v54  ;;  %v6454_v51 = vld [vmem:[#allocation8 + $0x1b0] ss:$8 sps:$4 sm:$0xff]   ;;  %v6462_v53 = vld [vmem:[#allocation8 + $0x1c4] ss:$8 sps:$4 sm:$0xff]   ;;  %v6463_v54 = vld [vmem:[#allocation11 + $0x1c0] ss:$8 sps:$4 sm:$0xff]  }
 0xad4   :  { %2660 = vadd.xlane.f32.xlu0 %v2659_v48  ;;  %v2662_v32 = vadd.f32 %v7466_v12, %v7463_v45 }
 0xad6   :  { %2663 = vadd.xlane.f32.xlu1 %v2662_v32  ;;  %3430 = vmatpush1.bf16.msra.mxu1 %v6397_v42  ;;  %v6448_v32 = vld [vmem:[#allocation8 + $0x1a0] ss:$8 sps:$4 sm:$0xff]   ;;  %v6465_v42 = vld [vmem:[#allocation11 + $0x1c4] ss:$8 sps:$4 sm:$0xff]  }
 0xad7   :  { %3431 = vmatprep.subr.bf16.mxu1 %v6405_v55  ;;  %2934 = vmatpush1.bf16.msra.mxu0 %v6400_v56  ;;  %v6468_v55 = vld [vmem:[#allocation8 + $0x1d4] ss:$8 sps:$4 sm:$0xff]   ;;  %v6466_v56 = vld [vmem:[#allocation8 + $0x1d0] ss:$8 sps:$4 sm:$0xff]  }
 0xad8   :  { %2935 = vmatprep.subr.bf16.mxu0 %v6408_v58  ;;  %v6469_v58 = vld [vmem:[#allocation11 + $0x1d0] ss:$8 sps:$4 sm:$0xff]  }
 0xada   :  { %3432 = vmatpush1.bf16.msra.mxu1 %v6403_v57  ;;  %v6471_v57 = vld [vmem:[#allocation11 + $0x1d4] ss:$8 sps:$4 sm:$0xff]  }
 0xadb   :  { %3433 = vmatprep.subr.bf16.mxu1 %v6411_v59  ;;  %2936 = vmatpush1.bf16.msra.mxu0 %v6406_v60  ;;  %v6474_v59 = vld [vmem:[#allocation8 + $0x1e4] ss:$8 sps:$4 sm:$0xff]   ;;  %v6472_v60 = vld [vmem:[#allocation8 + $0x1e0] ss:$8 sps:$4 sm:$0xff]  }
 0xadc   :  { %2937 = vmatprep.subr.bf16.mxu0 %v6414_v62  ;;  %v6475_v62 = vld [vmem:[#allocation11 + $0x1e0] ss:$8 sps:$4 sm:$0xff]  }
 0xade   :  { %3434 = vmatpush1.bf16.msra.mxu1 %v6409_v61  ;;  %v6477_v61 = vld [vmem:[#allocation11 + $0x1e4] ss:$8 sps:$4 sm:$0xff]  }
 0xadf   :  { %3435 = vmatprep.subr.bf16.mxu1 %v6417_v63  ;;  %2938 = vmatpush1.bf16.msra.mxu0 %v6412_v0  ;;  %v6480_v63 = vld [vmem:[#allocation8 + $0x1f4] ss:$8 sps:$4 sm:$0xff]   ;;  %v6478_v0 = vld [vmem:[#allocation8 + $0x1f0] ss:$8 sps:$4 sm:$0xff]  }
 0xae0   :  { %2939 = vmatprep.subr.bf16.mxu0 %v6420_v2  ;;  %v6481_v2 = vld [vmem:[#allocation11 + $0x1f0] ss:$8 sps:$4 sm:$0xff]  }
 0xae2   :  { %3436 = vmatpush1.bf16.msra.mxu1 %v6415_v1  ;;  %v6483_v1 = vld [vmem:[#allocation11 + $0x1f4] ss:$8 sps:$4 sm:$0xff]  }
 0xae3   :  { %3437 = vmatprep.subr.bf16.mxu1 %v6423_v4  ;;  %2940 = vmatpush1.bf16.msra.mxu0 %v6418_v5  ;;  %v6486_v4 = vld [vmem:[#allocation10 + $0x104] ss:$8 sps:$4 sm:$0xff]  }
 0xae4   :  { %2941 = vmatprep.subr.bf16.mxu0 %v6426_v6 }
 0xae6   :  { %3438 = vmatpush1.bf16.msra.mxu1 %v6421_v3 }
 0xae7   :  { %3439 = vmatprep.subr.bf16.mxu1 %v6429_v8  ;;  %2942 = vmatpush1.bf16.msra.mxu0 %v6424_v10 }
 0xae8   :  { %2943 = vmatprep.subr.bf16.mxu0 %v6432_v14  ;;  %v2657_v14 = vld [vmem:[%s7729_s16] sm:$0x3] }
 0xaea   :  { %3440 = vmatpush1.bf16.msra.mxu1 %v6427_v11 }
 0xaeb   :  { %3441 = vmatprep.subr.bf16.mxu1 %v6435_v9  ;;  %2944 = vmatpush1.bf16.msra.mxu0 %v6430_v17  ;;  %v2658_v9 = vld [vmem:[%s7730_s17] sm:$0x3]  ;;  %v2695_v17 = vrot.slane %v2657_v14, %v7278_v41 }
 0xaec   :  { %2945 = vmatprep.subr.bf16.mxu0 %v6438_v19 }
 0xaee   :  { %3442 = vmatpush1.bf16.msra.mxu1 %v6433_v18  ;;  %v2699_v18 = vrot.slane %v2657_v14, %v7284_v43 }
 0xaef   :  { %3443 = vmatprep.subr.bf16.mxu1 %v6441_v20  ;;  %2946 = vmatpush1.bf16.msra.mxu0 %v6436_v21 }
 0xaf0   :  { %2947 = vmatprep.subr.bf16.mxu0 %v6444_v23  ;;  %v2710_v23 = vrot.slane %v2658_v9, %v7278_v41 }
 0xaf2   :  { %3444 = vmatpush1.bf16.msra.mxu1 %v6439_v22 }
 0xaf3   :  { %3445 = vmatprep.subr.bf16.mxu1 %v6447_v24  ;;  %2948 = vmatpush1.bf16.msra.mxu0 %v6442_v25  ;;  %v2714_v24 = vrot.slane %v2658_v9, %v7284_v43 }
 0xaf6   :  { %3446 = vmatpush1.bf16.msra.mxu1 %v6445_v26 }
 0xb61   :  { %v2661_v28 = vpop.xlane.xlu0 %2660 }
 0xb62   :  { %v2665_v29 = vmul.f32 0.00390625, %v2661_v28 }
 0xb63   :  { %v2664_v31 = vpop.xlane.xlu1 %2663 }
 0xb64   :  { %v7473_v30 = vsub.f32 %v7457_v47, %v2665_v29  ;;  %v7476_v33 = vsub.f32 %v7460_v46, %v2665_v29  ;;  %v2666_v34 = vmul.f32 0.00390625, %v2664_v31 }
 0xb66   :  { %v7479_v35 = vsub.f32 %v7463_v45, %v2666_v34  ;;  %v7482_v36 = vsub.f32 %v7466_v12, %v2666_v34  ;;  %v2671_v44 = vmul.f32 %v7473_v30, %v7473_v30  ;;  %v2672_v7 = vmul.f32 %v7476_v33, %v7476_v33  ;;  %v6450_v45 = vld [vmem:[#allocation8 + $0x1a4] ss:$8 sps:$4 sm:$0xff]  }
 0xb67   :  { %v6453_v12 = vld [vmem:[#allocation11 + $0x1a4] ss:$8 sps:$4 sm:$0xff]   ;;  %2949 = vmatprep.subr.bf16.mxu0 %v6450_v45  ;;  %v6490_v45 = vld [vmem:[#allocation10 + $0x120] ss:$8 sps:$4 sm:$0xff]  }
 0xb68   :  { %v2675_v13 = vadd.f32 %v2672_v7, %v2671_v44  ;;  %v2673_v47 = vmul.f32 %v7479_v35, %v7479_v35  ;;  %v2674_v46 = vmul.f32 %v7482_v36, %v7482_v36  ;;  %2950 = vmatpush1.bf16.msra.mxu0 %v6448_v32  ;;  %3447 = vmatprep.subr.bf16.mxu1 %v6453_v12  ;;  %v6495_v32 = vld [vmem:[#allocation10 + $0x134] ss:$8 sps:$4 sm:$0xff]   ;;  %v6493_v12 = vld [vmem:[#allocation10 + $0x130] ss:$8 sps:$4 sm:$0xff]  }
 0xb69   :  { %3448 = vmatpush1.bf16.msra.mxu1 %v6451_v49  ;;  %2951 = vmatprep.subr.bf16.mxu0 %v6456_v50  ;;  %v6498_v49 = vld [vmem:[#allocation10 + $0x144] ss:$8 sps:$4 sm:$0xff]   ;;  %v6496_v50 = vld [vmem:[#allocation10 + $0x140] ss:$8 sps:$4 sm:$0xff]  }
 0xb6a   :  { %2676 = vadd.xlane.f32.xlu0 %v2675_v13  ;;  %v2678_v48 = vadd.f32 %v2674_v46, %v2673_v47  ;;  %3449 = vmatprep.subr.bf16.mxu1 %v6459_v37  ;;  %v6484_v47 = vld [vmem:[#allocation10 + $0x100] ss:$8 sps:$4 sm:$0xff]   ;;  %v6487_v46 = vld [vmem:[#allocation10 + $0x110] ss:$8 sps:$4 sm:$0xff]  }
 0xb6b   :  { %v6499_v37 = vld [vmem:[#allocation10 + $0x150] ss:$8 sps:$4 sm:$0xff]  }
 0xb6c   :  { %2679 = vadd.xlane.f32.xlu1 %v2678_v48  ;;  %2952 = vmatpush1.bf16.msra.mxu0 %v6454_v51  ;;  %v6492_v48 = vld [vmem:[#allocation10 + $0x124] ss:$8 sps:$4 sm:$0xff]   ;;  %v6501_v51 = vld [vmem:[#allocation10 + $0x154] ss:$8 sps:$4 sm:$0xff]  }
 0xb6d   :  { %3450 = vmatpush1.bf16.msra.mxu1 %v6457_v52  ;;  %2953 = vmatprep.subr.bf16.mxu0 %v6462_v53  ;;  %v6504_v52 = vld [vmem:[#allocation10 + $0x164] ss:$8 sps:$4 sm:$0xff]   ;;  %v6502_v53 = vld [vmem:[#allocation10 + $0x160] ss:$8 sps:$4 sm:$0xff]  }
 0xb6e   :  { %3451 = vmatprep.subr.bf16.mxu1 %v6465_v42  ;;  %v6505_v42 = vld [vmem:[#allocation10 + $0x170] ss:$8 sps:$4 sm:$0xff]  }
 0xb70   :  { %2954 = vmatpush1.bf16.msra.mxu0 %v6460_v39  ;;  %v6507_v39 = vld [vmem:[#allocation10 + $0x174] ss:$8 sps:$4 sm:$0xff]  }
 0xb71   :  { %3452 = vmatpush1.bf16.msra.mxu1 %v6463_v54  ;;  %2955 = vmatprep.subr.bf16.mxu0 %v6468_v55  ;;  %v6510_v54 = vld [vmem:[#allocation10 + $0x184] ss:$8 sps:$4 sm:$0xff]   ;;  %v6508_v55 = vld [vmem:[#allocation10 + $0x180] ss:$8 sps:$4 sm:$0xff]  }
 0xb72   :  { %3453 = vmatprep.subr.bf16.mxu1 %v6471_v57  ;;  %v6511_v57 = vld [vmem:[#allocation10 + $0x190] ss:$8 sps:$4 sm:$0xff]  }
 0xb74   :  { %2956 = vmatpush1.bf16.msra.mxu0 %v6466_v56  ;;  %v6513_v56 = vld [vmem:[#allocation10 + $0x194] ss:$8 sps:$4 sm:$0xff]  }
 0xb75   :  { %3454 = vmatpush1.bf16.msra.mxu1 %v6469_v58  ;;  %2957 = vmatprep.subr.bf16.mxu0 %v6474_v59  ;;  %v6516_v58 = vld [vmem:[#allocation10 + $0x1a4] ss:$8 sps:$4 sm:$0xff]   ;;  %v6514_v59 = vld [vmem:[#allocation10 + $0x1a0] ss:$8 sps:$4 sm:$0xff]  }
 0xb76   :  { %3455 = vmatprep.subr.bf16.mxu1 %v6477_v61  ;;  %v6517_v61 = vld [vmem:[#allocation10 + $0x1b0] ss:$8 sps:$4 sm:$0xff]  }
 0xb78   :  { %2958 = vmatpush1.bf16.msra.mxu0 %v6472_v60  ;;  %v6519_v60 = vld [vmem:[#allocation10 + $0x1b4] ss:$8 sps:$4 sm:$0xff]  }
 0xb79   :  { %3456 = vmatpush1.bf16.msra.mxu1 %v6475_v62  ;;  %2959 = vmatprep.subr.bf16.mxu0 %v6480_v63  ;;  %v6522_v62 = vld [vmem:[#allocation10 + $0x1c4] ss:$8 sps:$4 sm:$0xff]   ;;  %v6520_v63 = vld [vmem:[#allocation10 + $0x1c0] ss:$8 sps:$4 sm:$0xff]  }
 0xb7a   :  { %3457 = vmatprep.subr.bf16.mxu1 %v6483_v1  ;;  %v6523_v1 = vld [vmem:[#allocation10 + $0x1d0] ss:$8 sps:$4 sm:$0xff]  }
 0xb7c   :  { %2960 = vmatpush1.bf16.msra.mxu0 %v6478_v0  ;;  %v6525_v0 = vld [vmem:[#allocation10 + $0x1d4] ss:$8 sps:$4 sm:$0xff]  }
 0xb7d   :  { %3458 = vmatpush1.bf16.msra.mxu1 %v6481_v2  ;;  %3178 = vmatprep.subr.bf16.mxu0 %v6486_v4  ;;  %v6528_v2 = vld [vmem:[#allocation10 + $0x1e4] ss:$8 sps:$4 sm:$0xff]   ;;  %v6526_v4 = vld [vmem:[#allocation10 + $0x1e0] ss:$8 sps:$4 sm:$0xff]  }
 0xb7e   :  { %5931 = vmatprep.subr.bf16.mxu1 %v7034_v38 }
 0xbf7   :  { %v2677_v5 = vpop.xlane.xlu0 %2676 }
 0xbf8   :  { %v2681_v3 = vmul.f32 0.00390625, %v2677_v5  ;;  %v6531_v5 = vld [vmem:[#allocation10 + $0x1f4] ss:$8 sps:$4 sm:$0xff]  }
 0xbf9   :  { %v2680_v6 = vpop.xlane.xlu1 %2679 }
 0xbfa   :  { %v2683_v8 = vadd.f32 1e-05, %v2681_v3  ;;  %v2682_v10 = vmul.f32 0.00390625, %v2680_v6  ;;  %v6529_v3 = vld [vmem:[#allocation10 + $0x1f0] ss:$8 sps:$4 sm:$0xff]  }
 0xbfb   :  { %v5574_v6 = vld [vmem:[%s7716_s3 + $0x2] sm:$0x3] }
 0xbfc   :  { %6792 = vrsqrt.f32 %v2683_v8  ;;  %v2684_v11 = vadd.f32 1e-05, %v2682_v10  ;;  %v5640_v8 = vld [vmem:[%s7720_s7 + $0x2] sm:$0x3]  ;;  %v2762_v10 = vrot.slane %v5574_v6, %v7278_v41 }
 0xbfd   :  { %v3264_v14 = vrot.slane %v5640_v8, %v7284_v43  ;;  %v3260_v9 = vrot.slane %v5640_v8, %v7278_v41 }
 0xbfe   :  { %6794 = vrsqrt.f32 %v2684_v11  ;;  %v2766_v11 = vrot.slane %v5574_v6, %v7284_v43 }
 0xc06   :  { %v6793_v19 = vpop.eup %6792 }
 0xc07   :  { %v2687_v20 = vmul.f32 %v6793_v19, %v7473_v30  ;;  %v2688_v21 = vmul.f32 %v6793_v19, %v7476_v33 }
 0xc08   :  { %v6795_v22 = vpop.eup %6794 }
 0xc09   :  { %v2689_v25 = vmul.f32 %v6795_v22, %v7479_v35  ;;  %v2690_v26 = vmul.f32 %v6795_v22, %v7482_v36  ;;  %v2703_v28 = vmul.f32 %v2699_v18, %v2688_v21  ;;  %v2702_v29 = vmul.f32 %v2695_v17, %v2687_v20  ;;  %v6489_v36 = vld [vmem:[#allocation10 + $0x114] ss:$8 sps:$4 sm:$0xff]  }
 0xc0b   :  { %v2705_v31 = vmul.f32 %v2699_v18, %v2690_v26  ;;  %v2704_v34 = vmul.f32 %v2695_v17, %v2689_v25  ;;  %v7507_v44 = vadd.f32 %v2714_v24, %v2703_v28  ;;  %v7511_v30 = vadd.f32 %v2710_v23, %v2702_v29 }
 0xc0d   :  { %v7509_v7 = vadd.f32 %v2714_v24, %v2705_v31  ;;  %v7513_v33 = vadd.f32 %v2710_v23, %v2704_v34 }
 0xc0f   :  { %v2722_v13 = vpack.c.bf16 %v7509_v7, %v7507_v44  ;;  %v7519_v35 = vpack.c.bf16 %v7513_v33, %v7511_v30 }
 0xc11   :  { %2961 = vmatprep.mubr.bf16.mxu0 %v2722_v13  ;;  %3459 = vmatprep.mubr.bf16.mxu1 %v2722_v13 }
 0xc12   :  { %2962 = vmatmul.mubr.bf16.vlgmr.msra.gmra.mrb[32].mxu0 %v7519_v35  ;;  %3460 = vmatmul.mubr.bf16.vlgmr.msra.gmra.mrb[28].mxu1 %v7519_v35 }
 0xc13   :  { %3179 = vmatpush1.bf16.msra.mxu0 %v6484_v47  ;;  %3210 = vmatprep.mubr.bf16.mxu0 %v2722_v13 }
 0xc14   :  { %3180 = vmatprep.subr.bf16.mxu0 %v6489_v36  ;;  %5933 = vmatprep.mubr.msk.bf16.mxu1 %vm7035_vm0, %v7034_v38 }
 0xc17   :  { %3181 = vmatpush1.bf16.msra.mxu0 %v6487_v46 }
 0xc18   :  { %3182 = vmatprep.subr.bf16.mxu0 %v6492_v48 }
 0xc1b   :  { %3183 = vmatpush1.bf16.msra.mxu0 %v6490_v45 }
 0xc1c   :  { %3184 = vmatprep.subr.bf16.mxu0 %v6495_v32 }
 0xc1f   :  { %3185 = vmatpush1.bf16.msra.mxu0 %v6493_v12 }
 0xc20   :  { %3186 = vmatprep.subr.bf16.mxu0 %v6498_v49 }
 0xc23   :  { %3187 = vmatpush1.bf16.msra.mxu0 %v6496_v50 }
 0xc24   :  { %3188 = vmatprep.subr.bf16.mxu0 %v6501_v51  ;;  %v5607_v51 = vld [vmem:[%s7718_s5 + $0x2] sm:$0x3]  ;;  %s3480_s5 = sld [smem:[#allocation4]] }
 0xc27   :  { %3189 = vmatpush1.bf16.msra.mxu0 %v6499_v37  ;;  %v3011_v37 = vrot.slane %v5607_v51, %v7278_v41 }
 0xc28   :  { %3190 = vmatprep.subr.bf16.mxu0 %v6504_v52 }
 0xc2b   :  { %3191 = vmatpush1.bf16.msra.mxu0 %v6502_v53  ;;  %v3015_v53 = vrot.slane %v5607_v51, %v7284_v43 }
 0xc2c   :  { %3192 = vmatprep.subr.bf16.mxu0 %v6507_v39 }
 0xc2f   :  { %3193 = vmatpush1.bf16.msra.mxu0 %v6505_v42 }
 0xc30   :  { %3194 = vmatprep.subr.bf16.mxu0 %v6510_v54 }
 0xc33   :  { %3195 = vmatpush1.bf16.msra.mxu0 %v6508_v55 }
 0xc34   :  { %3196 = vmatprep.subr.bf16.mxu0 %v6513_v56 }
 0xc37   :  { %3197 = vmatpush1.bf16.msra.mxu0 %v6511_v57 }
 0xc38   :  { %3198 = vmatprep.subr.bf16.mxu0 %v6516_v58 }
 0xc3b   :  { %3199 = vmatpush1.bf16.msra.mxu0 %v6514_v59 }
 0xc3c   :  { %3200 = vmatprep.subr.bf16.mxu0 %v6519_v60 }
 0xc3f   :  { %3201 = vmatpush1.bf16.msra.mxu0 %v6517_v61 }
 0xc40   :  { %3202 = vmatprep.subr.bf16.mxu0 %v6522_v62 }
 0xc43   :  { %3203 = vmatpush1.bf16.msra.mxu0 %v6520_v63 }
 0xc44   :  { %3204 = vmatprep.subr.bf16.mxu0 %v6525_v0 }
 0xc47   :  { %3205 = vmatpush1.bf16.msra.mxu0 %v6523_v1  ;;  %v3481_v1 = vstv %s3480_s5 }
 0xc48   :  { %3206 = vmatprep.subr.bf16.mxu0 %v6528_v2  ;;  %vm3482_vm5 = vcmp.lt.s32.totalorder %v7315_v27, %v3481_v1  ;;  %v6543_v1 = vld [vmem:[#allocation13 + $0x134] ss:$8 sps:$4 sm:$0xff]  }
 0xc4b   :  { %3207 = vmatpush1.bf16.msra.mxu0 %v6526_v4 }
 0xc4c   :  { %3208 = vmatprep.subr.bf16.mxu0 %v6531_v5 }
 0xc4f   :  { %3209 = vmatpush1.bf16.msra.mxu0 %v6529_v3 }
 0xc50   :  { %5925 = vmatprep.subr.bf16.mxu0 %v7034_v38 }
 0xc52   :  { %3211 = vmatmul.mubr.bf16.vlgmr.msra.gmra.mrb[36].mxu0 %v7519_v35 }
 0xc53   :  { %5927 = vmatprep.mubr.msk.bf16.mxu0 %vm7035_vm0, %v7034_v38 }
 0xce5   :  { %v2963_v17 = vpop.f32.mrb[32].mxu0  ;;  %v3461_v18 = vpop.f32.mrb[28].mxu1 }
 0xce6   :  { %v2964_v19 = vadd.f32 %v2963_v17, %v2762_v10  ;;  %v2965_v20 = vpop.f32.mrb[33].mxu0  ;;  %v3463_v21 = vpop.f32.mrb[29].mxu1  ;;  %v3462_v26 = vadd.f32 %v3461_v18, %v3260_v9 }
 0xce7   :  { %v2966_v22 = vadd.f32 %v2965_v20, %v2766_v11  ;;  %v3464_v23 = vadd.f32 %v3463_v21, %v3264_v14  ;;  %v2967_v24 = vpop.f32.mrb[34].mxu0  ;;  %v3465_v25 = vpop.f32.mrb[30].mxu1 }
 0xce8   :  { %v2968_v28 = vadd.f32 %v2967_v24, %v2762_v10  ;;  %v3466_v29 = vadd.f32 %v3465_v25, %v3260_v9  ;;  %v2969_v31 = vpop.f32.mrb[35].mxu0  ;;  %v3467_v34 = vpop.f32.mrb[31].mxu1  ;;  %v3470_v35 = vmul.f32 0.088388346, %v2964_v19  ;;  %v3684_v19 = vstv %s5675_s24 }
 0xce9   :  { %v2970_v13 = vadd.f32 %v2969_v31, %v2766_v11  ;;  %v3468_v47 = vadd.f32 %v3467_v34, %v3264_v14  ;;  %v3471_v48 = vmul.f32 0.088388346, %v2966_v22  ;;  %vm3685_vm6 = vcmp.lt.s32.totalorder %v7315_v27, %v3684_v19 }
 0xcea   :  { %v3472_v36 = vmul.f32 0.088388346, %v2968_v28  ;;  %v7539_v46 = vpack.c.bf16 %v3466_v29, %v3462_v26 }
 0xceb   :  { %v3473_v45 = vmul.f32 0.088388346, %v2970_v13  ;;  %v7541_v32 = vpack.c.bf16 %v3468_v47, %v3464_v23 }
 0xcec   :  { %v3474_v12 = vpack.c.bf16 %v3472_v36, %v3470_v35  ;;  %v3540_v49 = vsel %vm978_vm1, %v7539_v46, 0 }
 0xced   :  { %v3475_v50 = vpack.c.bf16 %v3473_v45, %v3471_v48  ;;  %5932 = vmatpush3.bf16.msra.mxu1 %v3540_v49 }
 0xcee   :  { %5943 = vmatprep.subr.bf16.mxu1 %v7034_v38  ;;  %v3687_v62 = vrot.slane %v3474_v12, 4 }
 0xcef   :  { %v3795_v0 = vrot.slane %v3475_v50, 4 }
 0xd25   :  { %v3212_v52 = vpop.f32.mrb[36].mxu0 }
 0xd26   :  { %v3214_v39 = vpop.f32.mrb[37].mxu0  ;;  %v3213_v54 = vadd.f32 %v3212_v52, %v3011_v37 }
 0xd27   :  { %v3216_v42 = vpop.f32.mrb[38].mxu0  ;;  %v3215_v57 = vadd.f32 %v3214_v39, %v3015_v53 }
 0xd28   :  { %v3217_v55 = vadd.f32 %v3216_v42, %v3011_v37  ;;  %v3218_v56 = vpop.f32.mrb[39].mxu0 }
 0xd29   :  { %v3219_v58 = vadd.f32 %v3218_v56, %v3015_v53 }
 0xd2a   :  { %v3476_v59 = vpack.c.bf16 %v3217_v55, %v3213_v54 }
 0xd2b   :  { %v3477_v60 = vpack.c.bf16 %v3219_v58, %v3215_v57 }
 0xd2c   :  { %5926 = vmatpush3.bf16.xpose.msra.mxu0 %v3476_v59  ;;  %v3690_v61 = vrot.slane %v3476_v59, 4  ;;  %v6532_v59 = vld [vmem:[#allocation13 + $0x100] ss:$8 sps:$4 sm:$0xff]  }
 0xd2d   :  { %5937 = vmatprep.subr.bf16.mxu0 %v7034_v38  ;;  %v3798_v63 = vrot.slane %v3477_v60, 4 }
 0xd33   :  { %5928 = vmatmul.mubr.bf16.vlgmr.msra.gmra.mrb[40].mxu0 %v3474_v12 }
 0xd34   :  { %5938 = vmatpush3.bf16.xpose.msra.mxu0 %v3477_v60  ;;  %5939 = vmatprep.mubr.msk.bf16.mxu0 %vm7035_vm0, %v7034_v38  ;;  %v6534_v60 = vld [vmem:[#allocation13 + $0x104] ss:$8 sps:$4 sm:$0xff]  }
 0xd35   :  { %5949 = vmatprep.subr.bf16.mxu0 %v7034_v38 }
 0xd3b   :  { %5940 = vmatmul.mubr.bf16.vlgmr.msra.gmra.mrb[44].mxu0 %v3475_v50 }
 0xd3c   :  { %5950 = vmatpush3.bf16.xpose.msra.mxu0 %v3690_v61  ;;  %5951 = vmatprep.mubr.msk.bf16.mxu0 %vm7035_vm0, %v7034_v38  ;;  %v6537_v61 = vld [vmem:[#allocation13 + $0x114] ss:$8 sps:$4 sm:$0xff]  }
 0xd3d   :  { %5961 = vmatprep.subr.bf16.mxu0 %v7034_v38 }
 0xd43   :  { %5952 = vmatmul.mubr.bf16.vlgmr.msra.gmra.mrb[48].mxu0 %v3687_v62  ;;  %v6535_v62 = vld [vmem:[#allocation13 + $0x110] ss:$8 sps:$4 sm:$0xff]  }
 0xd44   :  { %5962 = vmatpush3.bf16.xpose.msra.mxu0 %v3798_v63  ;;  %5963 = vmatprep.mubr.msk.bf16.mxu0 %vm7035_vm0, %v7034_v38  ;;  %v6540_v63 = vld [vmem:[#allocation13 + $0x124] ss:$8 sps:$4 sm:$0xff]  }
 0xd45   :  { %4114 = vmatprep.subr.bf16.mxu0 %v6534_v60 }
 0xd4b   :  { %5964 = vmatmul.mubr.bf16.vlgmr.msra.gmra.mrb[52].mxu0 %v3795_v0  ;;  %v6538_v0 = vld [vmem:[#allocation13 + $0x120] ss:$8 sps:$4 sm:$0xff]  }
 0xd4c   :  { %4115 = vmatpush1.bf16.msra.mxu0 %v6532_v59 }
 0xd4d   :  { %4116 = vmatprep.subr.bf16.mxu0 %v6537_v61 }
 0xd50   :  { %4117 = vmatpush1.bf16.msra.mxu0 %v6535_v62 }
 0xd51   :  { %4118 = vmatprep.subr.bf16.mxu0 %v6540_v63 }
 0xd54   :  { %4119 = vmatpush1.bf16.msra.mxu0 %v6538_v0 }
 0xd55   :  { %4120 = vmatprep.subr.bf16.mxu0 %v6543_v1 }
 0xe06   :  { %v3517_v2 = vpop.f32.mrb[40].mxu0 }
 0xe07   :  { %v3523_v4 = vsel %vm3482_vm5, %v3517_v2, -1000000.0  ;;  %v5929_v5 = vpop.f32.mrb[41].mxu0  ;;  %v6541_v2 = vld [vmem:[#allocation13 + $0x130] ss:$8 sps:$4 sm:$0xff]  }
 0xe08   :  { %v3520_v3 = vpop.f32.mrb[42].mxu0  ;;  %v3524_v6 = vsel %vm962_vm3, %v3523_v4, -inf  ;;  %4121 = vmatpush1.bf16.msra.mxu0 %v6541_v2  ;;  %v6544_v5 = vld [vmem:[#allocation13 + $0x140] ss:$8 sps:$4 sm:$0xff]  }
 0xe09   :  { %3525 = vmax.xlane.f32.xlu0 %v3524_v6  ;;  %v5930_v8 = vpop.f32.mrb[43].mxu0  ;;  %v6549_v3 = vld [vmem:[#allocation13 + $0x154] ss:$8 sps:$4 sm:$0xff]   ;;  %v6547_v6 = vld [vmem:[#allocation13 + $0x150] ss:$8 sps:$4 sm:$0xff]  }
 0xe0a   :  { %v6552_v8 = vld [vmem:[#allocation13 + $0x164] ss:$8 sps:$4 sm:$0xff]  }
 0xe0e   :  { %v3617_v10 = vpop.f32.mrb[44].mxu0 }
 0xe0f   :  { %v3623_v11 = vsel %vm3482_vm5, %v3617_v10, -1000000.0  ;;  %v5941_v14 = vpop.f32.mrb[45].mxu0  ;;  %v6550_v10 = vld [vmem:[#allocation13 + $0x160] ss:$8 sps:$4 sm:$0xff]  }
 0xe10   :  { %v3620_v9 = vpop.f32.mrb[46].mxu0  ;;  %v3624_v17 = vsel %vm962_vm3, %v3623_v11, -inf  ;;  %v6553_v14 = vld [vmem:[#allocation13 + $0x170] ss:$8 sps:$4 sm:$0xff]  }
 0xe11   :  { %3625 = vmax.xlane.f32.xlu1 %v3624_v17  ;;  %v5942_v18 = vpop.f32.mrb[47].mxu0  ;;  %v6558_v9 = vld [vmem:[#allocation13 + $0x184] ss:$8 sps:$4 sm:$0xff]   ;;  %v6556_v17 = vld [vmem:[#allocation13 + $0x180] ss:$8 sps:$4 sm:$0xff]  }
 0xe16   :  { %v3726_v20 = vpop.f32.mrb[48].mxu0 }
 0xe17   :  { %v3732_v21 = vsel %vm3685_vm6, %v3726_v20, -1000000.0  ;;  %v5953_v22 = vpop.f32.mrb[49].mxu0 }
 0xe18   :  { %v3729_v23 = vpop.f32.mrb[50].mxu0  ;;  %v3733_v24 = vsel %vm962_vm3, %v3732_v21, -inf }
 0xe19   :  { %3734 = vmax.xlane.f32.xlu0 %v3733_v24  ;;  %v5954_v25 = vpop.f32.mrb[51].mxu0  ;;  %v3640_v23 = vsel %vm978_vm1, %v7541_v32, 0 }
 0xe1e   :  { %v3834_v26 = vpop.f32.mrb[52].mxu0 }
 0xe1f   :  { %v3840_v28 = vsel %vm3685_vm6, %v3834_v26, -1000000.0  ;;  %v5965_v29 = vpop.f32.mrb[53].mxu0  ;;  %v3746_v26 = vrot.slane %v7539_v46, 4 }
 0xe20   :  { %v3837_v31 = vpop.f32.mrb[54].mxu0  ;;  %v3841_v34 = vsel %vm962_vm3, %v3840_v28, -inf }
 0xe21   :  { %3842 = vmax.xlane.f32.xlu1 %v3841_v34  ;;  %v5966_v13 = vpop.f32.mrb[55].mxu0  ;;  %v3751_v31 = vsel %vm978_vm1, %v3746_v26, 0 }
 0xe96   :  { %v3526_v47 = vpop.xlane.xlu0 %3525 }
 0xe97   :  { %v3527_v35 = vsub.f32 %v3523_v4, %v3526_v47  ;;  %v6546_v4 = vld [vmem:[#allocation13 + $0x144] ss:$8 sps:$4 sm:$0xff]   ;;  %v3854_v47 = vrot.slane %v7541_v32, 4  ;;  %v6562_v32 = vld [vmem:[#allocation13 + $0x1a0] ss:$8 sps:$4 sm:$0xff]  }
 0xe98   :  { %4122 = vmatprep.subr.bf16.mxu0 %v6546_v4 }
 0xe99   :  { %v3528_v36 = vmul.f32 1.442695, %v3527_v35  ;;  %4123 = vmatpush1.bf16.msra.mxu0 %v6544_v5 }
 0xe9a   :  { %4124 = vmatprep.subr.bf16.mxu0 %v6549_v3 }
 0xe9b   :  { %6796 = vpow2.f32 %v3528_v36  ;;  %v3859_v36 = vsel %vm978_vm1, %v3854_v47, 0  ;;  %v6580_v47 = vld [vmem:[#allocation14 + $0x200] ss:$16 sps:$4 sm:$0xff]  }
 0xe9d   :  { %4125 = vmatpush1.bf16.msra.mxu0 %v6547_v6 }
 0xe9e   :  { %v3626_v27 = vpop.xlane.xlu1 %3625  ;;  %4126 = vmatprep.subr.bf16.mxu0 %v6552_v8 }
 0xe9f   :  { %v3627_v48 = vsub.f32 %v3623_v11, %v3626_v27  ;;  %v6555_v11 = vld [vmem:[#allocation13 + $0x174] ss:$8 sps:$4 sm:$0xff]  }
 0xea1   :  { %v3628_v45 = vmul.f32 1.442695, %v3627_v48  ;;  %4127 = vmatpush1.bf16.msra.mxu0 %v6550_v10 }
 0xea2   :  { %4128 = vmatprep.subr.bf16.mxu0 %v6555_v11 }
 0xea3   :  { %6798 = vpow2.f32 %v3628_v45 }
 0xea5   :  { %v6797_v12 = vpop.eup %6796  ;;  %4129 = vmatpush1.bf16.msra.mxu0 %v6553_v14 }
 0xea6   :  { %v3735_v49 = vpop.xlane.xlu0 %3734  ;;  %v3530_v50 = vsel %vm962_vm3, %v6797_v12, 0.0  ;;  %4130 = vmatprep.subr.bf16.mxu0 %v6558_v9  ;;  %v5678_v9 = vld [vmem:[%s7722_s9 + $0x2] sm:$0x3] }
 0xea7   :  { %v3736_v51 = vsub.f32 %v3732_v21, %v3735_v49  ;;  %3531 = vadd.xlane.f32.xlu0 %v3530_v50  ;;  %v6559_v49 = vld [vmem:[#allocation13 + $0x190] ss:$8 sps:$4 sm:$0xff]   ;;  %v6564_v50 = vld [vmem:[#allocation13 + $0x1a4] ss:$8 sps:$4 sm:$0xff]  }
 0xea9   :  { %v3737_v37 = vmul.f32 1.442695, %v3736_v51  ;;  %4131 = vmatpush1.bf16.msra.mxu0 %v6556_v17  ;;  %v6567_v51 = vld [vmem:[#allocation13 + $0x1b4] ss:$8 sps:$4 sm:$0xff]   ;;  %v3947_v17 = vrot.slane %v5678_v9, %v7278_v41 }
 0xeab   :  { %6800 = vpow2.f32 %v3737_v37  ;;  %v6565_v37 = vld [vmem:[#allocation13 + $0x1b0] ss:$8 sps:$4 sm:$0xff]  }
 0xead   :  { %v7567_v52 = vpop.eup %6798 }
 0xeae   :  { %v3843_v53 = vpop.xlane.xlu1 %3842  ;;  %v3630_v39 = vsel %vm962_vm3, %v7567_v52, 0.0 }
 0xeaf   :  { %v3844_v42 = vsub.f32 %v3840_v28, %v3843_v53  ;;  %3631 = vadd.xlane.f32.xlu1 %v3630_v39  ;;  %v6573_v53 = vld [vmem:[#allocation13 + $0x1d4] ss:$8 sps:$4 sm:$0xff]   ;;  %v6571_v39 = vld [vmem:[#allocation13 + $0x1d0] ss:$8 sps:$4 sm:$0xff]  }
 0xeb1   :  { %v3845_v54 = vmul.f32 1.442695, %v3844_v42  ;;  %v6574_v42 = vld [vmem:[#allocation13 + $0x1e0] ss:$8 sps:$4 sm:$0xff]  }
 0xeb3   :  { %6802 = vpow2.f32 %v3845_v54  ;;  %v6576_v54 = vld [vmem:[#allocation13 + $0x1e4] ss:$8 sps:$4 sm:$0xff]  }
 0xeb5   :  { %v7571_v55 = vpop.eup %6800 }
 0xeb6   :  { %v3739_v56 = vsel %vm962_vm3, %v7571_v55, 0.0 }
 0xeb7   :  { %3740 = vadd.xlane.f32.xlu0 %v3739_v56  ;;  %v6577_v56 = vld [vmem:[#allocation13 + $0x1f0] ss:$8 sps:$4 sm:$0xff]  }
 0xebd   :  { %v7575_v57 = vpop.eup %6802 }
 0xebe   :  { %v3847_v58 = vsel %vm962_vm3, %v7575_v57, 0.0 }
 0xebf   :  { %3848 = vadd.xlane.f32.xlu1 %v3847_v58 }
 0xf34   :  { %v3532_v18 = vpop.xlane.xlu0 %3531 }
 0xf35   :  { %6804 = vrcp.f32 %v3532_v18  ;;  %v3951_v18 = vrot.slane %v5678_v9, %v7284_v43 }
 0xf3c   :  { %v3632_v19 = vpop.xlane.xlu1 %3631 }
 0xf3d   :  { %6806 = vrcp.f32 %v3632_v19 }
 0xf3f   :  { %v6805_v20 = vpop.eup %6804 }
 0xf40   :  { %v3534_v21 = vmul.f32 %v6805_v20, %v6797_v12  ;;  %v6561_v12 = vld [vmem:[#allocation13 + $0x194] ss:$8 sps:$4 sm:$0xff]  }
 0xf41   :  { %4132 = vmatprep.subr.bf16.mxu0 %v6561_v12  ;;  %v6592_v12 = vld [vmem:[#allocation14 + $0x240] ss:$16 sps:$4 sm:$0xff]  }
 0xf42   :  { %v3535_v22 = vpack.c.bf16 %v3534_v21, %v3534_v21  ;;  %4133 = vmatpush1.bf16.msra.mxu0 %v6559_v49  ;;  %v6595_v49 = vld [vmem:[#allocation14 + $0x248] ss:$16 sps:$4 sm:$0xff]  }
 0xf43   :  { %4134 = vmatprep.subr.bf16.mxu0 %v6564_v50  ;;  %v6603_v50 = vld [vmem:[#allocation14 + $0x26c] ss:$16 sps:$4 sm:$0xff]  }
 0xf44   :  { %5934 = vmatmul.mubr.msk.bf16.vlgmr.msra.gmra.mrb[32].mxu1 %vm962_vm3, %v3535_v22  ;;  %v3741_v24 = vpop.xlane.xlu0 %3740 }
 0xf45   :  { %5944 = vmatpush3.bf16.msra.mxu1 %v3640_v23  ;;  %6808 = vrcp.f32 %v3741_v24  ;;  %5945 = vmatprep.mubr.msk.bf16.mxu1 %vm7035_vm0, %v7034_v38 }
 0xf46   :  { %5955 = vmatprep.subr.bf16.mxu1 %v7034_v38  ;;  %4135 = vmatpush1.bf16.msra.mxu0 %v6562_v32  ;;  %v6600_v32 = vld [vmem:[#allocation14 + $0x264] ss:$16 sps:$4 sm:$0xff]  }
 0xf47   :  { %v6807_v25 = vpop.eup %6806  ;;  %4136 = vmatprep.subr.bf16.mxu0 %v6567_v51  ;;  %v6598_v51 = vld [vmem:[#allocation14 + $0x260] ss:$16 sps:$4 sm:$0xff]  }
 0xf48   :  { %v3634_v28 = vmul.f32 %v6807_v25, %v7567_v52  ;;  %v6568_v52 = vld [vmem:[#allocation13 + $0x1c0] ss:$8 sps:$4 sm:$0xff]  }
 0xf4a   :  { %v3635_v29 = vpack.c.bf16 %v3634_v28, %v3634_v28  ;;  %4137 = vmatpush1.bf16.msra.mxu0 %v6565_v37  ;;  %v6601_v37 = vld [vmem:[#allocation14 + $0x268] ss:$16 sps:$4 sm:$0xff]  }
 0xf4c   :  { %5946 = vmatmul.mubr.msk.bf16.vlgmr.msra.gmra.mrb[36].mxu1 %vm962_vm3, %v3635_v29  ;;  %v3849_v34 = vpop.xlane.xlu1 %3848 }
 0xf4d   :  { %5956 = vmatpush3.bf16.msra.mxu1 %v3751_v31  ;;  %6810 = vrcp.f32 %v3849_v34  ;;  %5957 = vmatprep.mubr.msk.bf16.mxu1 %vm7035_vm0, %v7034_v38 }
 0xf4e   :  { %5967 = vmatprep.subr.bf16.mxu1 %v7034_v38 }
 0xf4f   :  { %v6809_v13 = vpop.eup %6808 }
 0xf50   :  { %v3743_v46 = vmul.f32 %v6809_v13, %v7571_v55  ;;  %v6579_v55 = vld [vmem:[#allocation13 + $0x1f4] ss:$8 sps:$4 sm:$0xff]  }
 0xf52   :  { %v3744_v35 = vpack.c.bf16 %v3743_v46, %v3743_v46  ;;  %v6582_v46 = vld [vmem:[#allocation14 + $0x204] ss:$16 sps:$4 sm:$0xff]  }
 0xf54   :  { %5958 = vmatmul.mubr.msk.bf16.vlgmr.msra.gmra.mrb[40].mxu1 %vm962_vm3, %v3744_v35  ;;  %v6583_v35 = vld [vmem:[#allocation14 + $0x208] ss:$16 sps:$4 sm:$0xff]  }
 0xf55   :  { %5968 = vmatpush3.bf16.msra.mxu1 %v3859_v36  ;;  %5969 = vmatprep.mubr.msk.bf16.mxu1 %vm7035_vm0, %v7034_v38  ;;  %v6570_v38 = vld [vmem:[#allocation13 + $0x1c4] ss:$8 sps:$4 sm:$0xff]  }
 0xf56   :  { %4138 = vmatprep.subr.bf16.mxu0 %v6570_v38  ;;  %v6588_v36 = vld [vmem:[#allocation14 + $0x224] ss:$16 sps:$4 sm:$0xff]   ;;  %4637 = vmatprep.subr.bf16.mxu1 %v6582_v46  ;;  %v6609_v38 = vld [vmem:[#allocation14 + $0x28c] ss:$16 sps:$4 sm:$0xff]   ;;  %v6646_v46 = vld [vmem:[#allocation14 + $0x360] ss:$16 sps:$4 sm:$0xff]  }
 0xf57   :  { %v6811_v27 = vpop.eup %6810  ;;  %4139 = vmatpush1.bf16.msra.mxu0 %v6568_v52  ;;  %v6606_v52 = vld [vmem:[#allocation14 + $0x284] ss:$16 sps:$4 sm:$0xff]  }
 0xf58   :  { %v3851_v48 = vmul.f32 %v6811_v27, %v7575_v57  ;;  %4140 = vmatprep.subr.bf16.mxu0 %v6573_v53  ;;  %v6591_v27 = vld [vmem:[#allocation14 + $0x22c] ss:$16 sps:$4 sm:$0xff]   ;;  %v6604_v53 = vld [vmem:[#allocation14 + $0x280] ss:$16 sps:$4 sm:$0xff]  }
 0xf5a   :  { %v3852_v45 = vpack.c.bf16 %v3851_v48, %v3851_v48  ;;  %v6594_v48 = vld [vmem:[#allocation14 + $0x244] ss:$16 sps:$4 sm:$0xff]  }
 0xf5b   :  { %4141 = vmatpush1.bf16.msra.mxu0 %v6571_v39  ;;  %v6607_v39 = vld [vmem:[#allocation14 + $0x288] ss:$16 sps:$4 sm:$0xff]  }
 0xf5c   :  { %5970 = vmatmul.mubr.msk.bf16.vlgmr.msra.gmra.mrb[44].mxu1 %vm962_vm3, %v3852_v45  ;;  %4142 = vmatprep.subr.bf16.mxu0 %v6576_v54  ;;  %v6597_v45 = vld [vmem:[#allocation14 + $0x24c] ss:$16 sps:$4 sm:$0xff]  }
 0xf5d   :  { %4638 = vmatpush1.bf16.msra.mxu1 %v6580_v47  ;;  %v6615_v54 = vld [vmem:[#allocation14 + $0x2ac] ss:$16 sps:$4 sm:$0xff]  }
 0xf5e   :  { %4639 = vmatprep.subr.bf16.mxu1 %v6588_v36  ;;  %v6651_v47 = vld [vmem:[#allocation14 + $0x36c] ss:$16 sps:$4 sm:$0xff]  }
 0xf5f   :  { %4143 = vmatpush1.bf16.msra.mxu0 %v6574_v42  ;;  %v6612_v42 = vld [vmem:[#allocation14 + $0x2a4] ss:$16 sps:$4 sm:$0xff]   ;;  %v6657_v36 = vld [vmem:[#allocation14 + $0x38c] ss:$16 sps:$4 sm:$0xff]  }
 0xf60   :  { %4144 = vmatprep.subr.bf16.mxu0 %v6579_v55  ;;  %v6610_v55 = vld [vmem:[#allocation14 + $0x2a0] ss:$16 sps:$4 sm:$0xff]  }
 0xf63   :  { %4145 = vmatpush1.bf16.msra.mxu0 %v6577_v56  ;;  %v6613_v56 = vld [vmem:[#allocation14 + $0x2a8] ss:$16 sps:$4 sm:$0xff]  }
0x1017   :  { %v3576_v57 = vpop.f32.mrb[32].mxu1 }
0x1018   :  { %v5935_v58 = vpop.f32.mrb[33].mxu1 }
0x1019   :  { %v3579_v59 = vpop.f32.mrb[34].mxu1  ;;  %v6621_v58 = vld [vmem:[#allocation14 + $0x2cc] ss:$16 sps:$4 sm:$0xff]  }
0x101a   :  { %v5936_v60 = vpop.f32.mrb[35].mxu1  ;;  %v6616_v59 = vld [vmem:[#allocation14 + $0x2c0] ss:$16 sps:$4 sm:$0xff]  }
0x101b   :  { %v6619_v60 = vld [vmem:[#allocation14 + $0x2c8] ss:$16 sps:$4 sm:$0xff]  }
0x101f   :  { %v3676_v61 = vpop.f32.mrb[36].mxu1 }
0x1020   :  { %v5947_v62 = vpop.f32.mrb[37].mxu1 }
0x1021   :  { %v3679_v63 = vpop.f32.mrb[38].mxu1  ;;  %v6627_v62 = vld [vmem:[#allocation14 + $0x2ec] ss:$16 sps:$4 sm:$0xff]  }
0x1022   :  { %v5948_v0 = vpop.f32.mrb[39].mxu1  ;;  %v6622_v63 = vld [vmem:[#allocation14 + $0x2e0] ss:$16 sps:$4 sm:$0xff]  }
0x1023   :  { %v6625_v0 = vld [vmem:[#allocation14 + $0x2e8] ss:$16 sps:$4 sm:$0xff]  }
0x1027   :  { %v3787_v1 = vpop.f32.mrb[40].mxu1 }
0x1028   :  { %v3906_v2 = vpack.c.bf16 %v3787_v1, %v3576_v57  ;;  %v5959_v4 = vpop.f32.mrb[41].mxu1  ;;  %v6618_v57 = vld [vmem:[#allocation14 + $0x2c4] ss:$16 sps:$4 sm:$0xff]  }
0x1029   :  { %v3790_v5 = vpop.f32.mrb[42].mxu1  ;;  %v6630_v1 = vld [vmem:[#allocation14 + $0x304] ss:$16 sps:$4 sm:$0xff]   ;;  %v6628_v4 = vld [vmem:[#allocation14 + $0x300] ss:$16 sps:$4 sm:$0xff]  }
0x102a   :  { %v5960_v3 = vpop.f32.mrb[43].mxu1  ;;  %v6631_v5 = vld [vmem:[#allocation14 + $0x308] ss:$16 sps:$4 sm:$0xff]  }
0x102b   :  { %v6636_v3 = vld [vmem:[#allocation14 + $0x324] ss:$16 sps:$4 sm:$0xff]  }
0x102f   :  { %v3895_v6 = vpop.f32.mrb[44].mxu1 }
0x1030   :  { %v3907_v8 = vpack.c.bf16 %v3895_v6, %v3676_v61  ;;  %v5971_v10 = vpop.f32.mrb[45].mxu1  ;;  %v6624_v61 = vld [vmem:[#allocation14 + $0x2e4] ss:$16 sps:$4 sm:$0xff]   ;;  %v6639_v6 = vld [vmem:[#allocation14 + $0x32c] ss:$16 sps:$4 sm:$0xff]  }
0x1031   :  { %v3898_v11 = vpop.f32.mrb[46].mxu1  ;;  %v6637_v10 = vld [vmem:[#allocation14 + $0x328] ss:$16 sps:$4 sm:$0xff]  }
0x1032   :  { %v5972_v14 = vpop.f32.mrb[47].mxu1  ;;  %4146 = vmatprep.mubr.bf16.mxu0 %v3907_v8  ;;  %v6634_v8 = vld [vmem:[#allocation14 + $0x320] ss:$16 sps:$4 sm:$0xff]  }
0x1033   :  { %4147 = vmatmul.mubr.bf16.vlgmr.msra.gmra.mrb[56].mxu0 %v3906_v2  ;;  %v6633_v2 = vld [vmem:[#allocation14 + $0x30c] ss:$16 sps:$4 sm:$0xff]  }
0x1106   :  { %v4148_v19 = vpop.f32.mrb[56].mxu0 }
0x1107   :  { %v4149_v20 = vadd.f32 %v4148_v19, %v3947_v17  ;;  %v4150_v21 = vpop.f32.mrb[57].mxu0 }
0x1108   :  { %v4151_v22 = vadd.f32 %v4150_v21, %v3951_v18  ;;  %v4152_v23 = vpop.f32.mrb[58].mxu0 }
0x1109   :  { %v7606_v24 = vadd.f32 %v4149_v20, %v7511_v30  ;;  %v4153_v25 = vadd.f32 %v4152_v23, %v3947_v17  ;;  %v4154_v26 = vpop.f32.mrb[59].mxu0 }
0x110a   :  { %v7609_v28 = vadd.f32 %v4151_v22, %v7507_v44  ;;  %v4155_v29 = vadd.f32 %v4154_v26, %v3951_v18  ;;  %v6585_v44 = vld [vmem:[#allocation14 + $0x20c] ss:$16 sps:$4 sm:$0xff]  }
0x110b   :  { %v7612_v31 = vadd.f32 %v4153_v25, %v7513_v33  ;;  %4680 = vmatprep.subr.bf16.mxu0 %v6585_v44  ;;  %v6586_v33 = vld [vmem:[#allocation14 + $0x220] ss:$16 sps:$4 sm:$0xff]   ;;  %v6654_v44 = vld [vmem:[#allocation14 + $0x384] ss:$16 sps:$4 sm:$0xff]  }
0x110c   :  { %v7615_v34 = vadd.f32 %v4155_v29, %v7509_v7  ;;  %v4165_v13 = vadd.f32 %v7609_v28, %v7606_v24  ;;  %4681 = vmatpush1.bf16.msra.mxu0 %v6583_v35  ;;  %v6589_v7 = vld [vmem:[#allocation14 + $0x228] ss:$16 sps:$4 sm:$0xff]   ;;  %4640 = vmatpush1.bf16.msra.mxu1 %v6586_v33  ;;  %v6642_v29 = vld [vmem:[#allocation14 + $0x344] ss:$16 sps:$4 sm:$0xff]  }
0x110d   :  { %4682 = vmatprep.subr.bf16.mxu0 %v6591_v27  ;;  %4641 = vmatprep.subr.bf16.mxu1 %v6594_v48  ;;  %v6649_v35 = vld [vmem:[#allocation14 + $0x368] ss:$16 sps:$4 sm:$0xff]   ;;  %v6652_v27 = vld [vmem:[#allocation14 + $0x380] ss:$16 sps:$4 sm:$0xff]   ;;  %v6663_v48 = vld [vmem:[#allocation14 + $0x3ac] ss:$16 sps:$4 sm:$0xff]  }
0x110e   :  { %4166 = vadd.xlane.f32.xlu0 %v4165_v13  ;;  %v4168_v30 = vadd.f32 %v7615_v34, %v7612_v31  ;;  %v6643_v13 = vld [vmem:[#allocation14 + $0x348] ss:$16 sps:$4 sm:$0xff]  }
0x110f   :  { %v6655_v33 = vld [vmem:[#allocation14 + $0x388] ss:$16 sps:$4 sm:$0xff]  }
0x1110   :  { %4169 = vadd.xlane.f32.xlu1 %v4168_v30  ;;  %4683 = vmatpush1.bf16.msra.mxu0 %v6589_v7  ;;  %v6648_v30 = vld [vmem:[#allocation14 + $0x364] ss:$16 sps:$4 sm:$0xff]  }
0x1111   :  { %4684 = vmatprep.subr.bf16.mxu0 %v6597_v45  ;;  %4642 = vmatpush1.bf16.msra.mxu1 %v6592_v12  ;;  %v6660_v7 = vld [vmem:[#allocation14 + $0x3a4] ss:$16 sps:$4 sm:$0xff]   ;;  %v6658_v45 = vld [vmem:[#allocation14 + $0x3a0] ss:$16 sps:$4 sm:$0xff]   ;;  %v6661_v12 = vld [vmem:[#allocation14 + $0x3a8] ss:$16 sps:$4 sm:$0xff]  }
0x1112   :  { %4643 = vmatprep.subr.bf16.mxu1 %v6600_v32  ;;  %v6666_v32 = vld [vmem:[#allocation14 + $0x3c4] ss:$16 sps:$4 sm:$0xff]  }
0x1114   :  { %4685 = vmatpush1.bf16.msra.mxu0 %v6595_v49  ;;  %v6664_v49 = vld [vmem:[#allocation14 + $0x3c0] ss:$16 sps:$4 sm:$0xff]  }
0x1115   :  { %4686 = vmatprep.subr.bf16.mxu0 %v6603_v50  ;;  %4644 = vmatpush1.bf16.msra.mxu1 %v6598_v51  ;;  %v6667_v50 = vld [vmem:[#allocation14 + $0x3c8] ss:$16 sps:$4 sm:$0xff]   ;;  %v6669_v51 = vld [vmem:[#allocation14 + $0x3cc] ss:$16 sps:$4 sm:$0xff]  }
0x1116   :  { %4645 = vmatprep.subr.bf16.mxu1 %v6606_v52  ;;  %v6675_v52 = vld [vmem:[#allocation14 + $0x3ec] ss:$16 sps:$4 sm:$0xff]  }
0x1118   :  { %4687 = vmatpush1.bf16.msra.mxu0 %v6601_v37  ;;  %v6672_v37 = vld [vmem:[#allocation14 + $0x3e4] ss:$16 sps:$4 sm:$0xff]  }
0x1119   :  { %4688 = vmatprep.subr.bf16.mxu0 %v6609_v38  ;;  %4646 = vmatpush1.bf16.msra.mxu1 %v6604_v53  ;;  %v6670_v38 = vld [vmem:[#allocation14 + $0x3e0] ss:$16 sps:$4 sm:$0xff]   ;;  %v6673_v53 = vld [vmem:[#allocation14 + $0x3e8] ss:$16 sps:$4 sm:$0xff]  }
0x111a   :  { %4647 = vmatprep.subr.bf16.mxu1 %v6612_v42 }
0x111c   :  { %4689 = vmatpush1.bf16.msra.mxu0 %v6607_v39  ;;  %v6678_v39 = vld [vmem:[#allocation16 + $0x204] ss:$8 sps:$4 sm:$0xff]  }
0x111d   :  { %4690 = vmatprep.subr.bf16.mxu0 %v6615_v54  ;;  %4648 = vmatpush1.bf16.msra.mxu1 %v6610_v55 }
0x111e   :  { %4649 = vmatprep.subr.bf16.mxu1 %v6618_v57 }
0x1120   :  { %4691 = vmatpush1.bf16.msra.mxu0 %v6613_v56 }
0x1121   :  { %4692 = vmatprep.subr.bf16.mxu0 %v6621_v58  ;;  %4650 = vmatpush1.bf16.msra.mxu1 %v6616_v59  ;;  %v5711_v59 = vld [vmem:[%s7723_s10 + $0x2] sm:$0x3] }
0x1122   :  { %4651 = vmatprep.subr.bf16.mxu1 %v6624_v61  ;;  %v4201_v61 = vrot.slane %v5711_v59, %v7278_v41 }
0x1124   :  { %4693 = vmatpush1.bf16.msra.mxu0 %v6619_v60  ;;  %v5712_v60 = vld [vmem:[%s7750_s27 + $0x2] sm:$0x3] }
0x1125   :  { %4694 = vmatprep.subr.bf16.mxu0 %v6627_v62  ;;  %4652 = vmatpush1.bf16.msra.mxu1 %v6622_v63  ;;  %v4205_v62 = vrot.slane %v5711_v59, %v7284_v43 }
0x1126   :  { %4653 = vmatprep.subr.bf16.mxu1 %v6630_v1 }
0x1128   :  { %4695 = vmatpush1.bf16.msra.mxu0 %v6625_v0 }
0x1129   :  { %4696 = vmatprep.subr.bf16.mxu0 %v6633_v2  ;;  %4654 = vmatpush1.bf16.msra.mxu1 %v6628_v4  ;;  %v4216_v4 = vrot.slane %v5712_v60, %v7278_v41 }
0x112a   :  { %4655 = vmatprep.subr.bf16.mxu1 %v6636_v3 }
0x112c   :  { %4697 = vmatpush1.bf16.msra.mxu0 %v6631_v5  ;;  %v4220_v5 = vrot.slane %v5712_v60, %v7284_v43 }
0x112d   :  { %4698 = vmatprep.subr.bf16.mxu0 %v6639_v6  ;;  %4656 = vmatpush1.bf16.msra.mxu1 %v6634_v8 }
0x112e   :  { %4657 = vmatprep.subr.bf16.mxu1 %v6642_v29  ;;  %v6685_v29 = vld [vmem:[#allocation16 + $0x230] ss:$8 sps:$4 sm:$0xff]  }
0x1130   :  { %4699 = vmatpush1.bf16.msra.mxu0 %v6637_v10 }
0x119b   :  { %v4167_v11 = vpop.xlane.xlu0 %4166 }
0x119c   :  { %v4171_v14 = vmul.f32 0.00390625, %v4167_v11 }
0x119d   :  { %v4170_v9 = vpop.xlane.xlu1 %4169 }
0x119e   :  { %v7622_v17 = vsub.f32 %v7606_v24, %v4171_v14  ;;  %v7625_v18 = vsub.f32 %v7609_v28, %v4171_v14  ;;  %v4172_v19 = vmul.f32 0.00390625, %v4170_v9 }
0x11a0   :  { %v7628_v20 = vsub.f32 %v7612_v31, %v4172_v19  ;;  %v7631_v21 = vsub.f32 %v7615_v34, %v4172_v19  ;;  %v4177_v22 = vmul.f32 %v7622_v17, %v7622_v17  ;;  %v4178_v23 = vmul.f32 %v7625_v18, %v7625_v18  ;;  %v6645_v31 = vld [vmem:[#allocation14 + $0x34c] ss:$16 sps:$4 sm:$0xff]   ;;  %v6640_v34 = vld [vmem:[#allocation14 + $0x340] ss:$16 sps:$4 sm:$0xff]  }
0x11a1   :  { %4700 = vmatprep.subr.bf16.mxu0 %v6645_v31  ;;  %4658 = vmatpush1.bf16.msra.mxu1 %v6640_v34  ;;  %v6690_v31 = vld [vmem:[#allocation16 + $0x244] ss:$8 sps:$4 sm:$0xff]   ;;  %v6688_v34 = vld [vmem:[#allocation16 + $0x240] ss:$8 sps:$4 sm:$0xff]  }
0x11a2   :  { %v4181_v25 = vadd.f32 %v4178_v23, %v4177_v22  ;;  %v4179_v24 = vmul.f32 %v7628_v20, %v7628_v20  ;;  %v4180_v26 = vmul.f32 %v7631_v21, %v7631_v21  ;;  %4701 = vmatpush1.bf16.msra.mxu0 %v6643_v13  ;;  %4659 = vmatprep.subr.bf16.mxu1 %v6648_v30  ;;  %v6676_v23 = vld [vmem:[#allocation16 + $0x200] ss:$8 sps:$4 sm:$0xff]   ;;  %v6693_v13 = vld [vmem:[#allocation16 + $0x254] ss:$8 sps:$4 sm:$0xff]   ;;  %v6691_v30 = vld [vmem:[#allocation16 + $0x250] ss:$8 sps:$4 sm:$0xff]  }
0x11a3   :  { %4702 = vmatprep.subr.bf16.mxu0 %v6651_v47  ;;  %v6696_v47 = vld [vmem:[#allocation16 + $0x264] ss:$8 sps:$4 sm:$0xff]  }
0x11a4   :  { %4182 = vadd.xlane.f32.xlu0 %v4181_v25  ;;  %v4184_v28 = vadd.f32 %v4180_v26, %v4179_v24  ;;  %v6679_v25 = vld [vmem:[#allocation16 + $0x210] ss:$8 sps:$4 sm:$0xff]   ;;  %v6684_v24 = vld [vmem:[#allocation16 + $0x224] ss:$8 sps:$4 sm:$0xff]   ;;  %v6682_v26 = vld [vmem:[#allocation16 + $0x220] ss:$8 sps:$4 sm:$0xff]  }
0x11a5   :  { %4660 = vmatpush1.bf16.msra.mxu1 %v6646_v46  ;;  %v6694_v46 = vld [vmem:[#allocation16 + $0x260] ss:$8 sps:$4 sm:$0xff]  }
0x11a6   :  { %4185 = vadd.xlane.f32.xlu1 %v4184_v28  ;;  %4703 = vmatpush1.bf16.msra.mxu0 %v6649_v35  ;;  %v6687_v28 = vld [vmem:[#allocation16 + $0x234] ss:$8 sps:$4 sm:$0xff]  }
0x11a7   :  { %4661 = vmatprep.subr.bf16.mxu1 %v6654_v44  ;;  %4704 = vmatprep.subr.bf16.mxu0 %v6657_v36  ;;  %v6699_v35 = vld [vmem:[#allocation16 + $0x274] ss:$8 sps:$4 sm:$0xff]   ;;  %v6697_v44 = vld [vmem:[#allocation16 + $0x270] ss:$8 sps:$4 sm:$0xff]   ;;  %v6702_v36 = vld [vmem:[#allocation16 + $0x284] ss:$8 sps:$4 sm:$0xff]  }
0x11a9   :  { %4662 = vmatpush1.bf16.msra.mxu1 %v6652_v27  ;;  %v6700_v27 = vld [vmem:[#allocation16 + $0x280] ss:$8 sps:$4 sm:$0xff]  }
0x11aa   :  { %4705 = vmatpush1.bf16.msra.mxu0 %v6655_v33  ;;  %4663 = vmatprep.subr.bf16.mxu1 %v6660_v7  ;;  %v6705_v33 = vld [vmem:[#allocation16 + $0x294] ss:$8 sps:$4 sm:$0xff]   ;;  %v6703_v7 = vld [vmem:[#allocation16 + $0x290] ss:$8 sps:$4 sm:$0xff]  }
0x11ab   :  { %4706 = vmatprep.subr.bf16.mxu0 %v6663_v48  ;;  %v6708_v48 = vld [vmem:[#allocation16 + $0x2a4] ss:$8 sps:$4 sm:$0xff]  }
0x11ad   :  { %4664 = vmatpush1.bf16.msra.mxu1 %v6658_v45  ;;  %v6706_v45 = vld [vmem:[#allocation16 + $0x2a0] ss:$8 sps:$4 sm:$0xff]  }
0x11ae   :  { %4707 = vmatpush1.bf16.msra.mxu0 %v6661_v12  ;;  %4665 = vmatprep.subr.bf16.mxu1 %v6666_v32  ;;  %v6711_v12 = vld [vmem:[#allocation16 + $0x2b4] ss:$8 sps:$4 sm:$0xff]   ;;  %v6714_v32 = vld [vmem:[#allocation16 + $0x2c4] ss:$8 sps:$4 sm:$0xff]  }
0x11af   :  { %4708 = vmatprep.subr.bf16.mxu0 %v6669_v51  ;;  %v6717_v51 = vld [vmem:[#allocation16 + $0x2d4] ss:$8 sps:$4 sm:$0xff]  }
0x11b1   :  { %4666 = vmatpush1.bf16.msra.mxu1 %v6664_v49  ;;  %v6709_v49 = vld [vmem:[#allocation16 + $0x2b0] ss:$8 sps:$4 sm:$0xff]  }
0x11b2   :  { %4709 = vmatpush1.bf16.msra.mxu0 %v6667_v50  ;;  %4667 = vmatprep.subr.bf16.mxu1 %v6672_v37  ;;  %v6712_v50 = vld [vmem:[#allocation16 + $0x2c0] ss:$8 sps:$4 sm:$0xff]   ;;  %v6715_v37 = vld [vmem:[#allocation16 + $0x2d0] ss:$8 sps:$4 sm:$0xff]  }
0x11b3   :  { %4710 = vmatprep.subr.bf16.mxu0 %v6675_v52  ;;  %v6720_v52 = vld [vmem:[#allocation16 + $0x2e4] ss:$8 sps:$4 sm:$0xff]  }
0x11b5   :  { %4668 = vmatpush1.bf16.msra.mxu1 %v6670_v38  ;;  %v6718_v38 = vld [vmem:[#allocation16 + $0x2e0] ss:$8 sps:$4 sm:$0xff]  }
0x11b6   :  { %4711 = vmatpush1.bf16.msra.mxu0 %v6673_v53  ;;  %5133 = vmatprep.subr.bf16.mxu1 %v6678_v39  ;;  %v6723_v53 = vld [vmem:[#allocation16 + $0x2f4] ss:$8 sps:$4 sm:$0xff]   ;;  %v6721_v39 = vld [vmem:[#allocation16 + $0x2f0] ss:$8 sps:$4 sm:$0xff]  }
0x1231   :  { %v4183_v42 = vpop.xlane.xlu0 %4182 }
0x1232   :  { %v4187_v54 = vmul.f32 0.00390625, %v4183_v42  ;;  %v6726_v42 = vld [vmem:[#allocation16 + $0x304] ss:$8 sps:$4 sm:$0xff]  }
0x1233   :  { %v4186_v55 = vpop.xlane.xlu1 %4185 }
0x1234   :  { %v4189_v56 = vadd.f32 1e-05, %v4187_v54  ;;  %v4188_v57 = vmul.f32 0.00390625, %v4186_v55  ;;  %v5713_v54 = vld [vmem:[%s7726_s13 + $0x4] sm:$0xf] }
0x1235   :  { %v4300_v55 = vrot.slane %v5713_v54, %v7278_v41 }
0x1236   :  { %6812 = vrsqrt.f32 %v4189_v56  ;;  %v4190_v58 = vadd.f32 1e-05, %v4188_v57  ;;  %v4308_v56 = vrot.slane %v5713_v54, %v1743_v15  ;;  %v4304_v57 = vrot.slane %v5713_v54, %v7284_v43 }
0x1238   :  { %6814 = vrsqrt.f32 %v4190_v58  ;;  %v4312_v58 = vrot.slane %v5713_v54, %v1747_v16  ;;  %v6765_v54 = vld [vmem:[#allocation16 + $0x3d4] ss:$8 sps:$4 sm:$0xff]  }
0x1240   :  { %v6813_v63 = vpop.eup %6812 }
0x1241   :  { %v4193_v0 = vmul.f32 %v6813_v63, %v7622_v17  ;;  %v4194_v1 = vmul.f32 %v6813_v63, %v7625_v18 }
0x1242   :  { %v6815_v2 = vpop.eup %6814 }
0x1243   :  { %v4195_v3 = vmul.f32 %v6815_v2, %v7628_v20  ;;  %v4196_v6 = vmul.f32 %v6815_v2, %v7631_v21  ;;  %v4209_v8 = vmul.f32 %v4205_v62, %v4194_v1  ;;  %v4208_v10 = vmul.f32 %v4201_v61, %v4193_v0  ;;  %v6681_v21 = vld [vmem:[#allocation16 + $0x214] ss:$8 sps:$4 sm:$0xff]  }
0x1245   :  { %v4211_v11 = vmul.f32 %v4205_v62, %v4196_v6  ;;  %v4210_v14 = vmul.f32 %v4201_v61, %v4195_v3  ;;  %v7655_v9 = vadd.f32 %v4220_v5, %v4209_v8  ;;  %v7659_v17 = vadd.f32 %v4216_v4, %v4208_v10 }
0x1247   :  { %v7657_v19 = vadd.f32 %v4220_v5, %v4211_v11  ;;  %v7661_v18 = vadd.f32 %v4216_v4, %v4210_v14 }
0x1249   :  { %v4228_v22 = vpack.c.bf16 %v7657_v19, %v7655_v9  ;;  %v4227_v20 = vpack.c.bf16 %v7661_v18, %v7659_v17 }
0x124b   :  { %4669 = vmatprep.mubr.bf16.mxu1 %v4228_v22  ;;  %4712 = vmatprep.mubr.bf16.mxu0 %v4228_v22 }
0x124c   :  { %4670 = vmatmul.mubr.bf16.vlgmr.msra.gmra.mrb[48].mxu1 %v4227_v20  ;;  %4713 = vmatmul.mubr.bf16.vlgmr.msra.gmra.mrb[60].mxu0 %v4227_v20 }
0x124d   :  { %5134 = vmatpush1.bf16.msra.mxu1 %v6676_v23 }
0x124e   :  { %5135 = vmatprep.subr.bf16.mxu1 %v6681_v21 }
0x1251   :  { %5136 = vmatpush1.bf16.msra.mxu1 %v6679_v25 }
0x1252   :  { %5137 = vmatprep.subr.bf16.mxu1 %v6684_v24 }
0x1255   :  { %5138 = vmatpush1.bf16.msra.mxu1 %v6682_v26 }
0x1256   :  { %5139 = vmatprep.subr.bf16.mxu1 %v6687_v28 }
0x1259   :  { %5140 = vmatpush1.bf16.msra.mxu1 %v6685_v29 }
0x125a   :  { %5141 = vmatprep.subr.bf16.mxu1 %v6690_v31  ;;  %v6724_v31 = vld [vmem:[#allocation16 + $0x300] ss:$8 sps:$4 sm:$0xff]  }
0x125d   :  { %5142 = vmatpush1.bf16.msra.mxu1 %v6688_v34  ;;  %v6729_v34 = vld [vmem:[#allocation16 + $0x314] ss:$8 sps:$4 sm:$0xff]  }
0x125e   :  { %5143 = vmatprep.subr.bf16.mxu1 %v6693_v13  ;;  %v6727_v13 = vld [vmem:[#allocation16 + $0x310] ss:$8 sps:$4 sm:$0xff]  }
0x1261   :  { %5144 = vmatpush1.bf16.msra.mxu1 %v6691_v30  ;;  %v6732_v30 = vld [vmem:[#allocation16 + $0x324] ss:$8 sps:$4 sm:$0xff]  }
0x1262   :  { %5145 = vmatprep.subr.bf16.mxu1 %v6696_v47  ;;  %v6730_v47 = vld [vmem:[#allocation16 + $0x320] ss:$8 sps:$4 sm:$0xff]  }
0x1265   :  { %5146 = vmatpush1.bf16.msra.mxu1 %v6694_v46  ;;  %v6735_v46 = vld [vmem:[#allocation16 + $0x334] ss:$8 sps:$4 sm:$0xff]  }
0x1266   :  { %5147 = vmatprep.subr.bf16.mxu1 %v6699_v35  ;;  %v6733_v35 = vld [vmem:[#allocation16 + $0x330] ss:$8 sps:$4 sm:$0xff]  }
0x1269   :  { %5148 = vmatpush1.bf16.msra.mxu1 %v6697_v44  ;;  %v6738_v44 = vld [vmem:[#allocation16 + $0x344] ss:$8 sps:$4 sm:$0xff]  }
0x126a   :  { %5149 = vmatprep.subr.bf16.mxu1 %v6702_v36  ;;  %v6736_v36 = vld [vmem:[#allocation16 + $0x340] ss:$8 sps:$4 sm:$0xff]  }
0x126d   :  { %5150 = vmatpush1.bf16.msra.mxu1 %v6700_v27  ;;  %v6741_v27 = vld [vmem:[#allocation16 + $0x354] ss:$8 sps:$4 sm:$0xff]  }
0x126e   :  { %5151 = vmatprep.subr.bf16.mxu1 %v6705_v33  ;;  %v6739_v33 = vld [vmem:[#allocation16 + $0x350] ss:$8 sps:$4 sm:$0xff]  }
0x1271   :  { %5152 = vmatpush1.bf16.msra.mxu1 %v6703_v7  ;;  %v6744_v7 = vld [vmem:[#allocation16 + $0x364] ss:$8 sps:$4 sm:$0xff]  }
0x1272   :  { %5153 = vmatprep.subr.bf16.mxu1 %v6708_v48  ;;  %v6742_v48 = vld [vmem:[#allocation16 + $0x360] ss:$8 sps:$4 sm:$0xff]  }
0x1275   :  { %5154 = vmatpush1.bf16.msra.mxu1 %v6706_v45  ;;  %v6747_v45 = vld [vmem:[#allocation16 + $0x374] ss:$8 sps:$4 sm:$0xff]  }
0x1276   :  { %5155 = vmatprep.subr.bf16.mxu1 %v6711_v12  ;;  %v6745_v12 = vld [vmem:[#allocation16 + $0x370] ss:$8 sps:$4 sm:$0xff]  }
0x1279   :  { %5156 = vmatpush1.bf16.msra.mxu1 %v6709_v49  ;;  %v6750_v49 = vld [vmem:[#allocation16 + $0x384] ss:$8 sps:$4 sm:$0xff]  }
0x127a   :  { %5157 = vmatprep.subr.bf16.mxu1 %v6714_v32  ;;  %v6748_v32 = vld [vmem:[#allocation16 + $0x380] ss:$8 sps:$4 sm:$0xff]  }
0x127d   :  { %5158 = vmatpush1.bf16.msra.mxu1 %v6712_v50  ;;  %v6753_v50 = vld [vmem:[#allocation16 + $0x394] ss:$8 sps:$4 sm:$0xff]  }
0x127e   :  { %5159 = vmatprep.subr.bf16.mxu1 %v6717_v51  ;;  %v6751_v51 = vld [vmem:[#allocation16 + $0x390] ss:$8 sps:$4 sm:$0xff]  }
0x1281   :  { %5160 = vmatpush1.bf16.msra.mxu1 %v6715_v37  ;;  %v6756_v37 = vld [vmem:[#allocation16 + $0x3a4] ss:$8 sps:$4 sm:$0xff]  }
0x1282   :  { %5161 = vmatprep.subr.bf16.mxu1 %v6720_v52  ;;  %v6754_v52 = vld [vmem:[#allocation16 + $0x3a0] ss:$8 sps:$4 sm:$0xff]  }
0x1285   :  { %5162 = vmatpush1.bf16.msra.mxu1 %v6718_v38  ;;  %v6759_v38 = vld [vmem:[#allocation16 + $0x3b4] ss:$8 sps:$4 sm:$0xff]  }
0x1286   :  { %5163 = vmatprep.subr.bf16.mxu1 %v6723_v53  ;;  %v6757_v53 = vld [vmem:[#allocation16 + $0x3b0] ss:$8 sps:$4 sm:$0xff]  }
0x1289   :  { %5164 = vmatpush1.bf16.msra.mxu1 %v6721_v39  ;;  %v6762_v39 = vld [vmem:[#allocation16 + $0x3c4] ss:$8 sps:$4 sm:$0xff]  }
0x128a   :  { %5176 = vmatprep.subr.bf16.mxu1 %v6726_v42  ;;  %v6760_v42 = vld [vmem:[#allocation16 + $0x3c0] ss:$8 sps:$4 sm:$0xff]  }
0x131f   :  { %v4671_v59 = vpop.f32.mrb[48].mxu1  ;;  %v4714_v60 = vpop.f32.mrb[60].mxu0 }
0x1320   :  { %v4672_v61 = vadd.f32 %v4671_v59, %v4300_v55  ;;  %v4715_v62 = vadd.f32 %v4714_v60, %v4308_v56  ;;  %v4673_v63 = vpop.f32.mrb[49].mxu1  ;;  %v4716_v0 = vpop.f32.mrb[61].mxu0  ;;  %v6769_v59 = vld [vmem:[#allocation16 + $0x3f0] ss:$8 sps:$4 sm:$0xff]  }
0x1321   :  { %v4674_v1 = vadd.f32 %v4673_v63, %v4304_v57  ;;  %v4717_v2 = vadd.f32 %v4716_v0, %v4312_v58  ;;  %v4675_v4 = vpop.f32.mrb[50].mxu1  ;;  %v4718_v5 = vpop.f32.mrb[62].mxu0  ;;  %v5778_v60 = vld [vmem:[%s7728_s15 + $0x2] sm:$0x3] }
0x1322   :  { %v4676_v3 = vadd.f32 %v4675_v4, %v4300_v55  ;;  %v4719_v6 = vadd.f32 %v4718_v5, %v4308_v56  ;;  %v4677_v8 = vpop.f32.mrb[51].mxu1  ;;  %v4720_v10 = vpop.f32.mrb[63].mxu0  ;;  %v4723_v14 = vmax.f32 %v4672_v61, 0.0  ;;  %v4725_v22 = vmax.f32 %v4715_v62, 0.0  ;;  %v6763_v55 = vld [vmem:[#allocation16 + $0x3d0] ss:$8 sps:$4 sm:$0xff]  }
0x1323   :  { %v4678_v15 = vadd.f32 %v4677_v8, %v4304_v57  ;;  %v4721_v11 = vadd.f32 %v4720_v10, %v4312_v58  ;;  %v4724_v20 = vmax.f32 %v4674_v1, 0.0  ;;  %v4726_v23 = vmax.f32 %v4717_v2, 0.0  ;;  %v6768_v56 = vld [vmem:[#allocation16 + $0x3e4] ss:$8 sps:$4 sm:$0xff]   ;;  %v6766_v57 = vld [vmem:[#allocation16 + $0x3e0] ss:$8 sps:$4 sm:$0xff]  }
0x1324   :  { %v4727_v40 = vmax.f32 %v4676_v3, 0.0  ;;  %v4729_v16 = vmax.f32 %v4719_v6, 0.0  ;;  %v6771_v58 = vld [vmem:[#allocation16 + $0x3f4] ss:$8 sps:$4 sm:$0xff]   ;;  %v4806_v61 = vrot.slane %v5778_v60, %v7278_v41  ;;  %v4810_v62 = vrot.slane %v5778_v60, %v7284_v43 }
0x1325   :  { %v4728_v21 = vmax.f32 %v4678_v15, 0.0  ;;  %v4730_v25 = vmax.f32 %v4721_v11, 0.0 }
0x1326   :  { %v4731_v24 = vpack.c.bf16 %v4727_v40, %v4723_v14  ;;  %v7676_v26 = vpack.c.bf16 %v4729_v16, %v4725_v22 }
0x1327   :  { %v4732_v28 = vpack.c.bf16 %v4728_v21, %v4724_v20  ;;  %v4734_v29 = vpack.c.bf16 %v4730_v25, %v4726_v23 }
0x1329   :  { %5165 = vmatprep.mubr.bf16.mxu1 %v4732_v28 }
0x132a   :  { %5166 = vmatmul.mubr.bf16.vlgmr.msra.gmra.mrb[52].mxu1 %v4731_v24 }
0x132b   :  { %5177 = vmatpush1.bf16.msra.mxu1 %v6724_v31  ;;  %5208 = vmatprep.mubr.bf16.mxu1 %v4734_v29 }
0x132c   :  { %5178 = vmatprep.subr.bf16.mxu1 %v6729_v34 }
0x132f   :  { %5179 = vmatpush1.bf16.msra.mxu1 %v6727_v13 }
0x1330   :  { %5180 = vmatprep.subr.bf16.mxu1 %v6732_v30 }
0x1333   :  { %5181 = vmatpush1.bf16.msra.mxu1 %v6730_v47 }
0x1334   :  { %5182 = vmatprep.subr.bf16.mxu1 %v6735_v46 }
0x1337   :  { %5183 = vmatpush1.bf16.msra.mxu1 %v6733_v35  ;;  %v5843_v35 = vld [vmem:[%s7729_s16 + $0x2] sm:$0x3]  ;;  %s7036_s16 = smov [#allocation17]  }
0x1338   :  { %5184 = vmatprep.subr.bf16.mxu1 %v6738_v44  ;;  %v5844_v44 = vld [vmem:[%s7730_s17 + $0x2] sm:$0x3]  ;;  %s5298_s14 = sshll.u32 %s7036_s16, 4  ;;  %s5299_s14 = int_to_ptr.vmem [resolvable:$true] %s5298_s14 }
0x1339   :  { %s6988_s17 = scalar_lea.vmem %s5299_s14, 512  ;;  %p6993_p4 = scmp.lt.s32.totalorder %s5299_s14, %s5299_s14 }
0x133a   :  { %p6989_p3 = scmp.ne.s32.totalorder %s5299_s14, %s6988_s17  ;;  %p6994_p5 = scmp.lt.s32.totalorder %s6988_s17, %s6988_s17 }
0x133b   :  { %5185 = vmatpush1.bf16.msra.mxu1 %v6736_v36  ;;  %v5263_v36 = vrot.slane %v5843_v35, %v7278_v41 }
0x133c   :  { %5186 = vmatprep.subr.bf16.mxu1 %v6741_v27  ;;  %v5267_v27 = vrot.slane %v5843_v35, %v7284_v43  ;;  %p6995_p6 = por %p6994_p5, %p6993_p4 }
0x133e   :  { %p6996_p7 = pnand %p6995_p6, %p6989_p3 }
0x133f   :  { %5187 = vmatpush1.bf16.msra.mxu1 %v6739_v33 }
0x1340   :  { %5188 = vmatprep.subr.bf16.mxu1 %v6744_v7 }
0x1343   :  { %5189 = vmatpush1.bf16.msra.mxu1 %v6742_v48 }
0x1344   :  { %5190 = vmatprep.subr.bf16.mxu1 %v6747_v45  ;;  %v5278_v45 = vrot.slane %v5844_v44, %v7278_v41 }
0x1347   :  { %5191 = vmatpush1.bf16.msra.mxu1 %v6745_v12  ;;  %v5282_v12 = vrot.slane %v5844_v44, %v7284_v43 }
0x1348   :  { %5192 = vmatprep.subr.bf16.mxu1 %v6750_v49 }
0x134b   :  { %5193 = vmatpush1.bf16.msra.mxu1 %v6748_v32 }
0x134c   :  { %5194 = vmatprep.subr.bf16.mxu1 %v6753_v50 }
0x134f   :  { %5195 = vmatpush1.bf16.msra.mxu1 %v6751_v51 }
0x1350   :  { %5196 = vmatprep.subr.bf16.mxu1 %v6756_v37 }
0x1353   :  { %5197 = vmatpush1.bf16.msra.mxu1 %v6754_v52 }
0x1354   :  { %5198 = vmatprep.subr.bf16.mxu1 %v6759_v38 }
0x1357   :  { %5199 = vmatpush1.bf16.msra.mxu1 %v6757_v53 }
0x1358   :  { %5200 = vmatprep.subr.bf16.mxu1 %v6762_v39 }
0x135b   :  { %5201 = vmatpush1.bf16.msra.mxu1 %v6760_v42 }
0x135c   :  { %5202 = vmatprep.subr.bf16.mxu1 %v6765_v54 }
0x135f   :  { %5203 = vmatpush1.bf16.msra.mxu1 %v6763_v55 }
0x1360   :  { %5204 = vmatprep.subr.bf16.mxu1 %v6768_v56 }
0x1363   :  { %5205 = vmatpush1.bf16.msra.mxu1 %v6766_v57 }
0x1364   :  { %5206 = vmatprep.subr.bf16.mxu1 %v6771_v58 }
0x1367   :  { %5207 = vmatpush1.bf16.msra.mxu1 %v6769_v59 }
0x136a   :  { %5209 = vmatmul.mubr.bf16.vlgmr.msra.gmra.mrb[52].mxu1 %v7676_v26 }
0x143d   :  { %v5210_v63 = vpop.f32.mrb[52].mxu1 }
0x143e   :  { %v5977_v0 = vadd.f32 %v5210_v63, %v4806_v61  ;;  %v5212_v1 = vpop.f32.mrb[53].mxu1 }
0x143f   :  { %v5978_v2 = vadd.f32 %v5212_v1, %v4810_v62  ;;  %v5214_v4 = vpop.f32.mrb[54].mxu1 }
0x1440   :  { %v5219_v5 = vadd.f32 %v5977_v0, %v7659_v17  ;;  %v5979_v3 = vadd.f32 %v5214_v4, %v4806_v61  ;;  %v5216_v6 = vpop.f32.mrb[55].mxu1 }
0x1441   :  { %v5220_v8 = vadd.f32 %v5978_v2, %v7655_v9  ;;  %v5980_v10 = vadd.f32 %v5216_v6, %v4810_v62 }
0x1442   :  { %v5221_v15 = vadd.f32 %v5979_v3, %v7661_v18 }
0x1443   :  { %v5222_v11 = vadd.f32 %v5980_v10, %v7657_v19  ;;  %v5227_v14 = vadd.f32 %v5220_v8, %v5219_v5 }
0x1445   :  { %5228 = vadd.xlane.f32.xlu0 %v5227_v14  ;;  %v5230_v22 = vadd.f32 %v5222_v11, %v5221_v15 }
0x1447   :  { %5231 = vadd.xlane.f32.xlu1 %v5230_v22 }
0x14d2   :  { %v5229_v40 = vpop.xlane.xlu0 %5228 }
0x14d3   :  { %v5233_v16 = vmul.f32 0.00390625, %v5229_v40 }
0x14d4   :  { %v5232_v20 = vpop.xlane.xlu1 %5231 }
0x14d5   :  { %v5235_v23 = vsub.f32 %v5219_v5, %v5233_v16  ;;  %v5236_v21 = vsub.f32 %v5220_v8, %v5233_v16  ;;  %v5234_v25 = vmul.f32 0.00390625, %v5232_v20 }
0x14d7   :  { %v5237_v17 = vsub.f32 %v5221_v15, %v5234_v25  ;;  %v5238_v24 = vsub.f32 %v5222_v11, %v5234_v25  ;;  %v5239_v26 = vmul.f32 %v5235_v23, %v5235_v23  ;;  %v5240_v28 = vmul.f32 %v5236_v21, %v5236_v21 }
0x14d9   :  { %v5243_v9 = vadd.f32 %v5240_v28, %v5239_v26  ;;  %v5241_v29 = vmul.f32 %v5237_v17, %v5237_v17  ;;  %v5242_v31 = vmul.f32 %v5238_v24, %v5238_v24 }
0x14db   :  { %5244 = vadd.xlane.f32.xlu0 %v5243_v9  ;;  %v5246_v18 = vadd.f32 %v5242_v31, %v5241_v29 }
0x14dd   :  { %5247 = vadd.xlane.f32.xlu1 %v5246_v18 }
0x1568   :  { %v5245_v19 = vpop.xlane.xlu0 %5244 }
0x1569   :  { %v5249_v34 = vmul.f32 0.00390625, %v5245_v19 }
0x156a   :  { %v5248_v13 = vpop.xlane.xlu1 %5247 }
0x156b   :  { %v5251_v30 = vadd.f32 1e-05, %v5249_v34  ;;  %v5250_v47 = vmul.f32 0.00390625, %v5248_v13 }
0x156d   :  { %6816 = vrsqrt.f32 %v5251_v30  ;;  %v5252_v46 = vadd.f32 1e-05, %v5250_v47 }
0x156f   :  { %6818 = vrsqrt.f32 %v5252_v46 }
0x1577   :  { %v6817_v33 = vpop.eup %6816 }
0x1578   :  { %v5255_v7 = vmul.f32 %v6817_v33, %v5235_v23  ;;  %v5256_v48 = vmul.f32 %v6817_v33, %v5236_v21 }
0x1579   :  { %v6819_v49 = vpop.eup %6818 }
0x157a   :  { %v5257_v32 = vmul.f32 %v6819_v49, %v5237_v17  ;;  %v5258_v50 = vmul.f32 %v6819_v49, %v5238_v24  ;;  %v5270_v51 = vmul.f32 %v5263_v36, %v5255_v7  ;;  %v5271_v37 = vmul.f32 %v5267_v27, %v5256_v48 }
0x157c   :  { %v5272_v52 = vmul.f32 %v5263_v36, %v5257_v32  ;;  %v5273_v38 = vmul.f32 %v5267_v27, %v5258_v50  ;;  %v5285_v53 = vadd.f32 %v5278_v45, %v5270_v51  ;;  %v5286_v39 = vadd.f32 %v5282_v12, %v5271_v37 }
0x157e   :  { %v5287_v42 = vadd.f32 %v5278_v45, %v5272_v52  ;;  %v5288_v54 = vadd.f32 %v5282_v12, %v5273_v38  ;;  %5289 = vst [vmem:[#allocation17] sm:$0xff] %v5285_v53  ;;  %5290 = vst [vmem:[#allocation17 + $0x8] sm:$0xff] %v5286_v39 }
0x1580   :  { %5291 = vst [vmem:[#allocation17 + $0x10] sm:$0xff] %v5287_v42  ;;  %5292 = vst [vmem:[#allocation17 + $0x18] sm:$0xff] %v5288_v54 }
0x1581   :  { %6999 = shalt.err (!%p6996_p7)
}
0x1582   :  { %s7000_s30 = scalar_lea.hbm %s7731_s18, 512 }
0x1583   :  { %p7001_p8 = scmp.ne.s32.totalorder %s7731_s18, %s7000_s30  ;;  %p7004_p9 = scmp.lt.u32.totalorder %s7000_s30, %s7731_s18 }
0x1585   :  { %p7006_p10 = pnand %p7004_p9, %p7001_p8 }
0x1587   :  { %7009 = shalt.err (!%p7006_p10)
}
0x1588   :  { %5304 = dma.vmem_to_hbm [thread:$0]  %s5299_s14, 512, %s7731_s18, [#allocation7], %s7029_s2, %s7029_s2, %s7030_s23  }
0x1589   :  { %7020 = dma.done.wait [#allocation7], 512  }
0x158a   :  { %7021 = vsyncadd [#allocation7], 4294966784 }
0x158b   :  { %5308 = vsyncpa [#allocation6], 1 }
0x158c   :  { %5309 = vsyncpa [#allocation9], 1 }
0x158d   :  { %5310 = vsyncpa [#allocation12], 1 }
0x158e   :  { %5311 = vsyncpa [#allocation15], 1 }
0x158f   :  { %5312 = vsyncpa [#allocation7], 1 }

</bundles_post_ra>
